<compile_context>
chip_gen: v7x
topology: tpu7x:2x2x1
jax: 0.10.0
libtpu: 0.0.40
codegen_flags: <defaults>
</compile_context>

<pallas_src>
import functools

import jax
import jax.numpy as jnp
from jax.experimental import pallas as pl
from jax.experimental.pallas import tpu as pltpu

_VMEM_LIMIT = 32 * 1024 * 1024     # explicit scoped-VMEM cap (v5e default is 16 MiB)
_STATIC_UNROLL_T_MAX = 32          # fully unroll the time loop only below this length


# ----------------------------------------------------------------------------- #
# Shared in-kernel helpers
# ----------------------------------------------------------------------------- #
def _lstm_cell(gates, c):
    """gates: (rows, 4H) in PyTorch (i, f, g, o) order; c: (rows, H)."""
    H = c.shape[-1]
    i_g = jax.nn.sigmoid(gates[:, 0 * H:1 * H])
    f_g = jax.nn.sigmoid(gates[:, 1 * H:2 * H])
    g_g = jnp.tanh(gates[:, 2 * H:3 * H])
    o_g = jax.nn.sigmoid(gates[:, 3 * H:4 * H])
    c_new = f_g * c + i_g * g_g
    h_new = o_g * jnp.tanh(c_new)
    return h_new, c_new


def _full_spec(shape):
    return pl.BlockSpec(shape, lambda: (0,) * len(shape))


# ----------------------------------------------------------------------------- #
# Kernel 1: bidirectional encoder LSTM + fused latent head
# ----------------------------------------------------------------------------- #
def enc_latent_kernel(emb_ref, embr_ref, wif_ref, bif_ref, wib_ref, bib_ref,
                      whhfb_ref, eps_ref, wh2l_ref, bh2l_ref, wmv_ref, bmv_ref,
                      wz_ref, bz_ref,
                      mu_ref, logvar_ref, kld_ref, vecs_ref, hc0_ref,
                      gxf_s, gxb_s):
    H = whhfb_ref.shape[0]
    G = 4 * H
    S, B, LAT = eps_ref.shape
    TB = emb_ref.shape[0]
    T = TB // B

    # --- prologue: hoisted x @ W_ih (bf16 MXU, f32 accumulate), gates stay in VMEM ---
    gxf_s[...] = (jnp.dot(emb_ref[...].astype(jnp.bfloat16),
                          wif_ref[...].astype(jnp.bfloat16),
                          preferred_element_type=jnp.float32) + bif_ref[...])
    gxb_s[...] = (jnp.dot(embr_ref[...].astype(jnp.bfloat16),
                          wib_ref[...].astype(jnp.bfloat16),
                          preferred_element_type=jnp.float32) + bib_ref[...])

    whh_fb = whhfb_ref[...]                                   # (H, 8H) = [W_hh_f | W_hh_b]
    row = jax.lax.broadcasted_iota(jnp.int32, (2 * B, 1), 0)
    is_fwd = row < B                                          # fwd rows [:B], bwd rows [B:]

    def step(t, h, c):
        r0 = t * B
        gx_t = jnp.concatenate([gxf_s[pl.ds(r0, B), :],
                                gxb_s[pl.ds(r0, B), :]], axis=0)          # (2B, 4H)
        # single wide recurrent dot for both directions, then row-wise select
        rec = jnp.dot(h, whh_fb, preferred_element_type=jnp.float32)      # (2B, 8H)
        gates = gx_t + jnp.where(is_fwd, rec[:, :G], rec[:, G:])
        return _lstm_cell(gates, c)

    h = jnp.zeros((2 * B, H), jnp.float32)
    c = jnp.zeros((2 * B, H), jnp.float32)
    if T <= _STATIC_UNROLL_T_MAX:
        for t in range(T):                                   # static unroll (small T)
            h, c = step(t, h, c)
    else:
        def body(t, carry):
            return step(t, *carry)
        h, c = jax.lax.fori_loop(0, T, body, (h, c), unroll=8)

    # --- epilogue: fused latent head (consumes concat_hc still live in vregs) ---
    # PyTorch bidirectional order: cat(h_n[0], h_n[1], c_n[0], c_n[1]) along features.
    concat_hc = jnp.concatenate([h[:B], h[B:], c[:B], c[B:]], axis=1)     # (B, 4H)
    h_lat = (jnp.dot(concat_hc, wh2l_ref[...], preferred_element_type=jnp.float32)
             + bh2l_ref[...])                                             # (B, H)
    mulv = (jnp.dot(h_lat, wmv_ref[...], preferred_element_type=jnp.float32)
            + bmv_ref[...])                                               # (B, 2*lat)
    mu = mulv[:, :LAT]
    logvar = mulv[:, LAT:]
    mu_ref[...] = mu
    logvar_ref[...] = logvar
    kld_ref[...] = -0.5 * jnp.sum(1.0 + logvar - mu * mu - jnp.exp(logvar),
                                  axis=1, keepdims=True)                  # (B, 1)
    std = jnp.exp(0.5 * logvar)
    vecs = mu[None, :, :] + eps_ref[...] * std[None, :, :]                # (S, B, lat)
    vecs_ref[...] = vecs
    vec = jnp.mean(vecs, axis=0)                                          # (B, lat)
    hc0_ref[...] = (jnp.dot(vec, wz_ref[...], preferred_element_type=jnp.float32)
                    + bz_ref[...])                                        # (B, 2H) [z_to_h|z_to_c]


def enc_and_latent(emb2d, embr2d, p, eps):
    TB, E = emb2d.shape
    S, B, LAT = eps.shape
    H = p["whh_enc_fb"].shape[0]
    G = 4 * H
    return pl.pallas_call(
        enc_latent_kernel,
        in_specs=[
            _full_spec((TB, E)), _full_spec((TB, E)),
            _full_spec((E, G)), _full_spec((1, G)),
            _full_spec((E, G)), _full_spec((1, G)),
            _full_spec((H, 2 * G)),
            _full_spec((S, B, LAT)),
            _full_spec((4 * H, H)), _full_spec((1, H)),
            _full_spec((H, 2 * LAT)), _full_spec((1, 2 * LAT)),
            _full_spec((LAT, 2 * H)), _full_spec((1, 2 * H)),
        ],
        out_specs=[
            _full_spec((B, LAT)), _full_spec((B, LAT)), _full_spec((B, 1)),
            _full_spec((S, B, LAT)), _full_spec((B, 2 * H)),
        ],
        out_shape=[
            jax.ShapeDtypeStruct((B, LAT), jnp.float32),
            jax.ShapeDtypeStruct((B, LAT), jnp.float32),
            jax.ShapeDtypeStruct((B, 1), jnp.float32),
            jax.ShapeDtypeStruct((S, B, LAT), jnp.float32),
            jax.ShapeDtypeStruct((B, 2 * H), jnp.float32),
        ],
        scratch_shapes=[pltpu.VMEM((TB, G), jnp.float32),
                        pltpu.VMEM((TB, G), jnp.float32)],
        compiler_params=pltpu.CompilerParams(vmem_limit_bytes=_VMEM_LIMIT),
    )(emb2d, embr2d,
      p["w_ih_enc_f"], p["b_ih_enc_f"], p["w_ih_enc_b"], p["b_ih_enc_b"],
      p["whh_enc_fb"], eps,
      p["h2l_w"], p["h2l_b"], p["mulv_w"], p["mulv_b"], p["z2hc_w"], p["z2hc_b"])


# ----------------------------------------------------------------------------- #
# Kernel 2: decoder LSTM (nlayers=1) with fused input projection
# ----------------------------------------------------------------------------- #
def dec_lstm_kernel(emb_ref, wih_ref, bih_ref, whh_ref, hc0_ref, hs_ref, gx_s):
    H = whh_ref.shape[0]
    TB = emb_ref.shape[0]
    B = hc0_ref.shape[0]
    T = TB // B

    # prologue: hoisted x @ W_ih (bf16 MXU), gates stay in VMEM
    gx_s[...] = (jnp.dot(emb_ref[...].astype(jnp.bfloat16),
                         wih_ref[...].astype(jnp.bfloat16),
                         preferred_element_type=jnp.float32) + bih_ref[...])

    whh = whh_ref[...]

    def step(t, h, c):
        gates = gx_s[pl.ds(t * B, B), :] + jnp.dot(h, whh,
                                                   preferred_element_type=jnp.float32)
        return _lstm_cell(gates, c)

    h = hc0_ref[:, 0:H]
    c = hc0_ref[:, H:2 * H]
    if T <= _STATIC_UNROLL_T_MAX:
        hs = []
        for t in range(T):                                  # static unroll (small T)
            h, c = step(t, h, c)
            hs.append(h)
        hs_ref[...] = jnp.concatenate(hs, axis=0)           # ONE bulk store of all steps
    else:
        # TODO(synk): per-step (B,H) stores are masked when H < 128 lanes; only taken
        # for long sequences where full unroll would spill vregs.
        def body(t, carry):
            hh, cc = step(t, *carry)
            hs_ref[pl.ds(t * B, B), :] = hh
            return (hh, cc)
        jax.lax.fori_loop(0, T, body, (h, c), unroll=8)


def dec_lstm(emb2d, p, hc0):
    TB, E = emb2d.shape
    B, H2 = hc0.shape
    H = H2 // 2
    G = 4 * H
    return pl.pallas_call(
        dec_lstm_kernel,
        in_specs=[
            _full_spec((TB, E)),
            _full_spec((E, G)), _full_spec((1, G)),
            _full_spec((H, G)),
            _full_spec((B, 2 * H)),
        ],
        out_specs=_full_spec((TB, H)),
        out_shape=jax.ShapeDtypeStruct((TB, H), jnp.float32),
        scratch_shapes=[pltpu.VMEM((TB, G), jnp.float32)],
        compiler_params=pltpu.CompilerParams(vmem_limit_bytes=_VMEM_LIMIT),
    )(emb2d, p["w_ih_dec"], p["b_ih_dec"], p["whh_dec"], hc0)


# ----------------------------------------------------------------------------- #
# Kernel 3: decoder_out projection + masked cross-entropy (ignore_index=0)
# ----------------------------------------------------------------------------- #
def ce_logits_kernel(x_ref, w_ref, b_ref, tgt_ref, logits_ref, nll_ref):
    x = x_ref[...].astype(jnp.bfloat16)                     # bf16 MXU operands
    logits = (jnp.dot(x, w_ref[...], preferred_element_type=jnp.float32)
              + b_ref[...])                                 # (TM, V) f32
    logits_ref[...] = logits

    m = jnp.max(logits, axis=-1, keepdims=True)
    lse = m + jnp.log(jnp.sum(jnp.exp(logits - m), axis=-1, keepdims=True))

    tgt = tgt_ref[...]                                      # (TM, 1) int32
    # TODO(synk): tgt could be passed lane-major / via scalar prefetch; kept (TM,1) here.
    col = jax.lax.broadcasted_iota(jnp.int32, logits.shape, 1)
    tgt_logit = jnp.sum(jnp.where(col == tgt, logits, 0.0), axis=-1, keepdims=True)
    nll = lse - tgt_logit                                   # (TM, 1)

    valid = (tgt != 0).astype(jnp.float32)                  # ignore_index = 0
    nll_ref[...] = nll * valid


def ce_and_logits(x, w_bf16, b, tgt):
    """x: (R, H), w_bf16: (H, V) bfloat16, b: (1, V), tgt: (R, 1) int32."""
    R, H = x.shape
    V = w_bf16.shape[1]
    tile_rows = R if R <= 256 else 256
    ntiles = pl.cdiv(R, tile_rows)
    Rp = ntiles * tile_rows
    if Rp != R:                                             # pad tail; tgt=0 is ignored
        x = jnp.pad(x, ((0, Rp - R), (0, 0)))
        tgt = jnp.pad(tgt, ((0, Rp - R), (0, 0)))
    logits, nll = pl.pallas_call(
        ce_logits_kernel,
        grid=(ntiles,),
        in_specs=[
            pl.BlockSpec((tile_rows, H), lambda i: (i, 0)),
            pl.BlockSpec((H, V), lambda i: (0, 0)),
            pl.BlockSpec((1, V), lambda i: (0, 0)),
            pl.BlockSpec((tile_rows, 1), lambda i: (i, 0)),
        ],
        out_specs=[
            pl.BlockSpec((tile_rows, V), lambda i: (i, 0)),
            pl.BlockSpec((tile_rows, 1), lambda i: (i, 0)),
        ],
        out_shape=[
            jax.ShapeDtypeStruct((Rp, V), jnp.float32),
            jax.ShapeDtypeStruct((Rp, 1), jnp.float32),
        ],
        compiler_params=pltpu.CompilerParams(
            dimension_semantics=("parallel",),              # tiles independent -> 2 TCs on v7x
            vmem_limit_bytes=_VMEM_LIMIT),
    )(x, w_bf16, b, tgt)
    return logits[:R], nll[:R]


# ----------------------------------------------------------------------------- #
# Model glue (parameter setup, embedding lookup, wrapper)
# ----------------------------------------------------------------------------- #
def init_params(key, ntoken, ninp, nhid, lat_dim, nlayers):
    assert nlayers == 1  # decoder LSTM is single-layer in this configuration

    def u(k, shape):
        return jax.random.uniform(k, shape, jnp.float32, -0.1, 0.1)

    keys = jax.random.split(key, 18)
    G = 4 * nhid
    params = dict(
        emb=u(keys[0], (ntoken, ninp)),
        # encoder LSTM, per direction; biases are b_ih + b_hh folded (sum them if importing
        # PyTorch weights).
        w_ih_enc_f=u(keys[1], (ninp, G)), b_ih_enc_f=u(keys[2], (1, G)),
        w_ih_enc_b=u(keys[3], (ninp, G)), b_ih_enc_b=u(keys[4], (1, G)),
        whh_enc_fb=u(keys[5], (nhid, 2 * G)),                 # [W_hh_fwd | W_hh_bwd]
        # decoder LSTM
        w_ih_dec=u(keys[6], (ninp, G)), b_ih_dec=u(keys[7], (1, G)),
        whh_dec=u(keys[8], (nhid, G)),
        # hid4_to_lat
        h2l_w=u(keys[9], (4 * nhid, nhid)), h2l_b=u(keys[10], (1, nhid)),
        # [fc_mu | fc_logvar] fused
        mulv_w=u(keys[11], (nhid, 2 * lat_dim)), mulv_b=u(keys[12], (1, 2 * lat_dim)),
        # [z_to_h | z_to_c] fused
        z2hc_w=u(keys[13], (lat_dim, 2 * nhid * nlayers)),
        z2hc_b=u(keys[14], (1, 2 * nhid * nlayers)),
        dec_out_w=u(keys[15], (nhid, ntoken)), dec_out_b=u(keys[16], (1, ntoken)),
    )
    return params


def check_dispersion(vecs):
    # TODO(synk): NVLL's check_dispersion samples random batch pairs; here we compute the
    # exact mean pairwise cosine similarity of the first sample (deterministic).
    v = vecs[0]                                           # (B, lat)
    vn = v / (jnp.linalg.norm(v, axis=-1, keepdims=True) + 1e-8)
    cos = vn @ vn.T                                       # (B, B)
    B = v.shape[0]
    mask = 1.0 - jnp.eye(B)
    return jnp.sum(cos * mask) / jnp.maximum(jnp.sum(mask), 1.0)


@functools.partial(jax.jit, static_argnames=("ntoken", "nhid", "lat_dim", "nlayers"))
def rnnvae_forward(params, inp, target, eps, *, ntoken, nhid, lat_dim, nlayers):
    """inp, target: (seq_len, batch) int32.  eps: (nsample, batch, lat_dim) ~ N(0,1)."""
    T, B = inp.shape

    # embedding + dropout (identity in eval mode); lookup stays in XLA (gather)
    emb = params["emb"][inp]                              # (T, B, ninp)
    E = emb.shape[-1]
    emb2d = emb.reshape(T * B, E)
    embr2d = emb[::-1].reshape(T * B, E)                  # backward-direction input order

    # ---- encoder (bi-LSTM) + Gauss latent head, fully fused in one kernel ----
    mu, logvar, kld2, vecs, hc0 = enc_and_latent(emb2d, embr2d, params, eps)
    kld = kld2.reshape(B)                                 # (B,)

    aux_loss = jnp.zeros((B,), jnp.float32)               # no 'redundant_norm' for Gauss
    norm = jnp.zeros((B,), jnp.float32)                   # no 'norm' for Gauss
    tup = dict(mean=mu, logvar=logvar, norm=norm,
               avg_cos=check_dispersion(vecs), avg_norm=jnp.mean(norm))

    # ---- decoder: z -> (h0, c0); single-layer LSTM over ground-truth embeddings ----
    dec_hs = dec_lstm(emb2d, params, hc0)                 # (T*B, H)

    # ---- decoder_out projection + cross-entropy (ignore_index=0), fused kernel ----
    tgt_flat = target.reshape(T * B, 1).astype(jnp.int32)
    logits, nll = ce_and_logits(dec_hs, params["dec_out_w"].astype(jnp.bfloat16),
                                params["dec_out_b"], tgt_flat)
    cnt = jnp.sum((tgt_flat != 0).astype(jnp.float32))
    loss = jnp.sum(nll) / jnp.maximum(cnt, 1.0)
    decoded = logits.reshape(T, B, ntoken)

    return loss, kld, aux_loss, tup, vecs, decoded


# ----------------------------------------------------------------------------- #
if __name__ == "__main__":
    ntoken, ninp, nhid, lat_dim, nlayers, nsample = 256, 32, 32, 16, 1, 3
    seq_len, batch = 8, 4

    key = jax.random.PRNGKey(0)
    k_par, k_inp, k_tgt, k_eps = jax.random.split(key, 4)

    params = init_params(k_par, ntoken, ninp, nhid, lat_dim, nlayers)
    inp = jax.random.randint(k_inp, (seq_len, batch), 0, ntoken, dtype=jnp.int32)
    target = jax.random.randint(k_tgt, (seq_len, batch), 1, ntoken, dtype=jnp.int32)
    eps = jax.random.normal(k_eps, (nsample, batch, lat_dim), jnp.float32)

    loss, kld, aux_loss, tup, vecs, decoded = rnnvae_forward(
        params, inp, target, eps,
        ntoken=ntoken, nhid=nhid, lat_dim=lat_dim, nlayers=nlayers)

    jax.block_until_ready((loss, kld, aux_loss, tup, vecs, decoded))
    assert decoded.shape == (seq_len, batch, ntoken)
    assert vecs.shape == (nsample, batch, lat_dim)
    assert kld.shape == (batch,)
    assert bool(jnp.isfinite(loss))
    print("KERNEL_OK")
</pallas_src>

<mosaic_0001>
module attributes {stable_mosaic.version = 11 : i64} {
  func.func @enc_latent_kernel(%arg0: memref<32x32xf32, #tpu.memory_space<vmem>>, %arg1: memref<32x32xf32, #tpu.memory_space<vmem>>, %arg2: memref<32x128xf32, #tpu.memory_space<vmem>>, %arg3: memref<1x128xf32, #tpu.memory_space<vmem>>, %arg4: memref<32x128xf32, #tpu.memory_space<vmem>>, %arg5: memref<1x128xf32, #tpu.memory_space<vmem>>, %arg6: memref<32x256xf32, #tpu.memory_space<vmem>>, %arg7: memref<3x4x16xf32, #tpu.memory_space<vmem>>, %arg8: memref<128x32xf32, #tpu.memory_space<vmem>>, %arg9: memref<1x32xf32, #tpu.memory_space<vmem>>, %arg10: memref<32x32xf32, #tpu.memory_space<vmem>>, %arg11: memref<1x32xf32, #tpu.memory_space<vmem>>, %arg12: memref<16x64xf32, #tpu.memory_space<vmem>>, %arg13: memref<1x64xf32, #tpu.memory_space<vmem>>, %arg14: memref<4x16xf32, #tpu.memory_space<vmem>>, %arg15: memref<4x16xf32, #tpu.memory_space<vmem>>, %arg16: memref<4x1xf32, #tpu.memory_space<vmem>>, %arg17: memref<3x4x16xf32, #tpu.memory_space<vmem>>, %arg18: memref<4x64xf32, #tpu.memory_space<vmem>>, %arg19: memref<32x128xf32, #tpu.memory_space<vmem>>, %arg20: memref<32x128xf32, #tpu.memory_space<vmem>>) attributes {dimension_semantics = [], scalar_prefetch = 0 : i64, scratch_operands = 2 : i64, tpu.core_type = #tpu.core_type<tc>} {
    %c0 = arith.constant 0 : index
    %c0_0 = arith.constant 0 : index
    %0 = vector.load %arg0[%c0, %c0_0] : memref<32x32xf32, #tpu.memory_space<vmem>>, vector<32x32xf32>
    %1 = arith.truncf %0 : vector<32x32xf32> to vector<32x32xbf16>
    %c0_1 = arith.constant 0 : index
    %c0_2 = arith.constant 0 : index
    %2 = vector.load %arg2[%c0_1, %c0_2] : memref<32x128xf32, #tpu.memory_space<vmem>>, vector<32x128xf32>
    %3 = arith.truncf %2 : vector<32x128xf32> to vector<32x128xbf16>
    %cst = arith.constant dense<0.000000e+00> : vector<32x128xf32>
    %4 = tpu.matmul %1, %3, %cst {dimension_numbers = #tpu.dot_dimension_numbers<[1], [0], [0], [1], [0, 0, 1, 1], [], []>} : vector<32x32xbf16>, vector<32x128xbf16>, vector<32x128xf32> -> vector<32x128xf32>
    %c0_3 = arith.constant 0 : index
    %c0_4 = arith.constant 0 : index
    %5 = vector.load %arg3[%c0_3, %c0_4] : memref<1x128xf32, #tpu.memory_space<vmem>>, vector<1x128xf32>
    %6 = vector.broadcast %5 : vector<1x128xf32> to vector<32x128xf32>
    %7 = arith.addf %4, %6 : vector<32x128xf32>
    %c0_5 = arith.constant 0 : index
    %c0_6 = arith.constant 0 : index
    %8 = vector.load %arg19[%c0_5, %c0_6] : memref<32x128xf32, #tpu.memory_space<vmem>>, vector<32x128xf32>
    tpu.vector_store %arg19[%c0_5, %c0_6], %7 {strides = array<i32>} : memref<32x128xf32, #tpu.memory_space<vmem>>, vector<32x128xf32>,
    %c0_7 = arith.constant 0 : index
    %c0_8 = arith.constant 0 : index
    %9 = vector.load %arg1[%c0_7, %c0_8] : memref<32x32xf32, #tpu.memory_space<vmem>>, vector<32x32xf32>
    %10 = arith.truncf %9 : vector<32x32xf32> to vector<32x32xbf16>
    %c0_9 = arith.constant 0 : index
    %c0_10 = arith.constant 0 : index
    %11 = vector.load %arg4[%c0_9, %c0_10] : memref<32x128xf32, #tpu.memory_space<vmem>>, vector<32x128xf32>
    %12 = arith.truncf %11 : vector<32x128xf32> to vector<32x128xbf16>
    %cst_11 = arith.constant dense<0.000000e+00> : vector<32x128xf32>
    %13 = tpu.matmul %10, %12, %cst_11 {dimension_numbers = #tpu.dot_dimension_numbers<[1], [0], [0], [1], [0, 0, 1, 1], [], []>} : vector<32x32xbf16>, vector<32x128xbf16>, vector<32x128xf32> -> vector<32x128xf32>
    %c0_12 = arith.constant 0 : index
    %c0_13 = arith.constant 0 : index
    %14 = vector.load %arg5[%c0_12, %c0_13] : memref<1x128xf32, #tpu.memory_space<vmem>>, vector<1x128xf32>
    %15 = vector.broadcast %14 : vector<1x128xf32> to vector<32x128xf32>
    %16 = arith.addf %13, %15 : vector<32x128xf32>
    %c0_14 = arith.constant 0 : index
    %c0_15 = arith.constant 0 : index
    %17 = vector.load %arg20[%c0_14, %c0_15] : memref<32x128xf32, #tpu.memory_space<vmem>>, vector<32x128xf32>
    tpu.vector_store %arg20[%c0_14, %c0_15], %16 {strides = array<i32>} : memref<32x128xf32, #tpu.memory_space<vmem>>, vector<32x128xf32>,
    %c0_16 = arith.constant 0 : index
    %c0_17 = arith.constant 0 : index
    %18 = vector.load %arg6[%c0_16, %c0_17] : memref<32x256xf32, #tpu.memory_space<vmem>>, vector<32x256xf32>
    %19 = tpu.iota {dimensions = array<i32: 0>} : vector<8x1xi32>
    %c4_i32 = arith.constant 4 : i32
    %20 = vector.broadcast %c4_i32 : i32 to vector<8x1xi32>
    %21 = arith.cmpi slt, %19, %20 : vector<8x1xi32>
    %cst_18 = arith.constant 0.000000e+00 : f32
    %22 = vector.broadcast %cst_18 : f32 to vector<8x32xf32>
    %cst_19 = arith.constant 0.000000e+00 : f32
    %23 = vector.broadcast %cst_19 : f32 to vector<8x32xf32>
    %c0_20 = arith.constant 0 : index
    %c0_21 = arith.constant 0 : index
    %24 = vector.load %arg19[%c0_20, %c0_21] : memref<32x128xf32, #tpu.memory_space<vmem>>, vector<4x128xf32>
    %c0_22 = arith.constant 0 : index
    %c0_23 = arith.constant 0 : index
    %25 = vector.load %arg20[%c0_22, %c0_23] : memref<32x128xf32, #tpu.memory_space<vmem>>, vector<4x128xf32>
    %26 = tpu.concatenate %24, %25 in 0 : vector<4x128xf32>, vector<4x128xf32> -> vector<8x128xf32>
    %cst_24 = arith.constant dense<0.000000e+00> : vector<8x256xf32>
    %27 = tpu.matmul %22, %18, %cst_24 {dimension_numbers = #tpu.dot_dimension_numbers<[1], [0], [0], [1], [0, 0, 1, 1], [], []>} : vector<8x32xf32>, vector<32x256xf32>, vector<8x256xf32> -> vector<8x256xf32>
    %28 = vector.extract_strided_slice %27 {offsets = [0, 0], sizes = [8, 128], strides = [1, 1]} : vector<8x256xf32> to vector<8x128xf32>
    %29 = vector.extract_strided_slice %27 {offsets = [0, 128], sizes = [8, 128], strides = [1, 1]} : vector<8x256xf32> to vector<8x128xf32>
    %30 = vector.shape_cast %21 : vector<8x1xi1> to vector<8x1xi1>
    %31 = vector.broadcast %30 : vector<8x1xi1> to vector<8x128xi1>
    %32 = arith.select %31, %28, %29 : vector<8x128xi1>, vector<8x128xf32>
    %33 = arith.addf %26, %32 : vector<8x128xf32>
    %34 = vector.extract_strided_slice %33 {offsets = [0, 0], sizes = [8, 32], strides = [1, 1]} : vector<8x128xf32> to vector<8x32xf32>
    %35 = arith.negf %34 : vector<8x32xf32>
    %36 = math.exp %35 : vector<8x32xf32>
    %cst_25 = arith.constant 1.000000e+00 : f32
    %37 = vector.broadcast %cst_25 : f32 to vector<8x32xf32>
    %38 = arith.addf %37, %36 : vector<8x32xf32>
    %39 = arith.divf %37, %38 : vector<8x32xf32>
    %40 = vector.extract_strided_slice %33 {offsets = [0, 32], sizes = [8, 32], strides = [1, 1]} : vector<8x128xf32> to vector<8x32xf32>
    %41 = arith.negf %40 : vector<8x32xf32>
    %42 = math.exp %41 : vector<8x32xf32>
    %cst_26 = arith.constant 1.000000e+00 : f32
    %43 = vector.broadcast %cst_26 : f32 to vector<8x32xf32>
    %44 = arith.addf %43, %42 : vector<8x32xf32>
    %45 = arith.divf %43, %44 : vector<8x32xf32>
    %46 = vector.extract_strided_slice %33 {offsets = [0, 64], sizes = [8, 32], strides = [1, 1]} : vector<8x128xf32> to vector<8x32xf32>
    %47 = math.tanh %46 : vector<8x32xf32>
    %48 = vector.extract_strided_slice %33 {offsets = [0, 96], sizes = [8, 32], strides = [1, 1]} : vector<8x128xf32> to vector<8x32xf32>
    %49 = arith.negf %48 : vector<8x32xf32>
    %50 = math.exp %49 : vector<8x32xf32>
    %cst_27 = arith.constant 1.000000e+00 : f32
    %51 = vector.broadcast %cst_27 : f32 to vector<8x32xf32>
    %52 = arith.addf %51, %50 : vector<8x32xf32>
    %53 = arith.divf %51, %52 : vector<8x32xf32>
    %54 = arith.mulf %45, %23 : vector<8x32xf32>
    %55 = arith.mulf %39, %47 : vector<8x32xf32>
    %56 = arith.addf %54, %55 : vector<8x32xf32>
    %57 = math.tanh %56 : vector<8x32xf32>
    %58 = arith.mulf %53, %57 : vector<8x32xf32>
    %c4 = arith.constant 4 : index
    %c0_28 = arith.constant 0 : index
    %59 = vector.load %arg19[%c4, %c0_28] : memref<32x128xf32, #tpu.memory_space<vmem>>, vector<4x128xf32>
    %c4_29 = arith.constant 4 : index
    %c0_30 = arith.constant 0 : index
    %60 = vector.load %arg20[%c4_29, %c0_30] : memref<32x128xf32, #tpu.memory_space<vmem>>, vector<4x128xf32>
    %61 = tpu.concatenate %59, %60 in 0 : vector<4x128xf32>, vector<4x128xf32> -> vector<8x128xf32>
    %cst_31 = arith.constant dense<0.000000e+00> : vector<8x256xf32>
    %62 = tpu.matmul %58, %18, %cst_31 {dimension_numbers = #tpu.dot_dimension_numbers<[1], [0], [0], [1], [0, 0, 1, 1], [], []>} : vector<8x32xf32>, vector<32x256xf32>, vector<8x256xf32> -> vector<8x256xf32>
    %63 = vector.extract_strided_slice %62 {offsets = [0, 0], sizes = [8, 128], strides = [1, 1]} : vector<8x256xf32> to vector<8x128xf32>
    %64 = vector.extract_strided_slice %62 {offsets = [0, 128], sizes = [8, 128], strides = [1, 1]} : vector<8x256xf32> to vector<8x128xf32>
    %65 = vector.shape_cast %21 : vector<8x1xi1> to vector<8x1xi1>
    %66 = vector.broadcast %65 : vector<8x1xi1> to vector<8x128xi1>
    %67 = arith.select %66, %63, %64 : vector<8x128xi1>, vector<8x128xf32>
    %68 = arith.addf %61, %67 : vector<8x128xf32>
    %69 = vector.extract_strided_slice %68 {offsets = [0, 0], sizes = [8, 32], strides = [1, 1]} : vector<8x128xf32> to vector<8x32xf32>
    %70 = arith.negf %69 : vector<8x32xf32>
    %71 = math.exp %70 : vector<8x32xf32>
    %cst_32 = arith.constant 1.000000e+00 : f32
    %72 = vector.broadcast %cst_32 : f32 to vector<8x32xf32>
    %73 = arith.addf %72, %71 : vector<8x32xf32>
    %74 = arith.divf %72, %73 : vector<8x32xf32>
    %75 = vector.extract_strided_slice %68 {offsets = [0, 32], sizes = [8, 32], strides = [1, 1]} : vector<8x128xf32> to vector<8x32xf32>
    %76 = arith.negf %75 : vector<8x32xf32>
    %77 = math.exp %76 : vector<8x32xf32>
    %cst_33 = arith.constant 1.000000e+00 : f32
    %78 = vector.broadcast %cst_33 : f32 to vector<8x32xf32>
    %79 = arith.addf %78, %77 : vector<8x32xf32>
    %80 = arith.divf %78, %79 : vector<8x32xf32>
    %81 = vector.extract_strided_slice %68 {offsets = [0, 64], sizes = [8, 32], strides = [1, 1]} : vector<8x128xf32> to vector<8x32xf32>
    %82 = math.tanh %81 : vector<8x32xf32>
    %83 = vector.extract_strided_slice %68 {offsets = [0, 96], sizes = [8, 32], strides = [1, 1]} : vector<8x128xf32> to vector<8x32xf32>
    %84 = arith.negf %83 : vector<8x32xf32>
    %85 = math.exp %84 : vector<8x32xf32>
    %cst_34 = arith.constant 1.000000e+00 : f32
    %86 = vector.broadcast %cst_34 : f32 to vector<8x32xf32>
    %87 = arith.addf %86, %85 : vector<8x32xf32>
    %88 = arith.divf %86, %87 : vector<8x32xf32>
    %89 = arith.mulf %80, %56 : vector<8x32xf32>
    %90 = arith.mulf %74, %82 : vector<8x32xf32>
    %91 = arith.addf %89, %90 : vector<8x32xf32>
    %92 = math.tanh %91 : vector<8x32xf32>
    %93 = arith.mulf %88, %92 : vector<8x32xf32>
    %c8 = arith.constant 8 : index
    %c0_35 = arith.constant 0 : index
    %94 = vector.load %arg19[%c8, %c0_35] : memref<32x128xf32, #tpu.memory_space<vmem>>, vector<4x128xf32>
    %c8_36 = arith.constant 8 : index
    %c0_37 = arith.constant 0 : index
    %95 = vector.load %arg20[%c8_36, %c0_37] : memref<32x128xf32, #tpu.memory_space<vmem>>, vector<4x128xf32>
    %96 = tpu.concatenate %94, %95 in 0 : vector<4x128xf32>, vector<4x128xf32> -> vector<8x128xf32>
    %cst_38 = arith.constant dense<0.000000e+00> : vector<8x256xf32>
    %97 = tpu.matmul %93, %18, %cst_38 {dimension_numbers = #tpu.dot_dimension_numbers<[1], [0], [0], [1], [0, 0, 1, 1], [], []>} : vector<8x32xf32>, vector<32x256xf32>, vector<8x256xf32> -> vector<8x256xf32>
    %98 = vector.extract_strided_slice %97 {offsets = [0, 0], sizes = [8, 128], strides = [1, 1]} : vector<8x256xf32> to vector<8x128xf32>
    %99 = vector.extract_strided_slice %97 {offsets = [0, 128], sizes = [8, 128], strides = [1, 1]} : vector<8x256xf32> to vector<8x128xf32>
    %100 = vector.shape_cast %21 : vector<8x1xi1> to vector<8x1xi1>
    %101 = vector.broadcast %100 : vector<8x1xi1> to vector<8x128xi1>
    %102 = arith.select %101, %98, %99 : vector<8x128xi1>, vector<8x128xf32>
    %103 = arith.addf %96, %102 : vector<8x128xf32>
    %104 = vector.extract_strided_slice %103 {offsets = [0, 0], sizes = [8, 32], strides = [1, 1]} : vector<8x128xf32> to vector<8x32xf32>
    %105 = arith.negf %104 : vector<8x32xf32>
    %106 = math.exp %105 : vector<8x32xf32>
    %cst_39 = arith.constant 1.000000e+00 : f32
    %107 = vector.broadcast %cst_39 : f32 to vector<8x32xf32>
    %108 = arith.addf %107, %106 : vector<8x32xf32>
    %109 = arith.divf %107, %108 : vector<8x32xf32>
    %110 = vector.extract_strided_slice %103 {offsets = [0, 32], sizes = [8, 32], strides = [1, 1]} : vector<8x128xf32> to vector<8x32xf32>
    %111 = arith.negf %110 : vector<8x32xf32>
    %112 = math.exp %111 : vector<8x32xf32>
    %cst_40 = arith.constant 1.000000e+00 : f32
    %113 = vector.broadcast %cst_40 : f32 to vector<8x32xf32>
    %114 = arith.addf %113, %112 : vector<8x32xf32>
    %115 = arith.divf %113, %114 : vector<8x32xf32>
    %116 = vector.extract_strided_slice %103 {offsets = [0, 64], sizes = [8, 32], strides = [1, 1]} : vector<8x128xf32> to vector<8x32xf32>
    %117 = math.tanh %116 : vector<8x32xf32>
    %118 = vector.extract_strided_slice %103 {offsets = [0, 96], sizes = [8, 32], strides = [1, 1]} : vector<8x128xf32> to vector<8x32xf32>
    %119 = arith.negf %118 : vector<8x32xf32>
    %120 = math.exp %119 : vector<8x32xf32>
    %cst_41 = arith.constant 1.000000e+00 : f32
    %121 = vector.broadcast %cst_41 : f32 to vector<8x32xf32>
    %122 = arith.addf %121, %120 : vector<8x32xf32>
    %123 = arith.divf %121, %122 : vector<8x32xf32>
    %124 = arith.mulf %115, %91 : vector<8x32xf32>
    %125 = arith.mulf %109, %117 : vector<8x32xf32>
    %126 = arith.addf %124, %125 : vector<8x32xf32>
    %127 = math.tanh %126 : vector<8x32xf32>
    %128 = arith.mulf %123, %127 : vector<8x32xf32>
    %c12 = arith.constant 12 : index
    %c0_42 = arith.constant 0 : index
    %129 = vector.load %arg19[%c12, %c0_42] : memref<32x128xf32, #tpu.memory_space<vmem>>, vector<4x128xf32>
    %c12_43 = arith.constant 12 : index
    %c0_44 = arith.constant 0 : index
    %130 = vector.load %arg20[%c12_43, %c0_44] : memref<32x128xf32, #tpu.memory_space<vmem>>, vector<4x128xf32>
    %131 = tpu.concatenate %129, %130 in 0 : vector<4x128xf32>, vector<4x128xf32> -> vector<8x128xf32>
    %cst_45 = arith.constant dense<0.000000e+00> : vector<8x256xf32>
    %132 = tpu.matmul %128, %18, %cst_45 {dimension_numbers = #tpu.dot_dimension_numbers<[1], [0], [0], [1], [0, 0, 1, 1], [], []>} : vector<8x32xf32>, vector<32x256xf32>, vector<8x256xf32> -> vector<8x256xf32>
    %133 = vector.extract_strided_slice %132 {offsets = [0, 0], sizes = [8, 128], strides = [1, 1]} : vector<8x256xf32> to vector<8x128xf32>
    %134 = vector.extract_strided_slice %132 {offsets = [0, 128], sizes = [8, 128], strides = [1, 1]} : vector<8x256xf32> to vector<8x128xf32>
    %135 = vector.shape_cast %21 : vector<8x1xi1> to vector<8x1xi1>
    %136 = vector.broadcast %135 : vector<8x1xi1> to vector<8x128xi1>
    %137 = arith.select %136, %133, %134 : vector<8x128xi1>, vector<8x128xf32>
    %138 = arith.addf %131, %137 : vector<8x128xf32>
    %139 = vector.extract_strided_slice %138 {offsets = [0, 0], sizes = [8, 32], strides = [1, 1]} : vector<8x128xf32> to vector<8x32xf32>
    %140 = arith.negf %139 : vector<8x32xf32>
    %141 = math.exp %140 : vector<8x32xf32>
    %cst_46 = arith.constant 1.000000e+00 : f32
    %142 = vector.broadcast %cst_46 : f32 to vector<8x32xf32>
    %143 = arith.addf %142, %141 : vector<8x32xf32>
    %144 = arith.divf %142, %143 : vector<8x32xf32>
    %145 = vector.extract_strided_slice %138 {offsets = [0, 32], sizes = [8, 32], strides = [1, 1]} : vector<8x128xf32> to vector<8x32xf32>
    %146 = arith.negf %145 : vector<8x32xf32>
    %147 = math.exp %146 : vector<8x32xf32>
    %cst_47 = arith.constant 1.000000e+00 : f32
    %148 = vector.broadcast %cst_47 : f32 to vector<8x32xf32>
    %149 = arith.addf %148, %147 : vector<8x32xf32>
    %150 = arith.divf %148, %149 : vector<8x32xf32>
    %151 = vector.extract_strided_slice %138 {offsets = [0, 64], sizes = [8, 32], strides = [1, 1]} : vector<8x128xf32> to vector<8x32xf32>
    %152 = math.tanh %151 : vector<8x32xf32>
    %153 = vector.extract_strided_slice %138 {offsets = [0, 96], sizes = [8, 32], strides = [1, 1]} : vector<8x128xf32> to vector<8x32xf32>
    %154 = arith.negf %153 : vector<8x32xf32>
    %155 = math.exp %154 : vector<8x32xf32>
    %cst_48 = arith.constant 1.000000e+00 : f32
    %156 = vector.broadcast %cst_48 : f32 to vector<8x32xf32>
    %157 = arith.addf %156, %155 : vector<8x32xf32>
    %158 = arith.divf %156, %157 : vector<8x32xf32>
    %159 = arith.mulf %150, %126 : vector<8x32xf32>
    %160 = arith.mulf %144, %152 : vector<8x32xf32>
    %161 = arith.addf %159, %160 : vector<8x32xf32>
    %162 = math.tanh %161 : vector<8x32xf32>
    %163 = arith.mulf %158, %162 : vector<8x32xf32>
    %c16 = arith.constant 16 : index
    %c0_49 = arith.constant 0 : index
    %164 = vector.load %arg19[%c16, %c0_49] : memref<32x128xf32, #tpu.memory_space<vmem>>, vector<4x128xf32>
    %c16_50 = arith.constant 16 : index
    %c0_51 = arith.constant 0 : index
    %165 = vector.load %arg20[%c16_50, %c0_51] : memref<32x128xf32, #tpu.memory_space<vmem>>, vector<4x128xf32>
    %166 = tpu.concatenate %164, %165 in 0 : vector<4x128xf32>, vector<4x128xf32> -> vector<8x128xf32>
    %cst_52 = arith.constant dense<0.000000e+00> : vector<8x256xf32>
    %167 = tpu.matmul %163, %18, %cst_52 {dimension_numbers = #tpu.dot_dimension_numbers<[1], [0], [0], [1], [0, 0, 1, 1], [], []>} : vector<8x32xf32>, vector<32x256xf32>, vector<8x256xf32> -> vector<8x256xf32>
    %168 = vector.extract_strided_slice %167 {offsets = [0, 0], sizes = [8, 128], strides = [1, 1]} : vector<8x256xf32> to vector<8x128xf32>
    %169 = vector.extract_strided_slice %167 {offsets = [0, 128], sizes = [8, 128], strides = [1, 1]} : vector<8x256xf32> to vector<8x128xf32>
    %170 = vector.shape_cast %21 : vector<8x1xi1> to vector<8x1xi1>
    %171 = vector.broadcast %170 : vector<8x1xi1> to vector<8x128xi1>
    %172 = arith.select %171, %168, %169 : vector<8x128xi1>, vector<8x128xf32>
    %173 = arith.addf %166, %172 : vector<8x128xf32>
    %174 = vector.extract_strided_slice %173 {offsets = [0, 0], sizes = [8, 32], strides = [1, 1]} : vector<8x128xf32> to vector<8x32xf32>
    %175 = arith.negf %174 : vector<8x32xf32>
    %176 = math.exp %175 : vector<8x32xf32>
    %cst_53 = arith.constant 1.000000e+00 : f32
    %177 = vector.broadcast %cst_53 : f32 to vector<8x32xf32>
    %178 = arith.addf %177, %176 : vector<8x32xf32>
    %179 = arith.divf %177, %178 : vector<8x32xf32>
    %180 = vector.extract_strided_slice %173 {offsets = [0, 32], sizes = [8, 32], strides = [1, 1]} : vector<8x128xf32> to vector<8x32xf32>
    %181 = arith.negf %180 : vector<8x32xf32>
    %182 = math.exp %181 : vector<8x32xf32>
    %cst_54 = arith.constant 1.000000e+00 : f32
    %183 = vector.broadcast %cst_54 : f32 to vector<8x32xf32>
    %184 = arith.addf %183, %182 : vector<8x32xf32>
    %185 = arith.divf %183, %184 : vector<8x32xf32>
    %186 = vector.extract_strided_slice %173 {offsets = [0, 64], sizes = [8, 32], strides = [1, 1]} : vector<8x128xf32> to vector<8x32xf32>
    %187 = math.tanh %186 : vector<8x32xf32>
    %188 = vector.extract_strided_slice %173 {offsets = [0, 96], sizes = [8, 32], strides = [1, 1]} : vector<8x128xf32> to vector<8x32xf32>
    %189 = arith.negf %188 : vector<8x32xf32>
    %190 = math.exp %189 : vector<8x32xf32>
    %cst_55 = arith.constant 1.000000e+00 : f32
    %191 = vector.broadcast %cst_55 : f32 to vector<8x32xf32>
    %192 = arith.addf %191, %190 : vector<8x32xf32>
    %193 = arith.divf %191, %192 : vector<8x32xf32>
    %194 = arith.mulf %185, %161 : vector<8x32xf32>
    %195 = arith.mulf %179, %187 : vector<8x32xf32>
    %196 = arith.addf %194, %195 : vector<8x32xf32>
    %197 = math.tanh %196 : vector<8x32xf32>
    %198 = arith.mulf %193, %197 : vector<8x32xf32>
    %c20 = arith.constant 20 : index
    %c0_56 = arith.constant 0 : index
    %199 = vector.load %arg19[%c20, %c0_56] : memref<32x128xf32, #tpu.memory_space<vmem>>, vector<4x128xf32>
    %c20_57 = arith.constant 20 : index
    %c0_58 = arith.constant 0 : index
    %200 = vector.load %arg20[%c20_57, %c0_58] : memref<32x128xf32, #tpu.memory_space<vmem>>, vector<4x128xf32>
    %201 = tpu.concatenate %199, %200 in 0 : vector<4x128xf32>, vector<4x128xf32> -> vector<8x128xf32>
    %cst_59 = arith.constant dense<0.000000e+00> : vector<8x256xf32>
    %202 = tpu.matmul %198, %18, %cst_59 {dimension_numbers = #tpu.dot_dimension_numbers<[1], [0], [0], [1], [0, 0, 1, 1], [], []>} : vector<8x32xf32>, vector<32x256xf32>, vector<8x256xf32> -> vector<8x256xf32>
    %203 = vector.extract_strided_slice %202 {offsets = [0, 0], sizes = [8, 128], strides = [1, 1]} : vector<8x256xf32> to vector<8x128xf32>
    %204 = vector.extract_strided_slice %202 {offsets = [0, 128], sizes = [8, 128], strides = [1, 1]} : vector<8x256xf32> to vector<8x128xf32>
    %205 = vector.shape_cast %21 : vector<8x1xi1> to vector<8x1xi1>
    %206 = vector.broadcast %205 : vector<8x1xi1> to vector<8x128xi1>
    %207 = arith.select %206, %203, %204 : vector<8x128xi1>, vector<8x128xf32>
    %208 = arith.addf %201, %207 : vector<8x128xf32>
    %209 = vector.extract_strided_slice %208 {offsets = [0, 0], sizes = [8, 32], strides = [1, 1]} : vector<8x128xf32> to vector<8x32xf32>
    %210 = arith.negf %209 : vector<8x32xf32>
    %211 = math.exp %210 : vector<8x32xf32>
    %cst_60 = arith.constant 1.000000e+00 : f32
    %212 = vector.broadcast %cst_60 : f32 to vector<8x32xf32>
    %213 = arith.addf %212, %211 : vector<8x32xf32>
    %214 = arith.divf %212, %213 : vector<8x32xf32>
    %215 = vector.extract_strided_slice %208 {offsets = [0, 32], sizes = [8, 32], strides = [1, 1]} : vector<8x128xf32> to vector<8x32xf32>
    %216 = arith.negf %215 : vector<8x32xf32>
    %217 = math.exp %216 : vector<8x32xf32>
    %cst_61 = arith.constant 1.000000e+00 : f32
    %218 = vector.broadcast %cst_61 : f32 to vector<8x32xf32>
    %219 = arith.addf %218, %217 : vector<8x32xf32>
    %220 = arith.divf %218, %219 : vector<8x32xf32>
    %221 = vector.extract_strided_slice %208 {offsets = [0, 64], sizes = [8, 32], strides = [1, 1]} : vector<8x128xf32> to vector<8x32xf32>
    %222 = math.tanh %221 : vector<8x32xf32>
    %223 = vector.extract_strided_slice %208 {offsets = [0, 96], sizes = [8, 32], strides = [1, 1]} : vector<8x128xf32> to vector<8x32xf32>
    %224 = arith.negf %223 : vector<8x32xf32>
    %225 = math.exp %224 : vector<8x32xf32>
    %cst_62 = arith.constant 1.000000e+00 : f32
    %226 = vector.broadcast %cst_62 : f32 to vector<8x32xf32>
    %227 = arith.addf %226, %225 : vector<8x32xf32>
    %228 = arith.divf %226, %227 : vector<8x32xf32>
    %229 = arith.mulf %220, %196 : vector<8x32xf32>
    %230 = arith.mulf %214, %222 : vector<8x32xf32>
    %231 = arith.addf %229, %230 : vector<8x32xf32>
    %232 = math.tanh %231 : vector<8x32xf32>
    %233 = arith.mulf %228, %232 : vector<8x32xf32>
    %c24 = arith.constant 24 : index
    %c0_63 = arith.constant 0 : index
    %234 = vector.load %arg19[%c24, %c0_63] : memref<32x128xf32, #tpu.memory_space<vmem>>, vector<4x128xf32>
    %c24_64 = arith.constant 24 : index
    %c0_65 = arith.constant 0 : index
    %235 = vector.load %arg20[%c24_64, %c0_65] : memref<32x128xf32, #tpu.memory_space<vmem>>, vector<4x128xf32>
    %236 = tpu.concatenate %234, %235 in 0 : vector<4x128xf32>, vector<4x128xf32> -> vector<8x128xf32>
    %cst_66 = arith.constant dense<0.000000e+00> : vector<8x256xf32>
    %237 = tpu.matmul %233, %18, %cst_66 {dimension_numbers = #tpu.dot_dimension_numbers<[1], [0], [0], [1], [0, 0, 1, 1], [], []>} : vector<8x32xf32>, vector<32x256xf32>, vector<8x256xf32> -> vector<8x256xf32>
    %238 = vector.extract_strided_slice %237 {offsets = [0, 0], sizes = [8, 128], strides = [1, 1]} : vector<8x256xf32> to vector<8x128xf32>
    %239 = vector.extract_strided_slice %237 {offsets = [0, 128], sizes = [8, 128], strides = [1, 1]} : vector<8x256xf32> to vector<8x128xf32>
    %240 = vector.shape_cast %21 : vector<8x1xi1> to vector<8x1xi1>
    %241 = vector.broadcast %240 : vector<8x1xi1> to vector<8x128xi1>
    %242 = arith.select %241, %238, %239 : vector<8x128xi1>, vector<8x128xf32>
    %243 = arith.addf %236, %242 : vector<8x128xf32>
    %244 = vector.extract_strided_slice %243 {offsets = [0, 0], sizes = [8, 32], strides = [1, 1]} : vector<8x128xf32> to vector<8x32xf32>
    %245 = arith.negf %244 : vector<8x32xf32>
    %246 = math.exp %245 : vector<8x32xf32>
    %cst_67 = arith.constant 1.000000e+00 : f32
    %247 = vector.broadcast %cst_67 : f32 to vector<8x32xf32>
    %248 = arith.addf %247, %246 : vector<8x32xf32>
    %249 = arith.divf %247, %248 : vector<8x32xf32>
    %250 = vector.extract_strided_slice %243 {offsets = [0, 32], sizes = [8, 32], strides = [1, 1]} : vector<8x128xf32> to vector<8x32xf32>
    %251 = arith.negf %250 : vector<8x32xf32>
    %252 = math.exp %251 : vector<8x32xf32>
    %cst_68 = arith.constant 1.000000e+00 : f32
    %253 = vector.broadcast %cst_68 : f32 to vector<8x32xf32>
    %254 = arith.addf %253, %252 : vector<8x32xf32>
    %255 = arith.divf %253, %254 : vector<8x32xf32>
    %256 = vector.extract_strided_slice %243 {offsets = [0, 64], sizes = [8, 32], strides = [1, 1]} : vector<8x128xf32> to vector<8x32xf32>
    %257 = math.tanh %256 : vector<8x32xf32>
    %258 = vector.extract_strided_slice %243 {offsets = [0, 96], sizes = [8, 32], strides = [1, 1]} : vector<8x128xf32> to vector<8x32xf32>
    %259 = arith.negf %258 : vector<8x32xf32>
    %260 = math.exp %259 : vector<8x32xf32>
    %cst_69 = arith.constant 1.000000e+00 : f32
    %261 = vector.broadcast %cst_69 : f32 to vector<8x32xf32>
    %262 = arith.addf %261, %260 : vector<8x32xf32>
    %263 = arith.divf %261, %262 : vector<8x32xf32>
    %264 = arith.mulf %255, %231 : vector<8x32xf32>
    %265 = arith.mulf %249, %257 : vector<8x32xf32>
    %266 = arith.addf %264, %265 : vector<8x32xf32>
    %267 = math.tanh %266 : vector<8x32xf32>
    %268 = arith.mulf %263, %267 : vector<8x32xf32>
    %c28 = arith.constant 28 : index
    %c0_70 = arith.constant 0 : index
    %269 = vector.load %arg19[%c28, %c0_70] : memref<32x128xf32, #tpu.memory_space<vmem>>, vector<4x128xf32>
    %c28_71 = arith.constant 28 : index
    %c0_72 = arith.constant 0 : index
    %270 = vector.load %arg20[%c28_71, %c0_72] : memref<32x128xf32, #tpu.memory_space<vmem>>, vector<4x128xf32>
    %271 = tpu.concatenate %269, %270 in 0 : vector<4x128xf32>, vector<4x128xf32> -> vector<8x128xf32>
    %cst_73 = arith.constant dense<0.000000e+00> : vector<8x256xf32>
    %272 = tpu.matmul %268, %18, %cst_73 {dimension_numbers = #tpu.dot_dimension_numbers<[1], [0], [0], [1], [0, 0, 1, 1], [], []>} : vector<8x32xf32>, vector<32x256xf32>, vector<8x256xf32> -> vector<8x256xf32>
    %273 = vector.extract_strided_slice %272 {offsets = [0, 0], sizes = [8, 128], strides = [1, 1]} : vector<8x256xf32> to vector<8x128xf32>
    %274 = vector.extract_strided_slice %272 {offsets = [0, 128], sizes = [8, 128], strides = [1, 1]} : vector<8x256xf32> to vector<8x128xf32>
    %275 = vector.shape_cast %21 : vector<8x1xi1> to vector<8x1xi1>
    %276 = vector.broadcast %275 : vector<8x1xi1> to vector<8x128xi1>
    %277 = arith.select %276, %273, %274 : vector<8x128xi1>, vector<8x128xf32>
    %278 = arith.addf %271, %277 : vector<8x128xf32>
    %279 = vector.extract_strided_slice %278 {offsets = [0, 0], sizes = [8, 32], strides = [1, 1]} : vector<8x128xf32> to vector<8x32xf32>
    %280 = arith.negf %279 : vector<8x32xf32>
    %281 = math.exp %280 : vector<8x32xf32>
    %cst_74 = arith.constant 1.000000e+00 : f32
    %282 = vector.broadcast %cst_74 : f32 to vector<8x32xf32>
    %283 = arith.addf %282, %281 : vector<8x32xf32>
    %284 = arith.divf %282, %283 : vector<8x32xf32>
    %285 = vector.extract_strided_slice %278 {offsets = [0, 32], sizes = [8, 32], strides = [1, 1]} : vector<8x128xf32> to vector<8x32xf32>
    %286 = arith.negf %285 : vector<8x32xf32>
    %287 = math.exp %286 : vector<8x32xf32>
    %cst_75 = arith.constant 1.000000e+00 : f32
    %288 = vector.broadcast %cst_75 : f32 to vector<8x32xf32>
    %289 = arith.addf %288, %287 : vector<8x32xf32>
    %290 = arith.divf %288, %289 : vector<8x32xf32>
    %291 = vector.extract_strided_slice %278 {offsets = [0, 64], sizes = [8, 32], strides = [1, 1]} : vector<8x128xf32> to vector<8x32xf32>
    %292 = math.tanh %291 : vector<8x32xf32>
    %293 = vector.extract_strided_slice %278 {offsets = [0, 96], sizes = [8, 32], strides = [1, 1]} : vector<8x128xf32> to vector<8x32xf32>
    %294 = arith.negf %293 : vector<8x32xf32>
    %295 = math.exp %294 : vector<8x32xf32>
    %cst_76 = arith.constant 1.000000e+00 : f32
    %296 = vector.broadcast %cst_76 : f32 to vector<8x32xf32>
    %297 = arith.addf %296, %295 : vector<8x32xf32>
    %298 = arith.divf %296, %297 : vector<8x32xf32>
    %299 = arith.mulf %290, %266 : vector<8x32xf32>
    %300 = arith.mulf %284, %292 : vector<8x32xf32>
    %301 = arith.addf %299, %300 : vector<8x32xf32>
    %302 = math.tanh %301 : vector<8x32xf32>
    %303 = arith.mulf %298, %302 : vector<8x32xf32>
    %304 = vector.extract_strided_slice %303 {offsets = [0, 0], sizes = [4, 32], strides = [1, 1]} : vector<8x32xf32> to vector<4x32xf32>
    %305 = vector.extract_strided_slice %303 {offsets = [4, 0], sizes = [4, 32], strides = [1, 1]} : vector<8x32xf32> to vector<4x32xf32>
    %306 = vector.extract_strided_slice %301 {offsets = [0, 0], sizes = [4, 32], strides = [1, 1]} : vector<8x32xf32> to vector<4x32xf32>
    %307 = vector.extract_strided_slice %301 {offsets = [4, 0], sizes = [4, 32], strides = [1, 1]} : vector<8x32xf32> to vector<4x32xf32>
    %308 = tpu.concatenate %304, %305, %306, %307 in 1 : vector<4x32xf32>, vector<4x32xf32>, vector<4x32xf32>, vector<4x32xf32> -> vector<4x128xf32>
    %c0_77 = arith.constant 0 : index
    %c0_78 = arith.constant 0 : index
    %309 = vector.load %arg8[%c0_77, %c0_78] : memref<128x32xf32, #tpu.memory_space<vmem>>, vector<128x32xf32>
    %cst_79 = arith.constant dense<0.000000e+00> : vector<4x32xf32>
    %310 = tpu.matmul %308, %309, %cst_79 {dimension_numbers = #tpu.dot_dimension_numbers<[1], [0], [0], [1], [0, 0, 1, 1], [], []>} : vector<4x128xf32>, vector<128x32xf32>, vector<4x32xf32> -> vector<4x32xf32>
    %c0_80 = arith.constant 0 : index
    %c0_81 = arith.constant 0 : index
    %311 = vector.load %arg9[%c0_80, %c0_81] : memref<1x32xf32, #tpu.memory_space<vmem>>, vector<1x32xf32>
    %312 = vector.broadcast %311 : vector<1x32xf32> to vector<4x32xf32>
    %313 = arith.addf %310, %312 : vector<4x32xf32>
    %c0_82 = arith.constant 0 : index
    %c0_83 = arith.constant 0 : index
    %314 = vector.load %arg10[%c0_82, %c0_83] : memref<32x32xf32, #tpu.memory_space<vmem>>, vector<32x32xf32>
    %cst_84 = arith.constant dense<0.000000e+00> : vector<4x32xf32>
    %315 = tpu.matmul %313, %314, %cst_84 {dimension_numbers = #tpu.dot_dimension_numbers<[1], [0], [0], [1], [0, 0, 1, 1], [], []>} : vector<4x32xf32>, vector<32x32xf32>, vector<4x32xf32> -> vector<4x32xf32>
    %c0_85 = arith.constant 0 : index
    %c0_86 = arith.constant 0 : index
    %316 = vector.load %arg11[%c0_85, %c0_86] : memref<1x32xf32, #tpu.memory_space<vmem>>, vector<1x32xf32>
    %317 = vector.broadcast %316 : vector<1x32xf32> to vector<4x32xf32>
    %318 = arith.addf %315, %317 : vector<4x32xf32>
    %319 = vector.extract_strided_slice %318 {offsets = [0, 0], sizes = [4, 16], strides = [1, 1]} : vector<4x32xf32> to vector<4x16xf32>
    %320 = vector.extract_strided_slice %318 {offsets = [0, 16], sizes = [4, 16], strides = [1, 1]} : vector<4x32xf32> to vector<4x16xf32>
    %c0_87 = arith.constant 0 : index
    %c0_88 = arith.constant 0 : index
    %321 = vector.load %arg14[%c0_87, %c0_88] : memref<4x16xf32, #tpu.memory_space<vmem>>, vector<4x16xf32>
    tpu.vector_store %arg14[%c0_87, %c0_88], %319 {strides = array<i32>} : memref<4x16xf32, #tpu.memory_space<vmem>>, vector<4x16xf32>,
    %c0_89 = arith.constant 0 : index
    %c0_90 = arith.constant 0 : index
    %322 = vector.load %arg15[%c0_89, %c0_90] : memref<4x16xf32, #tpu.memory_space<vmem>>, vector<4x16xf32>
    tpu.vector_store %arg15[%c0_89, %c0_90], %320 {strides = array<i32>} : memref<4x16xf32, #tpu.memory_space<vmem>>, vector<4x16xf32>,
    %cst_91 = arith.constant 1.000000e+00 : f32
    %323 = vector.broadcast %cst_91 : f32 to vector<4x16xf32>
    %324 = arith.addf %323, %320 : vector<4x16xf32>
    %325 = arith.mulf %319, %319 : vector<4x16xf32>
    %326 = arith.subf %324, %325 : vector<4x16xf32>
    %327 = math.exp %320 : vector<4x16xf32>
    %328 = arith.subf %326, %327 : vector<4x16xf32>
    %cst_92 = arith.constant dense<0.000000e+00> : vector<4xf32>
    %329 = vector.multi_reduction <add>, %328, %cst_92 [1] : vector<4x16xf32> to vector<4xf32>
    %330 = vector.shape_cast %329 : vector<4xf32> to vector<4x1xf32>
    %cst_93 = arith.constant -5.000000e-01 : f32
    %331 = vector.broadcast %cst_93 : f32 to vector<4x1xf32>
    %332 = arith.mulf %331, %330 : vector<4x1xf32>
    %c0_94 = arith.constant 0 : index
    %c0_95 = arith.constant 0 : index
    %333 = vector.load %arg16[%c0_94, %c0_95] : memref<4x1xf32, #tpu.memory_space<vmem>>, vector<4x1xf32>
    tpu.vector_store %arg16[%c0_94, %c0_95], %332 {strides = array<i32>} : memref<4x1xf32, #tpu.memory_space<vmem>>, vector<4x1xf32>,
    %cst_96 = arith.constant 5.000000e-01 : f32
    %334 = vector.broadcast %cst_96 : f32 to vector<4x16xf32>
    %335 = arith.mulf %334, %320 : vector<4x16xf32>
    %336 = math.exp %335 : vector<4x16xf32>
    %337 = vector.shape_cast %319 : vector<4x16xf32> to vector<1x4x16xf32>
    %c0_97 = arith.constant 0 : index
    %c0_98 = arith.constant 0 : index
    %c0_99 = arith.constant 0 : index
    %338 = vector.load %arg7[%c0_97, %c0_98, %c0_99] : memref<3x4x16xf32, #tpu.memory_space<vmem>>, vector<3x4x16xf32>
    %339 = vector.shape_cast %336 : vector<4x16xf32> to vector<1x4x16xf32>
    %340 = vector.broadcast %339 : vector<1x4x16xf32> to vector<3x4x16xf32>
    %341 = arith.mulf %338, %340 : vector<3x4x16xf32>
    %342 = vector.broadcast %337 : vector<1x4x16xf32> to vector<3x4x16xf32>
    %343 = arith.addf %342, %341 : vector<3x4x16xf32>
    %c0_100 = arith.constant 0 : index
    %c0_101 = arith.constant 0 : index
    %c0_102 = arith.constant 0 : index
    %344 = vector.load %arg17[%c0_100, %c0_101, %c0_102] : memref<3x4x16xf32, #tpu.memory_space<vmem>>, vector<3x4x16xf32>
    tpu.vector_store %arg17[%c0_100, %c0_101, %c0_102], %343 {strides = array<i32>} : memref<3x4x16xf32, #tpu.memory_space<vmem>>, vector<3x4x16xf32>,
    %cst_103 = arith.constant dense<0.000000e+00> : vector<4x16xf32>
    %345 = vector.multi_reduction <add>, %343, %cst_103 [0] : vector<3x4x16xf32> to vector<4x16xf32>
    %cst_104 = arith.constant 3.000000e+00 : f32
    %346 = vector.broadcast %cst_104 : f32 to vector<4x16xf32>
    %347 = arith.divf %345, %346 : vector<4x16xf32>
    %c0_105 = arith.constant 0 : index
    %c0_106 = arith.constant 0 : index
    %348 = vector.load %arg12[%c0_105, %c0_106] : memref<16x64xf32, #tpu.memory_space<vmem>>, vector<16x64xf32>
    %cst_107 = arith.constant dense<0.000000e+00> : vector<4x64xf32>
    %349 = tpu.matmul %347, %348, %cst_107 {dimension_numbers = #tpu.dot_dimension_numbers<[1], [0], [0], [1], [0, 0, 1, 1], [], []>} : vector<4x16xf32>, vector<16x64xf32>, vector<4x64xf32> -> vector<4x64xf32>
    %c0_108 = arith.constant 0 : index
    %c0_109 = arith.constant 0 : index
    %350 = vector.load %arg13[%c0_108, %c0_109] : memref<1x64xf32, #tpu.memory_space<vmem>>, vector<1x64xf32>
    %351 = vector.broadcast %350 : vector<1x64xf32> to vector<4x64xf32>
    %352 = arith.addf %349, %351 : vector<4x64xf32>
    %c0_110 = arith.constant 0 : index
    %c0_111 = arith.constant 0 : index
    %353 = vector.load %arg18[%c0_110, %c0_111] : memref<4x64xf32, #tpu.memory_space<vmem>>, vector<4x64xf32>
    tpu.vector_store %arg18[%c0_110, %c0_111], %352 {strides = array<i32>} : memref<4x64xf32, #tpu.memory_space<vmem>>, vector<4x64xf32>,
    return
  }
}

module attributes {stable_mosaic.version = 11 : i64} {
  func.func @ce_logits_kernel(%arg0: i32, %arg1: memref<32x32xf32, #tpu.memory_space<vmem>>, %arg2: memref<32x256xbf16, #tpu.memory_space<vmem>>, %arg3: memref<1x256xf32, #tpu.memory_space<vmem>>, %arg4: memref<32x1xi32, #tpu.memory_space<vmem>>, %arg5: memref<32x256xf32, #tpu.memory_space<vmem>>, %arg6: memref<32x1xf32, #tpu.memory_space<vmem>>) attributes {dimension_semantics = [#tpu.dimension_semantics<parallel>], iteration_bounds = array<i64: 1>, scalar_prefetch = 0 : i64, scratch_operands = 0 : i64, tpu.core_type = #tpu.core_type<tc>, window_params = [{transform_indices = @transform_0, window_bounds = array<i64: 32, 32>}, {pipeline_mode = #tpu.pipeline_mode<synchronous>, transform_indices = @transform_1, window_bounds = array<i64: 32, 256>}, {pipeline_mode = #tpu.pipeline_mode<synchronous>, transform_indices = @transform_2, window_bounds = array<i64: 1, 256>}, {transform_indices = @transform_3, window_bounds = array<i64: 32, 1>}, {transform_indices = @transform_4, window_bounds = array<i64: 32, 256>}, {transform_indices = @transform_5, window_bounds = array<i64: 32, 1>}]} {
    %c0 = arith.constant 0 : index
    %c0_0 = arith.constant 0 : index
    %0 = vector.load %arg1[%c0, %c0_0] : memref<32x32xf32, #tpu.memory_space<vmem>>, vector<32x32xf32>
    %1 = arith.truncf %0 : vector<32x32xf32> to vector<32x32xbf16>
    %c0_1 = arith.constant 0 : index
    %c0_2 = arith.constant 0 : index
    %2 = vector.load %arg2[%c0_1, %c0_2] : memref<32x256xbf16, #tpu.memory_space<vmem>>, vector<32x256xbf16>
    %cst = arith.constant dense<0.000000e+00> : vector<32x256xf32>
    %3 = tpu.matmul %1, %2, %cst {dimension_numbers = #tpu.dot_dimension_numbers<[1], [0], [0], [1], [0, 0, 1, 1], [], []>} : vector<32x32xbf16>, vector<32x256xbf16>, vector<32x256xf32> -> vector<32x256xf32>
    %c0_3 = arith.constant 0 : index
    %c0_4 = arith.constant 0 : index
    %4 = vector.load %arg3[%c0_3, %c0_4] : memref<1x256xf32, #tpu.memory_space<vmem>>, vector<1x256xf32>
    %5 = vector.broadcast %4 : vector<1x256xf32> to vector<32x256xf32>
    %6 = arith.addf %3, %5 : vector<32x256xf32>
    %c0_5 = arith.constant 0 : index
    %c0_6 = arith.constant 0 : index
    %7 = vector.load %arg5[%c0_5, %c0_6] : memref<32x256xf32, #tpu.memory_space<vmem>>, vector<32x256xf32>
    tpu.vector_store %arg5[%c0_5, %c0_6], %6 {strides = array<i32>} : memref<32x256xf32, #tpu.memory_space<vmem>>, vector<32x256xf32>,
    %cst_7 = arith.constant dense<0xFF800000> : vector<32xf32>
    %8 = vector.multi_reduction <maximumf>, %6, %cst_7 [1] : vector<32x256xf32> to vector<32xf32>
    %9 = vector.shape_cast %8 : vector<32xf32> to vector<32x1xf32>
    %10 = vector.broadcast %9 : vector<32x1xf32> to vector<32x256xf32>
    %11 = arith.subf %6, %10 : vector<32x256xf32>
    %12 = math.exp %11 : vector<32x256xf32>
    %cst_8 = arith.constant dense<0.000000e+00> : vector<32xf32>
    %13 = vector.multi_reduction <add>, %12, %cst_8 [1] : vector<32x256xf32> to vector<32xf32>
    %14 = vector.shape_cast %13 : vector<32xf32> to vector<32x1xf32>
    %15 = math.log %14 : vector<32x1xf32>
    %16 = arith.addf %9, %15 : vector<32x1xf32>
    %c0_9 = arith.constant 0 : index
    %c0_10 = arith.constant 0 : index
    %17 = vector.load %arg4[%c0_9, %c0_10] : memref<32x1xi32, #tpu.memory_space<vmem>>, vector<32x1xi32>
    %18 = tpu.iota {dimensions = array<i32: 1>} : vector<32x256xi32>
    %19 = vector.broadcast %17 : vector<32x1xi32> to vector<32x256xi32>
    %20 = arith.cmpi eq, %18, %19 : vector<32x256xi32>
    %cst_11 = arith.constant 0.000000e+00 : f32
    %21 = vector.broadcast %cst_11 : f32 to vector<32x256xf32>
    %22 = arith.select %20, %6, %21 : vector<32x256xi1>, vector<32x256xf32>
    %cst_12 = arith.constant dense<0.000000e+00> : vector<32xf32>
    %23 = vector.multi_reduction <add>, %22, %cst_12 [1] : vector<32x256xf32> to vector<32xf32>
    %24 = vector.shape_cast %23 : vector<32xf32> to vector<32x1xf32>
    %25 = arith.subf %16, %24 : vector<32x1xf32>
    %c0_i32 = arith.constant 0 : i32
    %26 = vector.broadcast %c0_i32 : i32 to vector<32x1xi32>
    %27 = arith.cmpi ne, %17, %26 : vector<32x1xi32>
    %28 = arith.extui %27 : vector<32x1xi1> to vector<32x1xi32>
    %29 = arith.sitofp %28 : vector<32x1xi32> to vector<32x1xf32>
    %30 = arith.mulf %25, %29 : vector<32x1xf32>
    %c0_13 = arith.constant 0 : index
    %c0_14 = arith.constant 0 : index
    %31 = vector.load %arg6[%c0_13, %c0_14] : memref<32x1xf32, #tpu.memory_space<vmem>>, vector<32x1xf32>
    tpu.vector_store %arg6[%c0_13, %c0_14], %30 {strides = array<i32>} : memref<32x1xf32, #tpu.memory_space<vmem>>, vector<32x1xf32>,
    return
  }
  func.func @transform_0(%arg0: i32) -> (i32, i32) {
    %c0_i32 = arith.constant 0 : i32
    %c0_i32_0 = arith.constant 0 : i32
    return %arg0, %c0_i32 : i32, i32
  }
  func.func @transform_1(%arg0: i32) -> (i32, i32) {
    %c0_i32 = arith.constant 0 : i32
    %c0_i32_0 = arith.constant 0 : i32
    %c0_i32_1 = arith.constant 0 : i32
    return %c0_i32, %c0_i32_0 : i32, i32
  }
  func.func @transform_2(%arg0: i32) -> (i32, i32) {
    %c0_i32 = arith.constant 0 : i32
    %c0_i32_0 = arith.constant 0 : i32
    %c0_i32_1 = arith.constant 0 : i32
    return %c0_i32, %c0_i32_0 : i32, i32
  }
  func.func @transform_3(%arg0: i32) -> (i32, i32) {
    %c0_i32 = arith.constant 0 : i32
    %c0_i32_0 = arith.constant 0 : i32
    return %arg0, %c0_i32 : i32, i32
  }
  func.func @transform_4(%arg0: i32) -> (i32, i32) {
    %c0_i32 = arith.constant 0 : i32
    %c0_i32_0 = arith.constant 0 : i32
    return %arg0, %c0_i32 : i32, i32
  }
  func.func @transform_5(%arg0: i32) -> (i32, i32) {
    %c0_i32 = arith.constant 0 : i32
    %c0_i32_0 = arith.constant 0 : i32
    return %arg0, %c0_i32 : i32, i32
  }
}

module attributes {stable_mosaic.version = 11 : i64} {
  func.func @dec_lstm_kernel(%arg0: memref<32x32xf32, #tpu.memory_space<vmem>>, %arg1: memref<32x128xf32, #tpu.memory_space<vmem>>, %arg2: memref<1x128xf32, #tpu.memory_space<vmem>>, %arg3: memref<32x128xf32, #tpu.memory_space<vmem>>, %arg4: memref<4x64xf32, #tpu.memory_space<vmem>>, %arg5: memref<32x32xf32, #tpu.memory_space<vmem>>, %arg6: memref<32x128xf32, #tpu.memory_space<vmem>>) attributes {dimension_semantics = [], scalar_prefetch = 0 : i64, scratch_operands = 1 : i64, tpu.core_type = #tpu.core_type<tc>} {
    %c0 = arith.constant 0 : index
    %c0_0 = arith.constant 0 : index
    %0 = vector.load %arg0[%c0, %c0_0] : memref<32x32xf32, #tpu.memory_space<vmem>>, vector<32x32xf32>
    %1 = arith.truncf %0 : vector<32x32xf32> to vector<32x32xbf16>
    %c0_1 = arith.constant 0 : index
    %c0_2 = arith.constant 0 : index
    %2 = vector.load %arg1[%c0_1, %c0_2] : memref<32x128xf32, #tpu.memory_space<vmem>>, vector<32x128xf32>
    %3 = arith.truncf %2 : vector<32x128xf32> to vector<32x128xbf16>
    %cst = arith.constant dense<0.000000e+00> : vector<32x128xf32>
    %4 = tpu.matmul %1, %3, %cst {dimension_numbers = #tpu.dot_dimension_numbers<[1], [0], [0], [1], [0, 0, 1, 1], [], []>} : vector<32x32xbf16>, vector<32x128xbf16>, vector<32x128xf32> -> vector<32x128xf32>
    %c0_3 = arith.constant 0 : index
    %c0_4 = arith.constant 0 : index
    %5 = vector.load %arg2[%c0_3, %c0_4] : memref<1x128xf32, #tpu.memory_space<vmem>>, vector<1x128xf32>
    %6 = vector.broadcast %5 : vector<1x128xf32> to vector<32x128xf32>
    %7 = arith.addf %4, %6 : vector<32x128xf32>
    %c0_5 = arith.constant 0 : index
    %c0_6 = arith.constant 0 : index
    %8 = vector.load %arg6[%c0_5, %c0_6] : memref<32x128xf32, #tpu.memory_space<vmem>>, vector<32x128xf32>
    tpu.vector_store %arg6[%c0_5, %c0_6], %7 {strides = array<i32>} : memref<32x128xf32, #tpu.memory_space<vmem>>, vector<32x128xf32>,
    %c0_7 = arith.constant 0 : index
    %c0_8 = arith.constant 0 : index
    %9 = vector.load %arg3[%c0_7, %c0_8] : memref<32x128xf32, #tpu.memory_space<vmem>>, vector<32x128xf32>
    %c0_9 = arith.constant 0 : index
    %c0_10 = arith.constant 0 : index
    %10 = vector.load %arg4[%c0_9, %c0_10] : memref<4x64xf32, #tpu.memory_space<vmem>>, vector<4x32xf32>
    %c0_11 = arith.constant 0 : index
    %c32 = arith.constant 32 : index
    %11 = vector.load %arg4[%c0_11, %c32] : memref<4x64xf32, #tpu.memory_space<vmem>>, vector<4x32xf32>
    %c0_12 = arith.constant 0 : index
    %c0_13 = arith.constant 0 : index
    %12 = vector.load %arg6[%c0_12, %c0_13] : memref<32x128xf32, #tpu.memory_space<vmem>>, vector<4x128xf32>
    %cst_14 = arith.constant dense<0.000000e+00> : vector<4x128xf32>
    %13 = tpu.matmul %10, %9, %cst_14 {dimension_numbers = #tpu.dot_dimension_numbers<[1], [0], [0], [1], [0, 0, 1, 1], [], []>} : vector<4x32xf32>, vector<32x128xf32>, vector<4x128xf32> -> vector<4x128xf32>
    %14 = arith.addf %12, %13 : vector<4x128xf32>
    %15 = vector.extract_strided_slice %14 {offsets = [0, 0], sizes = [4, 32], strides = [1, 1]} : vector<4x128xf32> to vector<4x32xf32>
    %16 = arith.negf %15 : vector<4x32xf32>
    %17 = math.exp %16 : vector<4x32xf32>
    %cst_15 = arith.constant 1.000000e+00 : f32
    %18 = vector.broadcast %cst_15 : f32 to vector<4x32xf32>
    %19 = arith.addf %18, %17 : vector<4x32xf32>
    %20 = arith.divf %18, %19 : vector<4x32xf32>
    %21 = vector.extract_strided_slice %14 {offsets = [0, 32], sizes = [4, 32], strides = [1, 1]} : vector<4x128xf32> to vector<4x32xf32>
    %22 = arith.negf %21 : vector<4x32xf32>
    %23 = math.exp %22 : vector<4x32xf32>
    %cst_16 = arith.constant 1.000000e+00 : f32
    %24 = vector.broadcast %cst_16 : f32 to vector<4x32xf32>
    %25 = arith.addf %24, %23 : vector<4x32xf32>
    %26 = arith.divf %24, %25 : vector<4x32xf32>
    %27 = vector.extract_strided_slice %14 {offsets = [0, 64], sizes = [4, 32], strides = [1, 1]} : vector<4x128xf32> to vector<4x32xf32>
    %28 = math.tanh %27 : vector<4x32xf32>
    %29 = vector.extract_strided_slice %14 {offsets = [0, 96], sizes = [4, 32], strides = [1, 1]} : vector<4x128xf32> to vector<4x32xf32>
    %30 = arith.negf %29 : vector<4x32xf32>
    %31 = math.exp %30 : vector<4x32xf32>
    %cst_17 = arith.constant 1.000000e+00 : f32
    %32 = vector.broadcast %cst_17 : f32 to vector<4x32xf32>
    %33 = arith.addf %32, %31 : vector<4x32xf32>
    %34 = arith.divf %32, %33 : vector<4x32xf32>
    %35 = arith.mulf %26, %11 : vector<4x32xf32>
    %36 = arith.mulf %20, %28 : vector<4x32xf32>
    %37 = arith.addf %35, %36 : vector<4x32xf32>
    %38 = math.tanh %37 : vector<4x32xf32>
    %39 = arith.mulf %34, %38 : vector<4x32xf32>
    %c4 = arith.constant 4 : index
    %c0_18 = arith.constant 0 : index
    %40 = vector.load %arg6[%c4, %c0_18] : memref<32x128xf32, #tpu.memory_space<vmem>>, vector<4x128xf32>
    %cst_19 = arith.constant dense<0.000000e+00> : vector<4x128xf32>
    %41 = tpu.matmul %39, %9, %cst_19 {dimension_numbers = #tpu.dot_dimension_numbers<[1], [0], [0], [1], [0, 0, 1, 1], [], []>} : vector<4x32xf32>, vector<32x128xf32>, vector<4x128xf32> -> vector<4x128xf32>
    %42 = arith.addf %40, %41 : vector<4x128xf32>
    %43 = vector.extract_strided_slice %42 {offsets = [0, 0], sizes = [4, 32], strides = [1, 1]} : vector<4x128xf32> to vector<4x32xf32>
    %44 = arith.negf %43 : vector<4x32xf32>
    %45 = math.exp %44 : vector<4x32xf32>
    %cst_20 = arith.constant 1.000000e+00 : f32
    %46 = vector.broadcast %cst_20 : f32 to vector<4x32xf32>
    %47 = arith.addf %46, %45 : vector<4x32xf32>
    %48 = arith.divf %46, %47 : vector<4x32xf32>
    %49 = vector.extract_strided_slice %42 {offsets = [0, 32], sizes = [4, 32], strides = [1, 1]} : vector<4x128xf32> to vector<4x32xf32>
    %50 = arith.negf %49 : vector<4x32xf32>
    %51 = math.exp %50 : vector<4x32xf32>
    %cst_21 = arith.constant 1.000000e+00 : f32
    %52 = vector.broadcast %cst_21 : f32 to vector<4x32xf32>
    %53 = arith.addf %52, %51 : vector<4x32xf32>
    %54 = arith.divf %52, %53 : vector<4x32xf32>
    %55 = vector.extract_strided_slice %42 {offsets = [0, 64], sizes = [4, 32], strides = [1, 1]} : vector<4x128xf32> to vector<4x32xf32>
    %56 = math.tanh %55 : vector<4x32xf32>
    %57 = vector.extract_strided_slice %42 {offsets = [0, 96], sizes = [4, 32], strides = [1, 1]} : vector<4x128xf32> to vector<4x32xf32>
    %58 = arith.negf %57 : vector<4x32xf32>
    %59 = math.exp %58 : vector<4x32xf32>
    %cst_22 = arith.constant 1.000000e+00 : f32
    %60 = vector.broadcast %cst_22 : f32 to vector<4x32xf32>
    %61 = arith.addf %60, %59 : vector<4x32xf32>
    %62 = arith.divf %60, %61 : vector<4x32xf32>
    %63 = arith.mulf %54, %37 : vector<4x32xf32>
    %64 = arith.mulf %48, %56 : vector<4x32xf32>
    %65 = arith.addf %63, %64 : vector<4x32xf32>
    %66 = math.tanh %65 : vector<4x32xf32>
    %67 = arith.mulf %62, %66 : vector<4x32xf32>
    %c8 = arith.constant 8 : index
    %c0_23 = arith.constant 0 : index
    %68 = vector.load %arg6[%c8, %c0_23] : memref<32x128xf32, #tpu.memory_space<vmem>>, vector<4x128xf32>
    %cst_24 = arith.constant dense<0.000000e+00> : vector<4x128xf32>
    %69 = tpu.matmul %67, %9, %cst_24 {dimension_numbers = #tpu.dot_dimension_numbers<[1], [0], [0], [1], [0, 0, 1, 1], [], []>} : vector<4x32xf32>, vector<32x128xf32>, vector<4x128xf32> -> vector<4x128xf32>
    %70 = arith.addf %68, %69 : vector<4x128xf32>
    %71 = vector.extract_strided_slice %70 {offsets = [0, 0], sizes = [4, 32], strides = [1, 1]} : vector<4x128xf32> to vector<4x32xf32>
    %72 = arith.negf %71 : vector<4x32xf32>
    %73 = math.exp %72 : vector<4x32xf32>
    %cst_25 = arith.constant 1.000000e+00 : f32
    %74 = vector.broadcast %cst_25 : f32 to vector<4x32xf32>
    %75 = arith.addf %74, %73 : vector<4x32xf32>
    %76 = arith.divf %74, %75 : vector<4x32xf32>
    %77 = vector.extract_strided_slice %70 {offsets = [0, 32], sizes = [4, 32], strides = [1, 1]} : vector<4x128xf32> to vector<4x32xf32>
    %78 = arith.negf %77 : vector<4x32xf32>
    %79 = math.exp %78 : vector<4x32xf32>
    %cst_26 = arith.constant 1.000000e+00 : f32
    %80 = vector.broadcast %cst_26 : f32 to vector<4x32xf32>
    %81 = arith.addf %80, %79 : vector<4x32xf32>
    %82 = arith.divf %80, %81 : vector<4x32xf32>
    %83 = vector.extract_strided_slice %70 {offsets = [0, 64], sizes = [4, 32], strides = [1, 1]} : vector<4x128xf32> to vector<4x32xf32>
    %84 = math.tanh %83 : vector<4x32xf32>
    %85 = vector.extract_strided_slice %70 {offsets = [0, 96], sizes = [4, 32], strides = [1, 1]} : vector<4x128xf32> to vector<4x32xf32>
    %86 = arith.negf %85 : vector<4x32xf32>
    %87 = math.exp %86 : vector<4x32xf32>
    %cst_27 = arith.constant 1.000000e+00 : f32
    %88 = vector.broadcast %cst_27 : f32 to vector<4x32xf32>
    %89 = arith.addf %88, %87 : vector<4x32xf32>
    %90 = arith.divf %88, %89 : vector<4x32xf32>
    %91 = arith.mulf %82, %65 : vector<4x32xf32>
    %92 = arith.mulf %76, %84 : vector<4x32xf32>
    %93 = arith.addf %91, %92 : vector<4x32xf32>
    %94 = math.tanh %93 : vector<4x32xf32>
    %95 = arith.mulf %90, %94 : vector<4x32xf32>
    %c12 = arith.constant 12 : index
    %c0_28 = arith.constant 0 : index
    %96 = vector.load %arg6[%c12, %c0_28] : memref<32x128xf32, #tpu.memory_space<vmem>>, vector<4x128xf32>
    %cst_29 = arith.constant dense<0.000000e+00> : vector<4x128xf32>
    %97 = tpu.matmul %95, %9, %cst_29 {dimension_numbers = #tpu.dot_dimension_numbers<[1], [0], [0], [1], [0, 0, 1, 1], [], []>} : vector<4x32xf32>, vector<32x128xf32>, vector<4x128xf32> -> vector<4x128xf32>
    %98 = arith.addf %96, %97 : vector<4x128xf32>
    %99 = vector.extract_strided_slice %98 {offsets = [0, 0], sizes = [4, 32], strides = [1, 1]} : vector<4x128xf32> to vector<4x32xf32>
    %100 = arith.negf %99 : vector<4x32xf32>
    %101 = math.exp %100 : vector<4x32xf32>
    %cst_30 = arith.constant 1.000000e+00 : f32
    %102 = vector.broadcast %cst_30 : f32 to vector<4x32xf32>
    %103 = arith.addf %102, %101 : vector<4x32xf32>
    %104 = arith.divf %102, %103 : vector<4x32xf32>
    %105 = vector.extract_strided_slice %98 {offsets = [0, 32], sizes = [4, 32], strides = [1, 1]} : vector<4x128xf32> to vector<4x32xf32>
    %106 = arith.negf %105 : vector<4x32xf32>
    %107 = math.exp %106 : vector<4x32xf32>
    %cst_31 = arith.constant 1.000000e+00 : f32
    %108 = vector.broadcast %cst_31 : f32 to vector<4x32xf32>
    %109 = arith.addf %108, %107 : vector<4x32xf32>
    %110 = arith.divf %108, %109 : vector<4x32xf32>
    %111 = vector.extract_strided_slice %98 {offsets = [0, 64], sizes = [4, 32], strides = [1, 1]} : vector<4x128xf32> to vector<4x32xf32>
    %112 = math.tanh %111 : vector<4x32xf32>
    %113 = vector.extract_strided_slice %98 {offsets = [0, 96], sizes = [4, 32], strides = [1, 1]} : vector<4x128xf32> to vector<4x32xf32>
    %114 = arith.negf %113 : vector<4x32xf32>
    %115 = math.exp %114 : vector<4x32xf32>
    %cst_32 = arith.constant 1.000000e+00 : f32
    %116 = vector.broadcast %cst_32 : f32 to vector<4x32xf32>
    %117 = arith.addf %116, %115 : vector<4x32xf32>
    %118 = arith.divf %116, %117 : vector<4x32xf32>
    %119 = arith.mulf %110, %93 : vector<4x32xf32>
    %120 = arith.mulf %104, %112 : vector<4x32xf32>
    %121 = arith.addf %119, %120 : vector<4x32xf32>
    %122 = math.tanh %121 : vector<4x32xf32>
    %123 = arith.mulf %118, %122 : vector<4x32xf32>
    %c16 = arith.constant 16 : index
    %c0_33 = arith.constant 0 : index
    %124 = vector.load %arg6[%c16, %c0_33] : memref<32x128xf32, #tpu.memory_space<vmem>>, vector<4x128xf32>
    %cst_34 = arith.constant dense<0.000000e+00> : vector<4x128xf32>
    %125 = tpu.matmul %123, %9, %cst_34 {dimension_numbers = #tpu.dot_dimension_numbers<[1], [0], [0], [1], [0, 0, 1, 1], [], []>} : vector<4x32xf32>, vector<32x128xf32>, vector<4x128xf32> -> vector<4x128xf32>
    %126 = arith.addf %124, %125 : vector<4x128xf32>
    %127 = vector.extract_strided_slice %126 {offsets = [0, 0], sizes = [4, 32], strides = [1, 1]} : vector<4x128xf32> to vector<4x32xf32>
    %128 = arith.negf %127 : vector<4x32xf32>
    %129 = math.exp %128 : vector<4x32xf32>
    %cst_35 = arith.constant 1.000000e+00 : f32
    %130 = vector.broadcast %cst_35 : f32 to vector<4x32xf32>
    %131 = arith.addf %130, %129 : vector<4x32xf32>
    %132 = arith.divf %130, %131 : vector<4x32xf32>
    %133 = vector.extract_strided_slice %126 {offsets = [0, 32], sizes = [4, 32], strides = [1, 1]} : vector<4x128xf32> to vector<4x32xf32>
    %134 = arith.negf %133 : vector<4x32xf32>
    %135 = math.exp %134 : vector<4x32xf32>
    %cst_36 = arith.constant 1.000000e+00 : f32
    %136 = vector.broadcast %cst_36 : f32 to vector<4x32xf32>
    %137 = arith.addf %136, %135 : vector<4x32xf32>
    %138 = arith.divf %136, %137 : vector<4x32xf32>
    %139 = vector.extract_strided_slice %126 {offsets = [0, 64], sizes = [4, 32], strides = [1, 1]} : vector<4x128xf32> to vector<4x32xf32>
    %140 = math.tanh %139 : vector<4x32xf32>
    %141 = vector.extract_strided_slice %126 {offsets = [0, 96], sizes = [4, 32], strides = [1, 1]} : vector<4x128xf32> to vector<4x32xf32>
    %142 = arith.negf %141 : vector<4x32xf32>
    %143 = math.exp %142 : vector<4x32xf32>
    %cst_37 = arith.constant 1.000000e+00 : f32
    %144 = vector.broadcast %cst_37 : f32 to vector<4x32xf32>
    %145 = arith.addf %144, %143 : vector<4x32xf32>
    %146 = arith.divf %144, %145 : vector<4x32xf32>
    %147 = arith.mulf %138, %121 : vector<4x32xf32>
    %148 = arith.mulf %132, %140 : vector<4x32xf32>
    %149 = arith.addf %147, %148 : vector<4x32xf32>
    %150 = math.tanh %149 : vector<4x32xf32>
    %151 = arith.mulf %146, %150 : vector<4x32xf32>
    %c20 = arith.constant 20 : index
    %c0_38 = arith.constant 0 : index
    %152 = vector.load %arg6[%c20, %c0_38] : memref<32x128xf32, #tpu.memory_space<vmem>>, vector<4x128xf32>
    %cst_39 = arith.constant dense<0.000000e+00> : vector<4x128xf32>
    %153 = tpu.matmul %151, %9, %cst_39 {dimension_numbers = #tpu.dot_dimension_numbers<[1], [0], [0], [1], [0, 0, 1, 1], [], []>} : vector<4x32xf32>, vector<32x128xf32>, vector<4x128xf32> -> vector<4x128xf32>
    %154 = arith.addf %152, %153 : vector<4x128xf32>
    %155 = vector.extract_strided_slice %154 {offsets = [0, 0], sizes = [4, 32], strides = [1, 1]} : vector<4x128xf32> to vector<4x32xf32>
    %156 = arith.negf %155 : vector<4x32xf32>
    %157 = math.exp %156 : vector<4x32xf32>
    %cst_40 = arith.constant 1.000000e+00 : f32
    %158 = vector.broadcast %cst_40 : f32 to vector<4x32xf32>
    %159 = arith.addf %158, %157 : vector<4x32xf32>
    %160 = arith.divf %158, %159 : vector<4x32xf32>
    %161 = vector.extract_strided_slice %154 {offsets = [0, 32], sizes = [4, 32], strides = [1, 1]} : vector<4x128xf32> to vector<4x32xf32>
    %162 = arith.negf %161 : vector<4x32xf32>
    %163 = math.exp %162 : vector<4x32xf32>
    %cst_41 = arith.constant 1.000000e+00 : f32
    %164 = vector.broadcast %cst_41 : f32 to vector<4x32xf32>
    %165 = arith.addf %164, %163 : vector<4x32xf32>
    %166 = arith.divf %164, %165 : vector<4x32xf32>
    %167 = vector.extract_strided_slice %154 {offsets = [0, 64], sizes = [4, 32], strides = [1, 1]} : vector<4x128xf32> to vector<4x32xf32>
    %168 = math.tanh %167 : vector<4x32xf32>
    %169 = vector.extract_strided_slice %154 {offsets = [0, 96], sizes = [4, 32], strides = [1, 1]} : vector<4x128xf32> to vector<4x32xf32>
    %170 = arith.negf %169 : vector<4x32xf32>
    %171 = math.exp %170 : vector<4x32xf32>
    %cst_42 = arith.constant 1.000000e+00 : f32
    %172 = vector.broadcast %cst_42 : f32 to vector<4x32xf32>
    %173 = arith.addf %172, %171 : vector<4x32xf32>
    %174 = arith.divf %172, %173 : vector<4x32xf32>
    %175 = arith.mulf %166, %149 : vector<4x32xf32>
    %176 = arith.mulf %160, %168 : vector<4x32xf32>
    %177 = arith.addf %175, %176 : vector<4x32xf32>
    %178 = math.tanh %177 : vector<4x32xf32>
    %179 = arith.mulf %174, %178 : vector<4x32xf32>
    %c24 = arith.constant 24 : index
    %c0_43 = arith.constant 0 : index
    %180 = vector.load %arg6[%c24, %c0_43] : memref<32x128xf32, #tpu.memory_space<vmem>>, vector<4x128xf32>
    %cst_44 = arith.constant dense<0.000000e+00> : vector<4x128xf32>
    %181 = tpu.matmul %179, %9, %cst_44 {dimension_numbers = #tpu.dot_dimension_numbers<[1], [0], [0], [1], [0, 0, 1, 1], [], []>} : vector<4x32xf32>, vector<32x128xf32>, vector<4x128xf32> -> vector<4x128xf32>
    %182 = arith.addf %180, %181 : vector<4x128xf32>
    %183 = vector.extract_strided_slice %182 {offsets = [0, 0], sizes = [4, 32], strides = [1, 1]} : vector<4x128xf32> to vector<4x32xf32>
    %184 = arith.negf %183 : vector<4x32xf32>
    %185 = math.exp %184 : vector<4x32xf32>
    %cst_45 = arith.constant 1.000000e+00 : f32
    %186 = vector.broadcast %cst_45 : f32 to vector<4x32xf32>
    %187 = arith.addf %186, %185 : vector<4x32xf32>
    %188 = arith.divf %186, %187 : vector<4x32xf32>
    %189 = vector.extract_strided_slice %182 {offsets = [0, 32], sizes = [4, 32], strides = [1, 1]} : vector<4x128xf32> to vector<4x32xf32>
    %190 = arith.negf %189 : vector<4x32xf32>
    %191 = math.exp %190 : vector<4x32xf32>
    %cst_46 = arith.constant 1.000000e+00 : f32
    %192 = vector.broadcast %cst_46 : f32 to vector<4x32xf32>
    %193 = arith.addf %192, %191 : vector<4x32xf32>
    %194 = arith.divf %192, %193 : vector<4x32xf32>
    %195 = vector.extract_strided_slice %182 {offsets = [0, 64], sizes = [4, 32], strides = [1, 1]} : vector<4x128xf32> to vector<4x32xf32>
    %196 = math.tanh %195 : vector<4x32xf32>
    %197 = vector.extract_strided_slice %182 {offsets = [0, 96], sizes = [4, 32], strides = [1, 1]} : vector<4x128xf32> to vector<4x32xf32>
    %198 = arith.negf %197 : vector<4x32xf32>
    %199 = math.exp %198 : vector<4x32xf32>
    %cst_47 = arith.constant 1.000000e+00 : f32
    %200 = vector.broadcast %cst_47 : f32 to vector<4x32xf32>
    %201 = arith.addf %200, %199 : vector<4x32xf32>
    %202 = arith.divf %200, %201 : vector<4x32xf32>
    %203 = arith.mulf %194, %177 : vector<4x32xf32>
    %204 = arith.mulf %188, %196 : vector<4x32xf32>
    %205 = arith.addf %203, %204 : vector<4x32xf32>
    %206 = math.tanh %205 : vector<4x32xf32>
    %207 = arith.mulf %202, %206 : vector<4x32xf32>
    %c28 = arith.constant 28 : index
    %c0_48 = arith.constant 0 : index
    %208 = vector.load %arg6[%c28, %c0_48] : memref<32x128xf32, #tpu.memory_space<vmem>>, vector<4x128xf32>
    %cst_49 = arith.constant dense<0.000000e+00> : vector<4x128xf32>
    %209 = tpu.matmul %207, %9, %cst_49 {dimension_numbers = #tpu.dot_dimension_numbers<[1], [0], [0], [1], [0, 0, 1, 1], [], []>} : vector<4x32xf32>, vector<32x128xf32>, vector<4x128xf32> -> vector<4x128xf32>
    %210 = arith.addf %208, %209 : vector<4x128xf32>
    %211 = vector.extract_strided_slice %210 {offsets = [0, 0], sizes = [4, 32], strides = [1, 1]} : vector<4x128xf32> to vector<4x32xf32>
    %212 = arith.negf %211 : vector<4x32xf32>
    %213 = math.exp %212 : vector<4x32xf32>
    %cst_50 = arith.constant 1.000000e+00 : f32
    %214 = vector.broadcast %cst_50 : f32 to vector<4x32xf32>
    %215 = arith.addf %214, %213 : vector<4x32xf32>
    %216 = arith.divf %214, %215 : vector<4x32xf32>
    %217 = vector.extract_strided_slice %210 {offsets = [0, 32], sizes = [4, 32], strides = [1, 1]} : vector<4x128xf32> to vector<4x32xf32>
    %218 = arith.negf %217 : vector<4x32xf32>
    %219 = math.exp %218 : vector<4x32xf32>
    %cst_51 = arith.constant 1.000000e+00 : f32
    %220 = vector.broadcast %cst_51 : f32 to vector<4x32xf32>
    %221 = arith.addf %220, %219 : vector<4x32xf32>
    %222 = arith.divf %220, %221 : vector<4x32xf32>
    %223 = vector.extract_strided_slice %210 {offsets = [0, 64], sizes = [4, 32], strides = [1, 1]} : vector<4x128xf32> to vector<4x32xf32>
    %224 = math.tanh %223 : vector<4x32xf32>
    %225 = vector.extract_strided_slice %210 {offsets = [0, 96], sizes = [4, 32], strides = [1, 1]} : vector<4x128xf32> to vector<4x32xf32>
    %226 = arith.negf %225 : vector<4x32xf32>
    %227 = math.exp %226 : vector<4x32xf32>
    %cst_52 = arith.constant 1.000000e+00 : f32
    %228 = vector.broadcast %cst_52 : f32 to vector<4x32xf32>
    %229 = arith.addf %228, %227 : vector<4x32xf32>
    %230 = arith.divf %228, %229 : vector<4x32xf32>
    %231 = arith.mulf %222, %205 : vector<4x32xf32>
    %232 = arith.mulf %216, %224 : vector<4x32xf32>
    %233 = arith.addf %231, %232 : vector<4x32xf32>
    %234 = math.tanh %233 : vector<4x32xf32>
    %235 = arith.mulf %230, %234 : vector<4x32xf32>
    %236 = tpu.concatenate %39, %67, %95, %123, %151, %179, %207, %235 in 0 : vector<4x32xf32>, vector<4x32xf32>, vector<4x32xf32>, vector<4x32xf32>, vector<4x32xf32>, vector<4x32xf32>, vector<4x32xf32>, vector<4x32xf32> -> vector<32x32xf32>
    %c0_53 = arith.constant 0 : index
    %c0_54 = arith.constant 0 : index
    %237 = vector.load %arg5[%c0_53, %c0_54] : memref<32x32xf32, #tpu.memory_space<vmem>>, vector<32x32xf32>
    tpu.vector_store %arg5[%c0_53, %c0_54], %236 {strides = array<i32>} : memref<32x32xf32, #tpu.memory_space<vmem>>, vector<32x32xf32>,
    return
  }
}

</mosaic_0001>

<bundles_post_ra>
// kernel: rnnvae_forward.5
= control target key start
LH: loop header
LB: loop body
LE: loop exit
PB: predicated region body
PF: predicated region fallthrough
CT: control target
= control target key end

     0   :  { %v318_v1 = vmov 0   ;;  %vm62_vm0 = vcmask 261120   ;;  %v32_v11 = vlaneseq  ;;  %vm257_vm10 = vcmask 7168   ;;  %s515_s1 = inlined_call_operand.vmem [shape: bf16[32,256], index: 1, kind: input, shape index: {}]   ;;  %s516_s0 = inlined_call_operand.vmem [shape: f32[32,32], index: 0, kind: input, shape index: {}]   ;;  %s517_s2 = inlined_call_operand.vmem [shape: f32[1,256], index: 2, kind: input, shape index: {}]   ;;  %s518_s4 = inlined_call_operand.vmem [shape: f32[32,256], index: 4, kind: output, shape index: {0}]   ;;  %s519_s3 = inlined_call_operand.vmem [shape: s32[32,1], index: 3, kind: input, shape index: {}]   ;;  %s520_s5 = inlined_call_operand.vmem [shape: f32[32,1], index: 5, kind: output, shape index: {1}]  }
   0x1   :  { %v288_v0 = vld [vmem:[%s515_s1 + $0x4] ss:$8 sps:$4 sm:$0xff]   ;;  %101 = vmatprep.mubr.bf16.mxu0 %v318_v1  ;;  %111 = vmatprep.mubr.bf16.mxu1 %v318_v1  ;;  %v290_v2 = vld [vmem:[%s515_s1] ss:$8 sps:$4 sm:$0xff]   ;;  %v291_v3 = vld [vmem:[%s515_s1 + $0x14] ss:$8 sps:$4 sm:$0xff]  }
   0x2   :  { %287 = vset.pattern.permute.xlu1 %v318_v1  ;;  %286 = vset.pattern.permute.xlu0 %v318_v1  ;;  %v293_v4 = vld [vmem:[%s515_s1 + $0x10] ss:$8 sps:$4 sm:$0xff]   ;;  %v20_v5 = vld [vmem:[%s516_s0] sm:$0xff]  ;;  %v21_v6 = vld [vmem:[%s516_s0 + $0x8] sm:$0xff]  ;;  %v33_v12 = vshrl.u32 %v32_v11, 7  ;;  %v195_v58 = vand.u32 127, %v32_v11 }
   0x3   :  { %69 = vmatprep.subr.bf16.mxu0 %v288_v0  ;;  %280 = vmatprep.subr.bf16.mxu1 %v288_v0  ;;  %v22_v7 = vld [vmem:[%s516_s0 + $0x10] sm:$0xff]  ;;  %v23_v8 = vld [vmem:[%s516_s0 + $0x18] sm:$0xff]  ;;  %v24_v9 = vpack.c.bf16 %v21_v6, %v20_v5  ;;  %v30_v14 = vld [vmem:[%s517_s2] sm:$0x3] }
   0x4   :  { %70 = vmatpush1.bf16.msra.mxu0 %v290_v2  ;;  %282 = vmatpush1.bf16.msra.mxu1 %v290_v2  ;;  %v25_v10 = vpack.c.bf16 %v23_v8, %v22_v7  ;;  %v34_v13 = vsub.s32 0, %v33_v12  ;;  %v38_v15 = vsub.s32 1, %v33_v12  ;;  %v435_v37 = vld [vmem:[%s519_s3 + $0x8] sm:$0xff]  ;;  %v441_v38 = vld [vmem:[%s519_s3 + $0x10] sm:$0xff]  ;;  %v447_v39 = vld [vmem:[%s519_s3] sm:$0xff]  ;;  %v196_v63 = vadd.s32 128, %v195_v58 }
   0x5   :  { %71 = vmatprep.subr.bf16.mxu0 %v291_v3  ;;  %281 = vmatprep.subr.bf16.mxu1 %v291_v3  ;;  %v455_v41 = vld [vmem:[%s519_s3 + $0x18] sm:$0xff]  ;;  %vm243_vm9 = vcmp.ne.s32.totalorder %v441_v38, 0  ;;  %vm241_vm11 = vcmp.ne.s32.totalorder %v447_v39, 0  ;;  %vm242_vm12 = vcmp.ne.s32.totalorder %v435_v37, 0 }
   0x6   :  { %v35_v16 = vrot.slane %v30_v14, %v34_v13  ;;  %v39_v17 = vrot.slane %v30_v14, %v38_v15  ;;  %vm244_vm13 = vcmp.ne.s32.totalorder %v455_v41, 0 }
   0x8   :  { %72 = vmatpush1.bf16.msra.mxu0 %v293_v4  ;;  %283 = vmatpush1.bf16.msra.mxu1 %v293_v4 }
   0xb   :  { %274 = vmatmul.mubr.msk.bf16.vlgmr.msra.gmra.mrb[0].mxu0 %vm62_vm0, %v24_v9  ;;  %275 = vmatmul.mubr.msk.bf16.vlgmr.msra.gmra.mrb[0].mxu1 %vm62_vm0, %v25_v10 }
  0xde   :  { %v103_v18 = vpop.f32.mrb[0].mxu0  ;;  %v113_v19 = vpop.f32.mrb[0].mxu1 }
  0xdf   :  { %v378_v20 = vadd.f32 %v103_v18, %v35_v16  ;;  %v380_v21 = vadd.f32 %v113_v19, %v35_v16  ;;  %v105_v22 = vpop.f32.mrb[1].mxu0  ;;  %v115_v23 = vpop.f32.mrb[1].mxu1 }
  0xe0   :  { %v382_v24 = vadd.f32 %v105_v22, %v39_v17  ;;  %v384_v25 = vadd.f32 %v115_v23, %v39_v17  ;;  %v117_v26 = vpop.f32.mrb[2].mxu1  ;;  %v107_v27 = vpop.f32.mrb[2].mxu0 }
  0xe1   :  { %122 = vst [vmem:[%s518_s4] sm:$0xff] %v378_v20  ;;  %126 = vst [vmem:[%s518_s4 + $0x20] sm:$0xff] %v380_v21  ;;  %v394_v28 = vadd.f32 %v117_v26, %v35_v16  ;;  %v119_v29 = vpop.f32.mrb[3].mxu1  ;;  %v396_v30 = vadd.f32 %v107_v27, %v35_v16  ;;  %v109_v31 = vpop.f32.mrb[3].mxu0 }
  0xe2   :  { %123 = vst [vmem:[%s518_s4 + $0x8] sm:$0xff] %v382_v24  ;;  %127 = vst [vmem:[%s518_s4 + $0x28] sm:$0xff] %v384_v25  ;;  %v406_v32 = vadd.f32 %v119_v29, %v39_v17  ;;  %v408_v33 = vadd.f32 %v109_v31, %v39_v17  ;;  %v136_v34 = vmax.f32 %v380_v21, %v384_v25 }
  0xe3   :  { %v130_v35 = vmax.f32 %v378_v20, %v382_v24  ;;  %128 = vst [vmem:[%s518_s4 + $0x30] sm:$0xff] %v394_v28  ;;  %124 = vst [vmem:[%s518_s4 + $0x10] sm:$0xff] %v396_v30 }
  0xe4   :  { %129 = vst [vmem:[%s518_s4 + $0x38] sm:$0xff] %v406_v32  ;;  %125 = vst [vmem:[%s518_s4 + $0x18] sm:$0xff] %v408_v33  ;;  %137 = vmax.xlane.f32.xlu1 %v136_v34  ;;  %v133_v36 = vmax.f32 %v396_v30, %v408_v33  ;;  %v139_v40 = vmax.f32 %v394_v28, %v406_v32 }
  0xe5   :  { %131 = vmax.xlane.f32.xlu0 %v130_v35 }
  0xe9   :  { %134 = vmax.xlane.f32.xlu0 %v133_v36  ;;  %v319_v36 = vmov 0.0  }
  0xf5   :  { %201 = vperm.xlu1 %287, %v435_v37  }
  0xf9   :  { %204 = vperm.xlu1 %287, %v441_v38  }
  0xff   :  { %198 = vperm.xlu0 %286, %v447_v39  }
 0x11d   :  { %140 = vmax.xlane.f32.xlu1 %v139_v40  ;;  %v278_v40 = vsel %vm243_vm9, 1.0, %v319_v36 }
 0x12e   :  { %207 = vperm.xlu1 %287, %v455_v41  }
 0x171   :  { %v458_v42 = vpop.xlane.xlu1 %137 }
 0x172   :  { %v460_v43 = vpop.xlane.xlu0 %131  ;;  %v146_v44 = vsub.f32 %v380_v21, %v458_v42  ;;  %v147_v45 = vsub.f32 %v384_v25, %v458_v42 }
 0x173   :  { %v142_v46 = vsub.f32 %v378_v20, %v460_v43  ;;  %v143_v47 = vsub.f32 %v382_v24, %v460_v43 }
 0x174   :  { %v158_v48 = vmul.f32 1.442695, %v146_v44  ;;  %v160_v49 = vmul.f32 1.442695, %v147_v45 }
 0x175   :  { %v150_v50 = vmul.f32 1.442695, %v142_v46  ;;  %v152_v51 = vmul.f32 1.442695, %v143_v47  ;;  %v202_v57 = vpop.permute.xlu1 %201 }
 0x176   :  { %v470_v52 = vpop.xlane.xlu0 %134  ;;  %294 = vpow2.f32 %v158_v48  ;;  %vm211_vm5 = vcmp.eq.s32.totalorder %v195_v58, %v202_v57  ;;  %vm212_vm6 = vcmp.eq.s32.totalorder %v196_v63, %v202_v57 }
 0x177   :  { %v144_v53 = vsub.f32 %v396_v30, %v470_v52  ;;  %296 = vpow2.f32 %v160_v49  ;;  %v145_v54 = vsub.f32 %v408_v33, %v470_v52  ;;  %v219_v23 = vsel %vm211_vm5, %v396_v30, 0.0 }
 0x178   :  { %298 = vpow2.f32 %v150_v50  ;;  %v276_v49 = vsel %vm241_vm11, 1.0, %v319_v36 }
 0x179   :  { %v154_v55 = vmul.f32 1.442695, %v144_v53  ;;  %300 = vpow2.f32 %v152_v51  ;;  %v156_v56 = vmul.f32 1.442695, %v145_v54  ;;  %v205_v61 = vpop.permute.xlu1 %204 }
 0x17a   :  { %vm213_vm1 = vcmp.eq.s32.totalorder %v195_v58, %v205_v61  ;;  %vm214_vm2 = vcmp.eq.s32.totalorder %v196_v63, %v205_v61 }
 0x17b   :  { %302 = vpow2.f32 %v154_v55  ;;  %v221_v5 = vsel %vm213_vm1, %v380_v21, 0.0  ;;  %v222_v6 = vsel %vm214_vm2, %v384_v25, 0.0  ;;  %v220_v25 = vsel %vm212_vm6, %v408_v33, 0.0 }
 0x17c   :  { %304 = vpow2.f32 %v156_v56  ;;  %v231_v8 = vadd.f32 %v222_v6, %v221_v5  ;;  %v228_v26 = vadd.f32 %v220_v25, %v219_v23  ;;  %v277_v55 = vsel %vm242_vm12, 1.0, %v319_v36 }
 0x17e   :  { %v199_v14 = vpop.permute.xlu0 %198 }
 0x17f   :  { %vm209_vm3 = vcmp.eq.s32.totalorder %v195_v58, %v199_v14  ;;  %vm210_vm4 = vcmp.eq.s32.totalorder %v196_v63, %v199_v14 }
 0x180   :  { %v295_v59 = vpop.eup %294  ;;  %v217_v18 = vsel %vm209_vm3, %v378_v20, 0.0  ;;  %v218_v19 = vsel %vm210_vm4, %v382_v24, 0.0 }
 0x181   :  { %v297_v60 = vpop.eup %296  ;;  %v225_v22 = vadd.f32 %v218_v19, %v217_v18 }
 0x182   :  { %v299_v62 = vpop.eup %298  ;;  %v172_v7 = vadd.f32 %v297_v60, %v295_v59 }
 0x183   :  { %v301_v0 = vpop.eup %300 }
 0x184   :  { %v166_v2 = vadd.f32 %v301_v0, %v299_v62 }
 0x185   :  { %v303_v1 = vpop.eup %302 }
 0x186   :  { %v305_v3 = vpop.eup %304  ;;  %167 = vadd.xlane.f32.xlu1 %v166_v2 }
 0x187   :  { %v169_v4 = vadd.f32 %v305_v3, %v303_v1 }
 0x189   :  { %170 = vadd.xlane.f32.xlu0 %v169_v4 }
 0x18a   :  { %173 = vadd.xlane.f32.xlu1 %v172_v7 }
 0x18d   :  { %232 = vadd.xlane.f32.xlu0 %v231_v8 }
 0x1aa   :  { %v479_v9 = vpop.xlane.xlu1 %140 }
 0x1ab   :  { %v148_v10 = vsub.f32 %v394_v28, %v479_v9  ;;  %v149_v11 = vsub.f32 %v406_v32, %v479_v9 }
 0x1ad   :  { %v162_v12 = vmul.f32 1.442695, %v148_v10  ;;  %v164_v13 = vmul.f32 1.442695, %v149_v11 }
 0x1ae   :  { %v208_v21 = vpop.permute.xlu1 %207 }
 0x1af   :  { %306 = vpow2.f32 %v162_v12  ;;  %vm215_vm7 = vcmp.eq.s32.totalorder %v195_v58, %v208_v21  ;;  %vm216_vm8 = vcmp.eq.s32.totalorder %v196_v63, %v208_v21 }
 0x1b0   :  { %308 = vpow2.f32 %v164_v13  ;;  %v223_v27 = vsel %vm215_vm7, %v394_v28, 0.0  ;;  %v224_v29 = vsel %vm216_vm8, %v406_v32, 0.0 }
 0x1b1   :  { %v234_v20 = vadd.f32 %v224_v29, %v223_v27 }
 0x1b9   :  { %v307_v15 = vpop.eup %306 }
 0x1ba   :  { %v309_v16 = vpop.eup %308 }
 0x1bb   :  { %v175_v17 = vadd.f32 %v309_v16, %v307_v15 }
 0x1bd   :  { %176 = vadd.xlane.f32.xlu1 %v175_v17 }
 0x1c1   :  { %226 = vadd.xlane.f32.xlu1 %v225_v22 }
 0x1c5   :  { %229 = vadd.xlane.f32.xlu1 %v228_v26 }
 0x1c9   :  { %235 = vadd.xlane.f32.xlu1 %v234_v20 }
 0x213   :  { %v168_v24 = vpop.xlane.xlu1 %167 }
 0x216   :  { %v171_v34 = vpop.xlane.xlu0 %170 }
 0x217   :  { %v174_v31 = vpop.xlane.xlu1 %173 }
 0x218   :  { %310 = vlog2.f32 %v174_v31 }
 0x219   :  { %312 = vlog2.f32 %v168_v24 }
 0x21a   :  { %v233_v44 = vpop.xlane.xlu0 %232  ;;  %314 = vlog2.f32 %v171_v34 }
 0x222   :  { %v311_v35 = vpop.eup %310 }
 0x223   :  { %v183_v30 = vmul.f32 0.6931472, %v311_v35  ;;  %v313_v32 = vpop.eup %312 }
 0x224   :  { %v179_v46 = vmul.f32 0.6931472, %v313_v32  ;;  %v315_v47 = vpop.eup %314 }
 0x225   :  { %v188_v33 = vadd.f32 %v183_v30, %v458_v42  ;;  %v181_v42 = vmul.f32 0.6931472, %v315_v47 }
 0x226   :  { %v186_v48 = vadd.f32 %v179_v46, %v460_v43 }
 0x227   :  { %v239_v45 = vsub.f32 %v188_v33, %v233_v44  ;;  %v187_v54 = vadd.f32 %v181_v42, %v470_v52  ;;  %v279_v52 = vsel %vm244_vm13, 1.0, %v319_v36 }
 0x229   :  { %v255_v28 = vmul.f32 %v278_v40, %v239_v45 }
 0x22b   :  { %260 = vst.msk [vmem:[%s520_s5 + $0x10] sm:$0xff] %vm257_vm10, %v255_v28 }
 0x24a   :  { %v177_v38 = vpop.xlane.xlu1 %176 }
 0x24b   :  { %316 = vlog2.f32 %v177_v38 }
 0x24e   :  { %v227_v50 = vpop.xlane.xlu1 %226 }
 0x24f   :  { %v237_v51 = vsub.f32 %v186_v48, %v227_v50 }
 0x251   :  { %v253_v53 = vmul.f32 %v276_v49, %v237_v51 }
 0x252   :  { %v230_v56 = vpop.xlane.xlu1 %229 }
 0x253   :  { %258 = vst.msk [vmem:[%s520_s5] sm:$0xff] %vm257_vm10, %v253_v53  ;;  %v238_v39 = vsub.f32 %v187_v54, %v230_v56 }
 0x255   :  { %v317_v57 = vpop.eup %316  ;;  %v254_v58 = vmul.f32 %v277_v55, %v238_v39 }
 0x256   :  { %v185_v43 = vmul.f32 0.6931472, %v317_v57  ;;  %v236_v59 = vpop.xlane.xlu1 %235 }
 0x257   :  { %259 = vst.msk [vmem:[%s520_s5 + $0x8] sm:$0xff] %vm257_vm10, %v254_v58 }
 0x258   :  { %v189_v37 = vadd.f32 %v185_v43, %v479_v9 }
 0x25a   :  { %v240_v60 = vsub.f32 %v189_v37, %v236_v59 }
 0x25c   :  { %v256_v61 = vmul.f32 %v279_v52, %v240_v60 }
 0x25e   :  { %261 = vst.msk [vmem:[%s520_s5 + $0x18] sm:$0xff] %vm257_vm10, %v256_v61 }

// kernel: rnnvae_forward.4
= control target key start
LH: loop header
LB: loop body
LE: loop exit
PB: predicated region body
PF: predicated region fallthrough
CT: control target
= control target key end

     0   :  { %v1225_v3 = vmov 0.0|0.0   ;;  %vm1226_vm0 = vmmov 0   ;;  %v1227_v4 = vmov 0.0   ;;  %vm40_vm1 = vcmask 261120   ;;  %s1228_s17 = smov 64   ;;  %s1439_s1 = inlined_call_operand.vmem [shape: f32[32,128], index: 1, kind: input, shape index: {}]   ;;  %s1440_s0 = inlined_call_operand.vmem [shape: f32[32,32], index: 0, kind: input, shape index: {}]   ;;  %s1441_s3 = inlined_call_operand.vmem [shape: f32[32,128], index: 3, kind: input, shape index: {}]   ;;  %s1442_s4 = inlined_call_operand.vmem [shape: f32[4,64], index: 4, kind: input, shape index: {}]   ;;  %s1443_s2 = inlined_call_operand.vmem [shape: f32[1,128], index: 2, kind: input, shape index: {}]   ;;  %s1444_s5 = inlined_call_operand.vmem [shape: f32[32,32], index: 5, kind: output, shape index: {}]  }
   0x1   :  { %v27_v0 = vld [vmem:[%s1439_s1] sm:$0xff]  ;;  %v28_v1 = vld [vmem:[%s1439_s1 + $0x8] sm:$0xff]  ;;  %v29_v2 = vld [vmem:[%s1439_s1 + $0x10] sm:$0xff]  ;;  %1108 = vmatprep.subr.bf16.mxu1 %v1225_v3  ;;  %1028 = vmatprep.mubr.msk.f32.mxu1 %vm1226_vm0, %v1227_v4  ;;  %vm920_vm2 = vcmask 1043456  }
   0x2   :  { %v31_v5 = vpack.c.bf16 %v28_v1, %v27_v0  ;;  %v30_v6 = vld [vmem:[%s1439_s1 + $0x18] sm:$0xff]  ;;  %v21_v7 = vld [vmem:[%s1440_s0] sm:$0xff]  ;;  %v22_v8 = vld [vmem:[%s1440_s0 + $0x8] sm:$0xff] }
   0x3   :  { %v32_v9 = vpack.c.bf16 %v30_v6, %v29_v2  ;;  %v25_v10 = vpack.c.bf16 %v22_v8, %v21_v7  ;;  %v100_v11 = vld [vmem:[%s1441_s3] sm:$0xff]  ;;  %v101_v12 = vld [vmem:[%s1441_s3 + $0x8] sm:$0xff]  ;;  %v102_v13 = vld [vmem:[%s1441_s3 + $0x10] sm:$0xff] }
   0x4   :  { %1012 = vmatprep.subr.bf16.mxu0 %v31_v5  ;;  %v103_v14 = vld [vmem:[%s1441_s3 + $0x18] sm:$0xff]  ;;  %v23_v15 = vld [vmem:[%s1440_s0 + $0x10] sm:$0xff]  ;;  %v1300_v17 = vpack.c.bf16 %v101_v12, %v100_v11  ;;  %v104_v20 = vld [vmem:[%s1442_s4] sm:$0xf] }
   0x5   :  { %1013 = vmatpush3.bf16.msra.mxu0 %v31_v5  ;;  %1016 = vmatprep.mubr.msk.bf16.mxu0 %vm40_vm1, %v25_v10  ;;  %v24_v16 = vld [vmem:[%s1440_s0 + $0x18] sm:$0xff]  ;;  %v1303_v18 = vpack.c.bf16 %v103_v14, %v102_v13  ;;  %v949_v21 = vld [vmem:[%s1443_s2] ss:$0 sm:$0xff]  ;;  %s1229_s2 = smov 32  }
   0x6   :  { %1014 = vmatprep.subr.bf16.mxu0 %v32_v9  ;;  %1110 = vmatpush3.bf16.msra.mxu1 %v1300_v17  ;;  %v26_v19 = vpack.c.bf16 %v24_v16, %v23_v15 }
   0x7   :  { %1111 = vmatprep.subr.bf16.mxu1 %v1225_v3 }
   0x9   :  { %1015 = vmatpush3.bf16.msra.mxu0 %v32_v9 }
   0xa   :  { %1114 = vmatprep.subr.bf16.mxu0 %v1225_v3  ;;  %1113 = vmatpush3.bf16.msra.mxu1 %v1303_v18 }
   0xb   :  { %1120 = vmatprep.subr.bf16.mxu1 %v1225_v3 }
   0xc   :  { %1017 = vmatmul.mubr.msk.bf16.vlgmr.msra.gmra.mrb[0].mxu0 %vm40_vm1, %v26_v19 }
   0xd   :  { %1116 = vmatpush3.bf16.msra.mxu0 %v1300_v17  ;;  %1039 = vmatprep.mubr.msk.f32.mxu0 %vm1226_vm0, %v1227_v4 }
   0xe   :  { %1029 = vmatmul.mubr.msk.f32.vlgmr.msra.gmra.mrb[0].mxu1 %vm40_vm1, %v104_v20  ;;  %1117 = vmatprep.subr.bf16.mxu0 %v1225_v3 }
   0xf   :  { %1122 = vmatpush3.bf16.msra.mxu1 %v1300_v17  ;;  %1050 = vmatprep.mubr.msk.f32.mxu1 %vm1226_vm0, %v1227_v4 }
  0x10   :  { %1123 = vmatprep.subr.bf16.mxu1 %v1225_v3 }
  0x11   :  { %1119 = vmatpush3.bf16.msra.mxu0 %v1303_v18 }
  0x12   :  { %1126 = vmatprep.subr.bf16.mxu0 %v1225_v3 }
  0x13   :  { %1125 = vmatpush3.bf16.msra.mxu1 %v1303_v18 }
  0x14   :  { %1132 = vmatprep.subr.bf16.mxu1 %v1225_v3 }
  0xdf   :  { %v1018_v22 = vpop.f32.mrb[0].mxu0 }
  0xe0   :  { %v90_v23 = vadd.f32 %v1018_v22, %v949_v21  ;;  %v81_v24 = vpop.f32.mrb[1].mxu0 }
  0xe1   :  { %v82_v25 = vadd.f32 %v949_v21, %v81_v24  ;;  %v1019_v26 = vpop.f32.mrb[2].mxu0  ;;  %v175_v27 = vpop.f32.mrb[0].mxu1 }
  0xe2   :  { %98 = vst [vmem:[#allocation2 + $0x10] sm:$0xff] %v90_v23  ;;  %v93_v28 = vadd.f32 %v1019_v26, %v949_v21  ;;  %v84_v29 = vpop.f32.mrb[3].mxu0  ;;  %v1030_v30 = vpop.f32.mrb[1].mxu1 }
  0xe3   :  { %96 = vst [vmem:[#allocation2] sm:$0xff] %v82_v25  ;;  %v85_v31 = vadd.f32 %v949_v21, %v84_v29 }
  0xe4   :  { %99 = vst [vmem:[#allocation2 + $0x18] sm:$0xff] %v93_v28 }
  0xe5   :  { %97 = vst [vmem:[#allocation2 + $0x8] sm:$0xff] %v85_v31 }
  0xea   :  { %v105_v32 = vld [vmem:[#allocation2] sm:$0xf]  ;;  %v204_v48 = vld [vmem:[#allocation2 + $0x4] sm:$0xf] }
  0xeb   :  { %v179_v33 = vadd.f32 %v175_v27, %v105_v32 }
  0xec   :  { %v305_v2 = vld [vmem:[#allocation2 + $0x8] sm:$0xf]  ;;  %v406_v24 = vld [vmem:[#allocation2 + $0xc] sm:$0xf] }
  0xed   :  { %1161 = vtanh.f32 %v179_v33  ;;  %v953_v35 = vmul.f32 -1.442695, %v179_v33 }
  0xef   :  { %1163 = vpow2.f32 %v953_v35 }
  0xf7   :  { %v1162_v34 = vpop.eup %1161 }
  0xf8   :  { %189 = vrot.lane.b32.xlu0 %v1162_v34, %s1228_s17 }
  0xf9   :  { %v1164_v36 = vpop.eup %1163 }
  0xfa   :  { %v183_v37 = vadd.f32 1.0, %v1164_v36 }
  0xfc   :  { %1165 = vrcp.f32 %v183_v37 }
 0x106   :  { %v1166_v38 = vpop.eup %1165 }
 0x107   :  { %v187_v41 = vmul.f32 %v1166_v38, %v104_v20 }
 0x16a   :  { %v190_v39 = vpop.permute.xlu0 %189 }
 0x16b   :  { %v192_v40 = vmul.f32 %v1166_v38, %v190_v39 }
 0x16d   :  { %194 = vrot.lane.b32.xlu0 %v192_v40, %s1229_s2 }
 0x1df   :  { %v195_v42 = vpop.permute.xlu0 %194 }
 0x1e0   :  { %v197_v43 = vadd.f32 %v195_v42, %v187_v41  ;;  %v507_v42 = vld [vmem:[#allocation2 + $0x10] sm:$0xf] }
 0x1e2   :  { %1167 = vtanh.f32 %v197_v43 }
 0x1ec   :  { %v1168_v44 = vpop.eup %1167 }
 0x1ed   :  { %200 = vrot.lane.b32.xlu1 %v1168_v44, %s1228_s17 }
 0x25f   :  { %v201_v45 = vpop.permute.xlu1 %200 }
 0x260   :  { %v1332_v46 = vmul.f32 %v1166_v38, %v201_v45 }
 0x262   :  { %206 = vrot.lane.b32.xlu1 %v1332_v46, %s1229_s2 }
 0x2d4   :  { %v207_v47 = vpop.permute.xlu1 %206 }
 0x2d5   :  { %1040 = vmatmul.mubr.msk.f32.vlgmr.msra.gmra.mrb[4].mxu0 %vm40_vm1, %v207_v47 }
 0x2d6   :  { %1128 = vmatpush3.bf16.msra.mxu0 %v1300_v17  ;;  %1061 = vmatprep.mubr.msk.f32.mxu0 %vm1226_vm0, %v1227_v4 }
 0x2d7   :  { %1129 = vmatprep.subr.bf16.mxu0 %v1225_v3 }
 0x2da   :  { %1131 = vmatpush3.bf16.msra.mxu0 %v1303_v18 }
 0x2db   :  { %1138 = vmatprep.subr.bf16.mxu0 %v1225_v3 }
 0x3a8   :  { %v276_v49 = vpop.f32.mrb[4].mxu0 }
 0x3a9   :  { %v280_v50 = vadd.f32 %v276_v49, %v204_v48  ;;  %v1041_v51 = vpop.f32.mrb[5].mxu0 }
 0x3ab   :  { %1169 = vtanh.f32 %v280_v50  ;;  %v955_v53 = vmul.f32 -1.442695, %v280_v50 }
 0x3ad   :  { %1171 = vpow2.f32 %v955_v53 }
 0x3b5   :  { %v1170_v52 = vpop.eup %1169 }
 0x3b6   :  { %290 = vrot.lane.b32.xlu0 %v1170_v52, %s1228_s17 }
 0x3b7   :  { %v1172_v54 = vpop.eup %1171 }
 0x3b8   :  { %v284_v55 = vadd.f32 1.0, %v1172_v54 }
 0x3ba   :  { %1173 = vrcp.f32 %v284_v55 }
 0x3c4   :  { %v1174_v56 = vpop.eup %1173 }
 0x3c5   :  { %v288_v59 = vmul.f32 %v1174_v56, %v197_v43 }
 0x428   :  { %v291_v57 = vpop.permute.xlu0 %290 }
 0x429   :  { %v293_v58 = vmul.f32 %v1174_v56, %v291_v57 }
 0x42b   :  { %295 = vrot.lane.b32.xlu1 %v293_v58, %s1229_s2 }
 0x49d   :  { %v296_v60 = vpop.permute.xlu1 %295 }
 0x49e   :  { %v298_v61 = vadd.f32 %v296_v60, %v288_v59 }
 0x4a0   :  { %1175 = vtanh.f32 %v298_v61 }
 0x4aa   :  { %v1176_v62 = vpop.eup %1175 }
 0x4ab   :  { %301 = vrot.lane.b32.xlu0 %v1176_v62, %s1228_s17 }
 0x51d   :  { %v302_v63 = vpop.permute.xlu0 %301 }
 0x51e   :  { %v1346_v0 = vmul.f32 %v1174_v56, %v302_v63 }
 0x520   :  { %307 = vrot.lane.b32.xlu1 %v1346_v0, %s1229_s2 }
 0x592   :  { %v308_v1 = vpop.permute.xlu1 %307 }
 0x593   :  { %1051 = vmatmul.mubr.msk.f32.vlgmr.msra.gmra.mrb[2].mxu1 %vm40_vm1, %v308_v1 }
 0x594   :  { %1134 = vmatpush3.bf16.msra.mxu1 %v1300_v17  ;;  %1072 = vmatprep.mubr.msk.f32.mxu1 %vm1226_vm0, %v1227_v4 }
 0x595   :  { %1135 = vmatprep.subr.bf16.mxu1 %v1225_v3 }
 0x598   :  { %1137 = vmatpush3.bf16.msra.mxu1 %v1303_v18 }
 0x599   :  { %1144 = vmatprep.subr.bf16.mxu1 %v1225_v3 }
 0x666   :  { %v377_v5 = vpop.f32.mrb[2].mxu1 }
 0x667   :  { %v381_v6 = vadd.f32 %v377_v5, %v305_v2  ;;  %v1052_v7 = vpop.f32.mrb[3].mxu1 }
 0x669   :  { %1177 = vtanh.f32 %v381_v6  ;;  %v957_v9 = vmul.f32 -1.442695, %v381_v6 }
 0x66b   :  { %1179 = vpow2.f32 %v957_v9 }
 0x673   :  { %v1178_v8 = vpop.eup %1177 }
 0x674   :  { %391 = vrot.lane.b32.xlu0 %v1178_v8, %s1228_s17 }
 0x675   :  { %v1180_v10 = vpop.eup %1179 }
 0x676   :  { %v385_v11 = vadd.f32 1.0, %v1180_v10 }
 0x678   :  { %1181 = vrcp.f32 %v385_v11 }
 0x682   :  { %v1182_v12 = vpop.eup %1181 }
 0x683   :  { %v389_v15 = vmul.f32 %v1182_v12, %v298_v61  ;;  %v608_v61 = vld [vmem:[#allocation2 + $0x14] sm:$0xf] }
 0x6e6   :  { %v392_v13 = vpop.permute.xlu0 %391 }
 0x6e7   :  { %v394_v14 = vmul.f32 %v1182_v12, %v392_v13 }
 0x6e9   :  { %396 = vrot.lane.b32.xlu1 %v394_v14, %s1229_s2  ;;  %v709_v14 = vld [vmem:[#allocation2 + $0x18] sm:$0xf] }
 0x75b   :  { %v397_v16 = vpop.permute.xlu1 %396 }
 0x75c   :  { %v399_v19 = vadd.f32 %v397_v16, %v389_v15 }
 0x75e   :  { %1183 = vtanh.f32 %v399_v19 }
 0x768   :  { %v1184_v20 = vpop.eup %1183 }
 0x769   :  { %402 = vrot.lane.b32.xlu0 %v1184_v20, %s1228_s17 }
 0x7db   :  { %v403_v21 = vpop.permute.xlu0 %402 }
 0x7dc   :  { %v1360_v22 = vmul.f32 %v1182_v12, %v403_v21 }
 0x7de   :  { %408 = vrot.lane.b32.xlu1 %v1360_v22, %s1229_s2 }
 0x850   :  { %v409_v23 = vpop.permute.xlu1 %408 }
 0x851   :  { %1062 = vmatmul.mubr.msk.f32.vlgmr.msra.gmra.mrb[6].mxu0 %vm40_vm1, %v409_v23 }
 0x852   :  { %1140 = vmatpush3.bf16.msra.mxu0 %v1300_v17  ;;  %1083 = vmatprep.mubr.msk.f32.mxu0 %vm1226_vm0, %v1227_v4 }
 0x853   :  { %1141 = vmatprep.subr.bf16.mxu0 %v1225_v3 }
 0x856   :  { %1143 = vmatpush3.bf16.msra.mxu0 %v1303_v18 }
 0x857   :  { %1150 = vmatprep.subr.bf16.mxu0 %v1225_v3 }
 0x924   :  { %v478_v25 = vpop.f32.mrb[6].mxu0 }
 0x925   :  { %v482_v26 = vadd.f32 %v478_v25, %v406_v24  ;;  %v1063_v27 = vpop.f32.mrb[7].mxu0 }
 0x927   :  { %1185 = vtanh.f32 %v482_v26  ;;  %v959_v29 = vmul.f32 -1.442695, %v482_v26 }
 0x929   :  { %1187 = vpow2.f32 %v959_v29 }
 0x931   :  { %v1186_v28 = vpop.eup %1185 }
 0x932   :  { %492 = vrot.lane.b32.xlu0 %v1186_v28, %s1228_s17 }
 0x933   :  { %v1188_v30 = vpop.eup %1187 }
 0x934   :  { %v486_v31 = vadd.f32 1.0, %v1188_v30 }
 0x936   :  { %1189 = vrcp.f32 %v486_v31 }
 0x940   :  { %v1190_v32 = vpop.eup %1189 }
 0x941   :  { %v490_v35 = vmul.f32 %v1190_v32, %v399_v19 }
 0x9a4   :  { %v493_v33 = vpop.permute.xlu0 %492 }
 0x9a5   :  { %v495_v34 = vmul.f32 %v1190_v32, %v493_v33 }
 0x9a7   :  { %497 = vrot.lane.b32.xlu1 %v495_v34, %s1229_s2 }
 0xa19   :  { %v498_v36 = vpop.permute.xlu1 %497 }
 0xa1a   :  { %v500_v37 = vadd.f32 %v498_v36, %v490_v35  ;;  %v810_v35 = vld [vmem:[#allocation2 + $0x1c] sm:$0xf] }
 0xa1c   :  { %1191 = vtanh.f32 %v500_v37 }
 0xa26   :  { %v1192_v38 = vpop.eup %1191 }
 0xa27   :  { %503 = vrot.lane.b32.xlu0 %v1192_v38, %s1228_s17 }
 0xa99   :  { %v504_v39 = vpop.permute.xlu0 %503 }
 0xa9a   :  { %v1374_v40 = vmul.f32 %v1190_v32, %v504_v39 }
 0xa9c   :  { %509 = vrot.lane.b32.xlu1 %v1374_v40, %s1229_s2 }
 0xb0e   :  { %v510_v41 = vpop.permute.xlu1 %509 }
 0xb0f   :  { %1073 = vmatmul.mubr.msk.f32.vlgmr.msra.gmra.mrb[4].mxu1 %vm40_vm1, %v510_v41 }
 0xb10   :  { %1146 = vmatpush3.bf16.msra.mxu1 %v1300_v17  ;;  %1094 = vmatprep.mubr.msk.f32.mxu1 %vm1226_vm0, %v1227_v4 }
 0xb11   :  { %1147 = vmatprep.subr.bf16.mxu1 %v1225_v3 }
 0xb14   :  { %1149 = vmatpush3.bf16.msra.mxu1 %v1303_v18 }
 0xbe2   :  { %v579_v43 = vpop.f32.mrb[4].mxu1 }
 0xbe3   :  { %v583_v44 = vadd.f32 %v579_v43, %v507_v42  ;;  %v1074_v45 = vpop.f32.mrb[5].mxu1 }
 0xbe5   :  { %1193 = vtanh.f32 %v583_v44  ;;  %v961_v48 = vmul.f32 -1.442695, %v583_v44 }
 0xbe7   :  { %1195 = vpow2.f32 %v961_v48  ;;  %v911_v48 = vrot.slane %v1346_v0, 4 }
 0xbef   :  { %v1194_v47 = vpop.eup %1193 }
 0xbf0   :  { %593 = vrot.lane.b32.xlu0 %v1194_v47, %s1228_s17 }
 0xbf1   :  { %v1196_v49 = vpop.eup %1195 }
 0xbf2   :  { %v587_v50 = vadd.f32 1.0, %v1196_v49 }
 0xbf4   :  { %1197 = vrcp.f32 %v587_v50  ;;  %v921_v50 = vsel %vm920_vm2, %v1332_v46, %v911_v48 }
 0xbfe   :  { %v1198_v51 = vpop.eup %1197 }
 0xbff   :  { %v591_v54 = vmul.f32 %v1198_v51, %v500_v37 }
 0xc62   :  { %v594_v52 = vpop.permute.xlu0 %593 }
 0xc63   :  { %v596_v53 = vmul.f32 %v1198_v51, %v594_v52 }
 0xc65   :  { %598 = vrot.lane.b32.xlu1 %v596_v53, %s1229_s2 }
 0xcd7   :  { %v599_v55 = vpop.permute.xlu1 %598 }
 0xcd8   :  { %v601_v56 = vadd.f32 %v599_v55, %v591_v54 }
 0xcda   :  { %1199 = vtanh.f32 %v601_v56 }
 0xce4   :  { %v1200_v57 = vpop.eup %1199 }
 0xce5   :  { %604 = vrot.lane.b32.xlu0 %v1200_v57, %s1228_s17 }
 0xd57   :  { %v605_v58 = vpop.permute.xlu0 %604 }
 0xd58   :  { %v1387_v59 = vmul.f32 %v1198_v51, %v605_v58 }
 0xd5a   :  { %610 = vrot.lane.b32.xlu1 %v1387_v59, %s1229_s2 }
 0xdcc   :  { %v611_v60 = vpop.permute.xlu1 %610 }
 0xdcd   :  { %1084 = vmatmul.mubr.msk.f32.vlgmr.msra.gmra.mrb[8].mxu0 %vm40_vm1, %v611_v60 }
 0xdce   :  { %1152 = vmatpush3.bf16.msra.mxu0 %v1300_v17  ;;  %1105 = vmatprep.mubr.msk.f32.mxu0 %vm1226_vm0, %v1227_v4 }
 0xdcf   :  { %1153 = vmatprep.subr.bf16.mxu0 %v1225_v3 }
 0xdd2   :  { %1155 = vmatpush3.bf16.msra.mxu0 %v1303_v18 }
 0xea0   :  { %v680_v62 = vpop.f32.mrb[8].mxu0 }
 0xea1   :  { %v684_v63 = vadd.f32 %v680_v62, %v608_v61  ;;  %v1085_v1 = vpop.f32.mrb[9].mxu0 }
 0xea3   :  { %1201 = vtanh.f32 %v684_v63  ;;  %v963_v5 = vmul.f32 -1.442695, %v684_v63 }
 0xea5   :  { %1203 = vpow2.f32 %v963_v5 }
 0xead   :  { %v1202_v2 = vpop.eup %1201 }
 0xeae   :  { %694 = vrot.lane.b32.xlu0 %v1202_v2, %s1228_s17 }
 0xeaf   :  { %v1204_v6 = vpop.eup %1203 }
 0xeb0   :  { %v688_v7 = vadd.f32 1.0, %v1204_v6 }
 0xeb2   :  { %1205 = vrcp.f32 %v688_v7 }
 0xebc   :  { %v1206_v17 = vpop.eup %1205 }
 0xebd   :  { %v692_v3 = vmul.f32 %v1206_v17, %v601_v56  ;;  %v913_v56 = vrot.slane %v1374_v40, 4 }
 0xebf   :  { %v922_v57 = vsel %vm920_vm2, %v1360_v22, %v913_v56 }
 0xf20   :  { %v695_v8 = vpop.permute.xlu0 %694 }
 0xf21   :  { %v697_v4 = vmul.f32 %v1206_v17, %v695_v8 }
 0xf23   :  { %699 = vrot.lane.b32.xlu1 %v697_v4, %s1229_s2 }
 0xf95   :  { %v700_v18 = vpop.permute.xlu1 %699 }
 0xf96   :  { %v702_v9 = vadd.f32 %v700_v18, %v692_v3 }
 0xf98   :  { %1207 = vtanh.f32 %v702_v9 }
 0xfa2   :  { %v1208_v10 = vpop.eup %1207 }
 0xfa3   :  { %705 = vrot.lane.b32.xlu0 %v1208_v10, %s1228_s17 }
0x1015   :  { %v706_v11 = vpop.permute.xlu0 %705 }
0x1016   :  { %v708_v12 = vmul.f32 %v1206_v17, %v706_v11 }
0x1018   :  { %711 = vrot.lane.b32.xlu1 %v708_v12, %s1229_s2  ;;  %v915_v49 = vrot.slane %v708_v12, 4 }
0x101a   :  { %v923_v51 = vsel %vm920_vm2, %v1387_v59, %v915_v49 }
0x108a   :  { %v712_v13 = vpop.permute.xlu1 %711 }
0x108b   :  { %1095 = vmatmul.mubr.msk.f32.vlgmr.msra.gmra.mrb[6].mxu1 %vm40_vm1, %v712_v13 }
0x115e   :  { %v781_v15 = vpop.f32.mrb[6].mxu1 }
0x115f   :  { %v785_v16 = vadd.f32 %v781_v15, %v709_v14  ;;  %v1096_v19 = vpop.f32.mrb[7].mxu1 }
0x1161   :  { %1209 = vtanh.f32 %v785_v16  ;;  %v965_v21 = vmul.f32 -1.442695, %v785_v16 }
0x1163   :  { %1211 = vpow2.f32 %v965_v21 }
0x116b   :  { %v1210_v20 = vpop.eup %1209 }
0x116c   :  { %795 = vrot.lane.b32.xlu0 %v1210_v20, %s1228_s17 }
0x116d   :  { %v1212_v23 = vpop.eup %1211 }
0x116e   :  { %v789_v24 = vadd.f32 1.0, %v1212_v23 }
0x1170   :  { %1213 = vrcp.f32 %v789_v24 }
0x117a   :  { %v1214_v25 = vpop.eup %1213 }
0x117b   :  { %v793_v28 = vmul.f32 %v1214_v25, %v702_v9 }
0x11de   :  { %v796_v26 = vpop.permute.xlu0 %795 }
0x11df   :  { %v798_v27 = vmul.f32 %v1214_v25, %v796_v26 }
0x11e1   :  { %800 = vrot.lane.b32.xlu1 %v798_v27, %s1229_s2 }
0x1253   :  { %v801_v29 = vpop.permute.xlu1 %800 }
0x1254   :  { %v803_v30 = vadd.f32 %v801_v29, %v793_v28 }
0x1256   :  { %1215 = vtanh.f32 %v803_v30 }
0x1260   :  { %v1216_v31 = vpop.eup %1215 }
0x1261   :  { %806 = vrot.lane.b32.xlu0 %v1216_v31, %s1228_s17 }
0x12d3   :  { %v807_v32 = vpop.permute.xlu0 %806 }
0x12d4   :  { %v809_v33 = vmul.f32 %v1214_v25, %v807_v32 }
0x12d6   :  { %812 = vrot.lane.b32.xlu1 %v809_v33, %s1229_s2 }
0x1348   :  { %v813_v34 = vpop.permute.xlu1 %812 }
0x1349   :  { %1106 = vmatmul.mubr.msk.f32.vlgmr.msra.gmra.mrb[10].mxu0 %vm40_vm1, %v813_v34 }
0x141c   :  { %v882_v36 = vpop.f32.mrb[10].mxu0 }
0x141d   :  { %v886_v37 = vadd.f32 %v882_v36, %v810_v35  ;;  %v1107_v38 = vpop.f32.mrb[11].mxu0 }
0x141f   :  { %1217 = vtanh.f32 %v886_v37  ;;  %v967_v41 = vmul.f32 -1.442695, %v886_v37 }
0x1421   :  { %1219 = vpow2.f32 %v967_v41 }
0x1429   :  { %v1218_v39 = vpop.eup %1217 }
0x142a   :  { %896 = vrot.lane.b32.xlu0 %v1218_v39, %s1228_s17 }
0x142b   :  { %v1220_v42 = vpop.eup %1219 }
0x142c   :  { %v890_v43 = vadd.f32 1.0, %v1220_v42 }
0x142e   :  { %1221 = vrcp.f32 %v890_v43 }
0x1438   :  { %v1222_v44 = vpop.eup %1221 }
0x1439   :  { %v894_v52 = vmul.f32 %v1222_v44, %v803_v30 }
0x149c   :  { %v897_v45 = vpop.permute.xlu0 %896 }
0x149d   :  { %v899_v47 = vmul.f32 %v1222_v44, %v897_v45 }
0x149f   :  { %901 = vrot.lane.b32.xlu1 %v899_v47, %s1229_s2 }
0x14a3   :  { %929 = vrot.lane.b32.xlu1 %v921_v50, %s1229_s2 }
0x14a7   :  { %933 = vrot.lane.b32.xlu1 %v923_v51, %s1229_s2 }
0x1511   :  { %v902_v53 = vpop.permute.xlu1 %901 }
0x1512   :  { %v904_v54 = vadd.f32 %v902_v53, %v894_v52 }
0x1514   :  { %1223 = vtanh.f32 %v904_v54 }
0x1515   :  { %v930_v55 = vpop.permute.xlu1 %929 }
0x1516   :  { %941 = vst.msk [vmem:[%s1444_s5] sm:$0xff] %vm40_vm1, %v930_v55 }
0x1519   :  { %v934_v0 = vpop.permute.xlu1 %933 }
0x151a   :  { %943 = vst.msk [vmem:[%s1444_s5 + $0x10] sm:$0xff] %vm40_vm1, %v934_v0 }
0x151e   :  { %v1224_v46 = vpop.eup %1223 }
0x151f   :  { %907 = vrot.lane.b32.xlu0 %v1224_v46, %s1228_s17 }
0x1523   :  { %931 = vrot.lane.b32.xlu0 %v922_v57, %s1229_s2 }
0x1591   :  { %v908_v58 = vpop.permute.xlu0 %907 }
0x1592   :  { %v910_v59 = vmul.f32 %v1222_v44, %v908_v58 }
0x1594   :  { %v918_v60 = vrot.slane %v910_v59, 4 }
0x1595   :  { %v932_v61 = vpop.permute.xlu0 %931 }
0x1596   :  { %942 = vst.msk [vmem:[%s1444_s5 + $0x8] sm:$0xff] %vm40_vm1, %v932_v61  ;;  %v924_v62 = vsel %vm920_vm2, %v809_v33, %v918_v60 }
0x1597   :  { %935 = vrot.lane.b32.xlu0 %v924_v62, %s1229_s2 }
0x1609   :  { %v936_v40 = vpop.permute.xlu0 %935 }
0x160a   :  { %944 = vst.msk [vmem:[%s1444_s5 + $0x18] sm:$0xff] %vm40_vm1, %v936_v40 }

// kernel: rnnvae_forward.3
= control target key start
LH: loop header
LB: loop body
LE: loop exit
PB: predicated region body
PF: predicated region fallthrough
CT: control target
= control target key end

     0   :  { %s2273_s0 = inlined_call_operand.vmem [shape: f32[32,32], index: 0, kind: input, shape index: {}]   ;;  %s2274_s1 = inlined_call_operand.vmem [shape: f32[32,32], index: 1, kind: input, shape index: {}]   ;;  %s2275_s2 = inlined_call_operand.vmem [shape: f32[32,128], index: 2, kind: input, shape index: {}]   ;;  %s2276_s3 = inlined_call_operand.vmem [shape: f32[1,128], index: 3, kind: input, shape index: {}]   ;;  %s2277_s4 = inlined_call_operand.vmem [shape: f32[32,128], index: 4, kind: input, shape index: {}]   ;;  %s2278_s5 = inlined_call_operand.vmem [shape: f32[1,128], index: 5, kind: input, shape index: {}]   ;;  %s2279_s6 = inlined_call_operand.vmem [shape: f32[32,256], index: 6, kind: input, shape index: {}]   ;;  %s2280_s7 = inlined_call_operand.vmem [shape: f32[3,4,16], index: 7, kind: input, shape index: {}]   ;;  %s2281_s8 = inlined_call_operand.vmem [shape: f32[128,32], index: 8, kind: input, shape index: {}]   ;;  %s2282_s9 = inlined_call_operand.vmem [shape: f32[1,32], index: 9, kind: input, shape index: {}]   ;;  %s2283_s10 = inlined_call_operand.vmem [shape: f32[32,32], index: 10, kind: input, shape index: {}]   ;;  %s2284_s11 = inlined_call_operand.vmem [shape: f32[1,32], index: 11, kind: input, shape index: {}]   ;;  %s2285_s12 = inlined_call_operand.vmem [shape: f32[16,64], index: 12, kind: input, shape index: {}]   ;;  %s2286_s13 = inlined_call_operand.vmem [shape: f32[1,64], index: 13, kind: input, shape index: {}]   ;;  %s2287_s14 = inlined_call_operand.hbm [shape: f32[4,16], index: 14, kind: output, shape index: {0}]   ;;  %s2288_s15 = inlined_call_operand.hbm [shape: f32[4,16], index: 15, kind: output, shape index: {1}]   ;;  %s2289_s16 = inlined_call_operand.vmem [shape: f32[4,1], index: 16, kind: output, shape index: {2}]   ;;  %s2290_s17 = inlined_call_operand.vmem [shape: f32[3,4,16], index: 17, kind: output, shape index: {3}]   ;;  %s2291_s18 = inlined_call_operand.vmem [shape: f32[4,64], index: 18, kind: output, shape index: {4}]  }
   0x1   :  { %2295 = sst [smem:[#allocation10_spill]] %s2273_s0 }
   0x2   :  { %2296 = sst [smem:[#allocation11_spill]] %s2274_s1 }
   0x3   :  { %2297 = sst [smem:[#allocation12_spill]] %s2275_s2 }
   0x4   :  { %24 = vsyncpa [#allocation5], 0  ;;  %s2298_s29 = sld [smem:[#allocation12_spill]]  ;;  %s2299_s23 = sld [smem:[#allocation10_spill]]  ;;  %vm74_vm0 = vcmask 261120   ;;  %v1819_v7 = vmov 0.0  }
   0x5   :  { %297 = vmatprep.mubr.f32.mxu0 %v1819_v7  ;;  %v140_v10 = vld [vmem:[%s2277_s4] sm:$0xff]  ;;  %v141_v13 = vld [vmem:[%s2277_s4 + $0x8] sm:$0xff]  ;;  %v142_v14 = vld [vmem:[%s2277_s4 + $0x10] sm:$0xff]  ;;  %s2300_s26 = sld [smem:[#allocation11_spill]] }
   0x6   :  { %v143_v15 = vld [vmem:[%s2277_s4 + $0x18] sm:$0xff]  ;;  %v144_v17 = vpack.c.bf16 %v141_v13, %v140_v10  ;;  %v213_v19 = vld [vmem:[%s2279_s6 + $0x8] sm:$0xff]  ;;  %v212_v22 = vld [vmem:[%s2279_s6] sm:$0xff] }
   0x7   :  { %v215_v20 = vld [vmem:[%s2279_s6 + $0x18] sm:$0xff]  ;;  %v214_v23 = vld [vmem:[%s2279_s6 + $0x10] sm:$0xff]  ;;  %v217_v24 = vld [vmem:[%s2279_s6 + $0x28] sm:$0xff] }
   0x8   :  { %v1973_v21 = vpack.c.bf16 %v215_v20, %v213_v19  ;;  %v1984_v26 = vpack.c.bf16 %v214_v23, %v212_v22  ;;  %v219_v27 = vld [vmem:[%s2279_s6 + $0x38] sm:$0xff]  ;;  %v216_v28 = vld [vmem:[%s2279_s6 + $0x20] sm:$0xff]  ;;  %v218_v29 = vld [vmem:[%s2279_s6 + $0x30] sm:$0xff] }
   0x9   :  { %v1996_v31 = vpack.c.bf16 %v219_v27, %v217_v24 }
   0xa   :  { %v61_v0 = vld [vmem:[%s2298_s29] sm:$0xff]  ;;  %v62_v1 = vld [vmem:[%s2298_s29 + $0x8] sm:$0xff]  ;;  %v63_v2 = vld [vmem:[%s2298_s29 + $0x10] sm:$0xff]  ;;  %1593 = vmatprep.subr.bf16.mxu0 %v1973_v21 }
   0xb   :  { %v65_v3 = vpack.c.bf16 %v62_v1, %v61_v0  ;;  %v64_v4 = vld [vmem:[%s2298_s29 + $0x18] sm:$0xff]  ;;  %v55_v5 = vld [vmem:[%s2299_s23] sm:$0xff]  ;;  %v56_v6 = vld [vmem:[%s2299_s23 + $0x8] sm:$0xff] }
   0xc   :  { %v66_v8 = vpack.c.bf16 %v64_v4, %v63_v2  ;;  %v59_v9 = vpack.c.bf16 %v56_v6, %v55_v5  ;;  %v57_v11 = vld [vmem:[%s2299_s23 + $0x10] sm:$0xff]  ;;  %v58_v12 = vld [vmem:[%s2299_s23 + $0x18] sm:$0xff]  ;;  %v134_v16 = vld [vmem:[%s2300_s26] sm:$0xff] }
   0xd   :  { %1523 = vmatprep.subr.bf16.mxu1 %v65_v3  ;;  %v135_v18 = vld [vmem:[%s2300_s26 + $0x8] sm:$0xff]  ;;  %v60_v25 = vpack.c.bf16 %v58_v12, %v57_v11 }
   0xe   :  { %1524 = vmatpush3.bf16.msra.mxu1 %v65_v3  ;;  %1527 = vmatprep.mubr.msk.bf16.mxu1 %vm74_vm0, %v59_v9  ;;  %v138_v30 = vpack.c.bf16 %v135_v18, %v134_v16 }
   0xf   :  { %1525 = vmatprep.subr.bf16.mxu1 %v66_v8 }
  0x12   :  { %1526 = vmatpush3.bf16.msra.mxu1 %v66_v8 }
  0x13   :  { %25 = vsyncpa [#allocation7], 0  ;;  %1531 = vmatprep.subr.bf16.mxu1 %v144_v17  ;;  %v145_v32 = vpack.c.bf16 %v143_v15, %v142_v14  ;;  %1595 = vmatpush1.bf16.msra.mxu0 %v1984_v26  ;;  %v1999_v33 = vpack.c.bf16 %v218_v29, %v216_v28  ;;  %v136_v34 = vld [vmem:[%s2300_s26 + $0x10] sm:$0xff]  ;;  %v137_v35 = vld [vmem:[%s2300_s26 + $0x18] sm:$0xff]  ;;  %v220_v37 = vlaneseq  ;;  %vm228_vm2 = vcmask 1043456   ;;  %s1826_s22 = smov [#allocation4]  }
  0x14   :  { %1597 = vmatprep.subr.bf16.mxu0 %v1996_v31  ;;  %v139_v36 = vpack.c.bf16 %v137_v35, %v136_v34  ;;  %v1464_v38 = vld [vmem:[%s2276_s3] ss:$0 sm:$0xff]  ;;  %s1820_s3 = smov 64   ;;  %vm1823_vm3 = vmmov 0   ;;  %vm1105_vm4 = vcmask 523264   ;;  %vm1107_vm5 = vcmask 785408  }
  0x15   :  { %1528 = vmatmul.mubr.msk.bf16.vlgmr.msra.gmra.mrb[0].mxu1 %vm74_vm0, %v60_v25  ;;  %v2028_v40 = vshrl.u32 %v220_v37, 7  ;;  %v1467_v49 = vld [vmem:[%s2278_s5] ss:$0 sm:$0xff]  ;;  %s1821_s5 = smov 32   ;;  %vm1286_vm6 = vcmask 125952   ;;  %vm1348_vm7 = vcmask 130048  }
  0x16   :  { %1532 = vmatpush3.bf16.msra.mxu1 %v144_v17  ;;  %1535 = vmatprep.mubr.msk.bf16.mxu1 %vm74_vm0, %v138_v30 }
  0x17   :  { %1533 = vmatprep.subr.bf16.mxu1 %v145_v32  ;;  %1599 = vmatpush1.bf16.msra.mxu0 %v1999_v33  ;;  %vm222_vm1 = vcmp.lt.s32.totalorder %v2028_v40, 4  ;;  %v1109_v40 = vld [vmem:[%s2281_s8] sm:$0xff] }
  0x18   :  { %1609 = vmatprep.subr.bf16.mxu0 %v1973_v21 }
  0x1a   :  { %1534 = vmatpush3.bf16.msra.mxu1 %v145_v32  ;;  %298 = vmatmul.mubr.f32.vlgmr.msra.gmra.mrb[0].mxu0 %v1819_v7 }
  0x1b   :  { %1601 = vmatprep.subr.bf16.mxu1 %v1973_v21  ;;  %1611 = vmatpush1.bf16.msra.mxu0 %v1984_v26 }
  0x1c   :  { %1613 = vmatprep.subr.bf16.mxu0 %v1996_v31  ;;  %515 = vmatprep.mubr.f32.mxu0 %v1819_v7 }
  0x1d   :  { %1536 = vmatmul.mubr.msk.bf16.vlgmr.msra.gmra.mrb[4].mxu1 %vm74_vm0, %v139_v36 }
  0x1e   :  { %1603 = vmatpush1.bf16.msra.mxu1 %v1984_v26  ;;  %407 = vmatprep.mubr.f32.mxu1 %v1819_v7 }
  0x1f   :  { %1605 = vmatprep.subr.bf16.mxu1 %v1996_v31  ;;  %1615 = vmatpush1.bf16.msra.mxu0 %v1999_v33 }
  0x20   :  { %1625 = vmatprep.subr.bf16.mxu0 %v1973_v21 }
  0x22   :  { %1607 = vmatpush1.bf16.msra.mxu1 %v1999_v33 }
  0x23   :  { %1617 = vmatprep.subr.bf16.mxu1 %v1973_v21 }
  0xe8   :  { %v1529_v39 = vpop.f32.mrb[0].mxu1 }
  0xe9   :  { %v124_v41 = vadd.f32 %v1529_v39, %v1464_v38  ;;  %v115_v42 = vpop.f32.mrb[1].mxu1 }
  0xea   :  { %v116_v43 = vadd.f32 %v1464_v38, %v115_v42  ;;  %v1530_v44 = vpop.f32.mrb[2].mxu1 }
  0xeb   :  { %132 = vst [vmem:[#allocation2 + $0x10] sm:$0xff] %v124_v41  ;;  %v127_v45 = vadd.f32 %v1530_v44, %v1464_v38  ;;  %v118_v46 = vpop.f32.mrb[3].mxu1 }
  0xec   :  { %130 = vst [vmem:[#allocation2] sm:$0xff] %v116_v43  ;;  %v119_v47 = vadd.f32 %v1464_v38, %v118_v46 }
  0xed   :  { %133 = vst [vmem:[#allocation2 + $0x18] sm:$0xff] %v127_v45  ;;  %v299_v48 = vpop.f32.mrb[0].mxu0 }
  0xee   :  { %131 = vst [vmem:[#allocation2 + $0x8] sm:$0xff] %v119_v47  ;;  %v301_v50 = vpop.f32.mrb[1].mxu0 }
  0xef   :  { %v306_v51 = vsel %vm222_vm1, %v299_v48, %v301_v50 }
  0xf0   :  { %v1537_v52 = vpop.f32.mrb[4].mxu1 }
  0xf1   :  { %v202_v53 = vadd.f32 %v1537_v52, %v1467_v49  ;;  %v193_v54 = vpop.f32.mrb[5].mxu1 }
  0xf2   :  { %v194_v55 = vadd.f32 %v1467_v49, %v193_v54  ;;  %v1538_v56 = vpop.f32.mrb[6].mxu1 }
  0xf3   :  { %210 = vst [vmem:[#allocation3 + $0x10] sm:$0xff] %v202_v53  ;;  %v205_v57 = vadd.f32 %v1538_v56, %v1467_v49  ;;  %v196_v58 = vpop.f32.mrb[7].mxu1  ;;  %v223_v62 = vld [vmem:[#allocation2] sm:$0xf]  ;;  %v332_v19 = vld [vmem:[#allocation2 + $0x4] sm:$0xf] }
  0xf4   :  { %208 = vst [vmem:[#allocation3] sm:$0xff] %v194_v55  ;;  %v197_v59 = vadd.f32 %v1467_v49, %v196_v58 }
  0xf5   :  { %211 = vst [vmem:[#allocation3 + $0x18] sm:$0xff] %v205_v57  ;;  %v440_v46 = vld [vmem:[#allocation2 + $0x8] sm:$0xf] }
  0xf6   :  { %209 = vst [vmem:[#allocation3 + $0x8] sm:$0xff] %v197_v59 }
  0xfb   :  { %v224_v60 = vld [vmem:[#allocation3] sm:$0xf]  ;;  %v333_v16 = vld [vmem:[#allocation3 + $0x4] sm:$0xf] }
  0xfc   :  { %v226_v61 = vrot.slane %v224_v60, 4  ;;  %v335_v17 = vrot.slane %v333_v16, 4 }
  0xfd   :  { %v441_v43 = vld [vmem:[#allocation3 + $0x8] sm:$0xf] }
  0xfe   :  { %v229_v63 = vsel %vm228_vm2, %v223_v62, %v226_v61  ;;  %v337_v22 = vsel %vm228_vm2, %v332_v19, %v335_v17  ;;  %v443_v44 = vrot.slane %v441_v43, 4 }
  0xff   :  { %v307_v0 = vadd.f32 %v306_v51, %v229_v63 }
 0x100   :  { %v445_v48 = vsel %vm228_vm2, %v440_v46, %v443_v44 }
 0x101   :  { %1703 = vtanh.f32 %v307_v0  ;;  %v1470_v2 = vmul.f32 -1.442695, %v307_v0 }
 0x103   :  { %1705 = vpow2.f32 %v1470_v2 }
 0x10b   :  { %v1704_v1 = vpop.eup %1703 }
 0x10c   :  { %317 = vrot.lane.b32.xlu0 %v1704_v1, %s1820_s3  ;;  %v549_v1 = vld [vmem:[#allocation3 + $0xc] sm:$0xf] }
 0x10d   :  { %v1706_v3 = vpop.eup %1705  ;;  %v551_v2 = vrot.slane %v549_v1, 4 }
 0x10e   :  { %v311_v4 = vadd.f32 1.0, %v1706_v3 }
 0x110   :  { %1707 = vrcp.f32 %v311_v4  ;;  %v548_v4 = vld [vmem:[#allocation2 + $0xc] sm:$0xf] }
 0x11a   :  { %v1708_v5 = vpop.eup %1707 }
 0x11b   :  { %v315_v9 = vmul.f32 0.0, %v1708_v5 }
 0x17e   :  { %v318_v6 = vpop.permute.xlu0 %317 }
 0x17f   :  { %v320_v8 = vmul.f32 %v1708_v5, %v318_v6  ;;  %v553_v6 = vsel %vm228_vm2, %v548_v4, %v551_v2 }
 0x181   :  { %322 = vrot.lane.b32.xlu0 %v320_v8, %s1821_s5 }
 0x1f3   :  { %v323_v10 = vpop.permute.xlu0 %322 }
 0x1f4   :  { %v325_v11 = vadd.f32 %v323_v10, %v315_v9 }
 0x1f6   :  { %1709 = vtanh.f32 %v325_v11 }
 0x200   :  { %v1710_v12 = vpop.eup %1709 }
 0x201   :  { %328 = vrot.lane.b32.xlu1 %v1710_v12, %s1820_s3 }
 0x273   :  { %v329_v13 = vpop.permute.xlu1 %328 }
 0x274   :  { %v331_v14 = vmul.f32 %v1708_v5, %v329_v13 }
 0x276   :  { %339 = vrot.lane.b32.xlu1 %v331_v14, %s1821_s5 }
 0x2e8   :  { %v340_v15 = vpop.permute.xlu1 %339 }
 0x2e9   :  { %1471 = vmatmul.mubr.msk.f32.vlgmr.msra.gmra.mrb[8].mxu1 %vm74_vm0, %v340_v15 }
 0x2ea   :  { %1619 = vmatpush1.bf16.msra.mxu1 %v1984_v26  ;;  %623 = vmatprep.mubr.f32.mxu1 %v1819_v7 }
 0x2eb   :  { %1621 = vmatprep.subr.bf16.mxu1 %v1996_v31 }
 0x2ee   :  { %1623 = vmatpush1.bf16.msra.mxu1 %v1999_v33 }
 0x2ef   :  { %1633 = vmatprep.subr.bf16.mxu1 %v1973_v21 }
 0x3bc   :  { %v409_v18 = vpop.f32.mrb[8].mxu1 }
 0x3bd   :  { %v411_v20 = vpop.f32.mrb[9].mxu1 }
 0x3be   :  { %v414_v23 = vsel %vm222_vm1, %v409_v18, %v411_v20 }
 0x3bf   :  { %v415_v24 = vadd.f32 %v414_v23, %v337_v22 }
 0x3c1   :  { %1711 = vtanh.f32 %v415_v24  ;;  %v1472_v27 = vmul.f32 -1.442695, %v415_v24  ;;  %v657_v24 = vld [vmem:[#allocation3 + $0x10] sm:$0xf] }
 0x3c3   :  { %1713 = vpow2.f32 %v1472_v27 }
 0x3cb   :  { %v1712_v25 = vpop.eup %1711 }
 0x3cc   :  { %425 = vrot.lane.b32.xlu0 %v1712_v25, %s1820_s3  ;;  %v659_v25 = vrot.slane %v657_v24, 4 }
 0x3cd   :  { %v1714_v28 = vpop.eup %1713 }
 0x3ce   :  { %v419_v29 = vadd.f32 1.0, %v1714_v28  ;;  %v656_v28 = vld [vmem:[#allocation2 + $0x10] sm:$0xf] }
 0x3d0   :  { %1715 = vrcp.f32 %v419_v29 }
 0x3da   :  { %v1716_v30 = vpop.eup %1715 }
 0x3db   :  { %v423_v35 = vmul.f32 %v1716_v30, %v325_v11 }
 0x43e   :  { %v426_v32 = vpop.permute.xlu0 %425 }
 0x43f   :  { %v428_v34 = vmul.f32 %v1716_v30, %v426_v32 }
 0x441   :  { %430 = vrot.lane.b32.xlu1 %v428_v34, %s1821_s5 }
 0x4b3   :  { %v431_v36 = vpop.permute.xlu1 %430 }
 0x4b4   :  { %v433_v37 = vadd.f32 %v431_v36, %v423_v35 }
 0x4b6   :  { %1717 = vtanh.f32 %v433_v37 }
 0x4c0   :  { %v1718_v38 = vpop.eup %1717 }
 0x4c1   :  { %436 = vrot.lane.b32.xlu0 %v1718_v38, %s1820_s3 }
 0x533   :  { %v437_v39 = vpop.permute.xlu0 %436 }
 0x534   :  { %v439_v41 = vmul.f32 %v1716_v30, %v437_v39  ;;  %v661_v30 = vsel %vm228_vm2, %v656_v28, %v659_v25 }
 0x536   :  { %447 = vrot.lane.b32.xlu1 %v439_v41, %s1821_s5 }
 0x5a8   :  { %v448_v42 = vpop.permute.xlu1 %447 }
 0x5a9   :  { %1473 = vmatmul.mubr.msk.f32.vlgmr.msra.gmra.mrb[2].mxu0 %vm74_vm0, %v448_v42 }
 0x5aa   :  { %1627 = vmatpush1.bf16.msra.mxu0 %v1984_v26  ;;  %731 = vmatprep.mubr.f32.mxu0 %v1819_v7 }
 0x5ab   :  { %1629 = vmatprep.subr.bf16.mxu0 %v1996_v31 }
 0x5ae   :  { %1631 = vmatpush1.bf16.msra.mxu0 %v1999_v33 }
 0x5af   :  { %1641 = vmatprep.subr.bf16.mxu0 %v1973_v21 }
 0x67c   :  { %v517_v45 = vpop.f32.mrb[2].mxu0 }
 0x67d   :  { %v519_v47 = vpop.f32.mrb[3].mxu0 }
 0x67e   :  { %v522_v49 = vsel %vm222_vm1, %v517_v45, %v519_v47 }
 0x67f   :  { %v523_v50 = vadd.f32 %v522_v49, %v445_v48 }
 0x681   :  { %1719 = vtanh.f32 %v523_v50  ;;  %v1474_v52 = vmul.f32 -1.442695, %v523_v50  ;;  %v765_v50 = vld [vmem:[#allocation3 + $0x14] sm:$0xf] }
 0x683   :  { %1721 = vpow2.f32 %v1474_v52 }
 0x68b   :  { %v1720_v51 = vpop.eup %1719 }
 0x68c   :  { %533 = vrot.lane.b32.xlu0 %v1720_v51, %s1820_s3  ;;  %v767_v51 = vrot.slane %v765_v50, 4  ;;  %v1110_v50 = vld [vmem:[%s2281_s8 + $0x8] sm:$0xff] }
 0x68d   :  { %v1722_v53 = vpop.eup %1721 }
 0x68e   :  { %v527_v54 = vadd.f32 1.0, %v1722_v53  ;;  %v764_v53 = vld [vmem:[#allocation2 + $0x14] sm:$0xf] }
 0x690   :  { %1723 = vrcp.f32 %v527_v54 }
 0x69a   :  { %v1724_v55 = vpop.eup %1723 }
 0x69b   :  { %v531_v58 = vmul.f32 %v1724_v55, %v433_v37 }
 0x6fe   :  { %v534_v56 = vpop.permute.xlu0 %533 }
 0x6ff   :  { %v536_v57 = vmul.f32 %v1724_v55, %v534_v56 }
 0x701   :  { %538 = vrot.lane.b32.xlu1 %v536_v57, %s1821_s5 }
 0x773   :  { %v539_v59 = vpop.permute.xlu1 %538 }
 0x774   :  { %v541_v60 = vadd.f32 %v539_v59, %v531_v58 }
 0x776   :  { %1725 = vtanh.f32 %v541_v60 }
 0x780   :  { %v1726_v61 = vpop.eup %1725 }
 0x781   :  { %544 = vrot.lane.b32.xlu0 %v1726_v61, %s1820_s3 }
 0x7f3   :  { %v545_v62 = vpop.permute.xlu0 %544 }
 0x7f4   :  { %v547_v63 = vmul.f32 %v1724_v55, %v545_v62  ;;  %v769_v55 = vsel %vm228_vm2, %v764_v53, %v767_v51  ;;  %v1111_v51 = vld [vmem:[%s2281_s8 + $0x10] sm:$0xff]  ;;  %v1657_v53 = vpack.c.bf16 %v1110_v50, %v1109_v40 }
 0x7f6   :  { %555 = vrot.lane.b32.xlu1 %v547_v63, %s1821_s5 }
 0x868   :  { %v556_v0 = vpop.permute.xlu1 %555 }
 0x869   :  { %1475 = vmatmul.mubr.msk.f32.vlgmr.msra.gmra.mrb[10].mxu1 %vm74_vm0, %v556_v0 }
 0x86a   :  { %1635 = vmatpush1.bf16.msra.mxu1 %v1984_v26  ;;  %839 = vmatprep.mubr.f32.mxu1 %v1819_v7 }
 0x86b   :  { %1637 = vmatprep.subr.bf16.mxu1 %v1996_v31 }
 0x86e   :  { %1639 = vmatpush1.bf16.msra.mxu1 %v1999_v33 }
 0x86f   :  { %1649 = vmatprep.subr.bf16.mxu1 %v1973_v21 }
 0x93c   :  { %v625_v3 = vpop.f32.mrb[10].mxu1 }
 0x93d   :  { %v627_v5 = vpop.f32.mrb[11].mxu1 }
 0x93e   :  { %v630_v8 = vsel %vm222_vm1, %v625_v3, %v627_v5  ;;  %v873_v5 = vld [vmem:[#allocation3 + $0x18] sm:$0xf] }
 0x93f   :  { %v631_v9 = vadd.f32 %v630_v8, %v553_v6  ;;  %v875_v6 = vrot.slane %v873_v5, 4  ;;  %v1123_v5 = vld [vmem:[%s2281_s8 + $0x70] sm:$0xff] }
 0x941   :  { %1727 = vtanh.f32 %v631_v9  ;;  %v1476_v11 = vmul.f32 -1.442695, %v631_v9  ;;  %v872_v9 = vld [vmem:[#allocation2 + $0x18] sm:$0xf] }
 0x943   :  { %1729 = vpow2.f32 %v1476_v11  ;;  %v877_v11 = vsel %vm228_vm2, %v872_v9, %v875_v6  ;;  %v1124_v6 = vld [vmem:[%s2281_s8 + $0x78] sm:$0xff]  ;;  %v1202_v9 = vld [vmem:[%s2283_s10] sm:$0xff] }
 0x94b   :  { %v1728_v10 = vpop.eup %1727 }
 0x94c   :  { %641 = vrot.lane.b32.xlu0 %v1728_v10, %s1820_s3 }
 0x94d   :  { %v1730_v12 = vpop.eup %1729 }
 0x94e   :  { %v635_v13 = vadd.f32 1.0, %v1730_v12 }
 0x950   :  { %1731 = vrcp.f32 %v635_v13 }
 0x95a   :  { %v1732_v21 = vpop.eup %1731 }
 0x95b   :  { %v639_v16 = vmul.f32 %v1732_v21, %v541_v60 }
 0x9be   :  { %v642_v14 = vpop.permute.xlu0 %641 }
 0x9bf   :  { %v644_v15 = vmul.f32 %v1732_v21, %v642_v14 }
 0x9c1   :  { %646 = vrot.lane.b32.xlu1 %v644_v15, %s1821_s5 }
 0xa33   :  { %v647_v17 = vpop.permute.xlu1 %646 }
 0xa34   :  { %v649_v18 = vadd.f32 %v647_v17, %v639_v16 }
 0xa36   :  { %1733 = vtanh.f32 %v649_v18 }
 0xa40   :  { %v1734_v19 = vpop.eup %1733 }
 0xa41   :  { %652 = vrot.lane.b32.xlu0 %v1734_v19, %s1820_s3 }
 0xab3   :  { %v653_v20 = vpop.permute.xlu0 %652 }
 0xab4   :  { %v655_v22 = vmul.f32 %v1732_v21, %v653_v20 }
 0xab6   :  { %663 = vrot.lane.b32.xlu1 %v655_v22, %s1821_s5 }
 0xb28   :  { %v664_v23 = vpop.permute.xlu1 %663 }
 0xb29   :  { %1477 = vmatmul.mubr.msk.f32.vlgmr.msra.gmra.mrb[4].mxu0 %vm74_vm0, %v664_v23 }
 0xb2a   :  { %1643 = vmatpush1.bf16.msra.mxu0 %v1984_v26  ;;  %947 = vmatprep.mubr.f32.mxu0 %v1819_v7 }
 0xb2b   :  { %1645 = vmatprep.subr.bf16.mxu0 %v1996_v31 }
 0xb2e   :  { %1647 = vmatpush1.bf16.msra.mxu0 %v1999_v33 }
 0xbfc   :  { %v733_v27 = vpop.f32.mrb[4].mxu0 }
 0xbfd   :  { %v735_v29 = vpop.f32.mrb[5].mxu0 }
 0xbfe   :  { %v738_v32 = vsel %vm222_vm1, %v733_v27, %v735_v29  ;;  %v981_v29 = vld [vmem:[#allocation3 + $0x1c] sm:$0xf] }
 0xbff   :  { %v739_v34 = vadd.f32 %v738_v32, %v661_v30  ;;  %v983_v30 = vrot.slane %v981_v29, 4  ;;  %v1485_v29 = vld [vmem:[%s2282_s9] ss:$0 sm:$0xff]  ;;  %s1824_s9 = smov 16  }
 0xc01   :  { %1735 = vtanh.f32 %v739_v34  ;;  %v1478_v36 = vmul.f32 -1.442695, %v739_v34  ;;  %v980_v34 = vld [vmem:[#allocation2 + $0x1c] sm:$0xf] }
 0xc03   :  { %1737 = vpow2.f32 %v1478_v36  ;;  %v985_v36 = vsel %vm228_vm2, %v980_v34, %v983_v30 }
 0xc0b   :  { %v1736_v35 = vpop.eup %1735 }
 0xc0c   :  { %749 = vrot.lane.b32.xlu0 %v1736_v35, %s1820_s3 }
 0xc0d   :  { %v1738_v37 = vpop.eup %1737 }
 0xc0e   :  { %v743_v38 = vadd.f32 1.0, %v1738_v37 }
 0xc10   :  { %1739 = vrcp.f32 %v743_v38 }
 0xc1a   :  { %v1740_v39 = vpop.eup %1739 }
 0xc1b   :  { %v747_v43 = vmul.f32 %v1740_v39, %v649_v18 }
 0xc7e   :  { %v750_v41 = vpop.permute.xlu0 %749 }
 0xc7f   :  { %v752_v42 = vmul.f32 %v1740_v39, %v750_v41 }
 0xc81   :  { %754 = vrot.lane.b32.xlu1 %v752_v42, %s1821_s5 }
 0xcf3   :  { %v755_v44 = vpop.permute.xlu1 %754 }
 0xcf4   :  { %v757_v45 = vadd.f32 %v755_v44, %v747_v43 }
 0xcf6   :  { %1741 = vtanh.f32 %v757_v45 }
 0xd00   :  { %v1742_v46 = vpop.eup %1741 }
 0xd01   :  { %760 = vrot.lane.b32.xlu0 %v1742_v46, %s1820_s3 }
 0xd73   :  { %v761_v47 = vpop.permute.xlu0 %760 }
 0xd74   :  { %v763_v48 = vmul.f32 %v1740_v39, %v761_v47 }
 0xd76   :  { %771 = vrot.lane.b32.xlu1 %v763_v48, %s1821_s5 }
 0xde8   :  { %v772_v49 = vpop.permute.xlu1 %771 }
 0xde9   :  { %1479 = vmatmul.mubr.msk.f32.vlgmr.msra.gmra.mrb[12].mxu1 %vm74_vm0, %v772_v49 }
 0xdea   :  { %1651 = vmatpush1.bf16.msra.mxu1 %v1984_v26  ;;  %1055 = vmatprep.mubr.f32.mxu1 %v1819_v7 }
 0xdeb   :  { %1653 = vmatprep.subr.bf16.mxu1 %v1996_v31 }
 0xdee   :  { %1655 = vmatpush1.bf16.msra.mxu1 %v1999_v33 }
 0xebc   :  { %v841_v52 = vpop.f32.mrb[12].mxu1 }
 0xebd   :  { %v843_v54 = vpop.f32.mrb[13].mxu1 }
 0xebe   :  { %v846_v56 = vsel %vm222_vm1, %v841_v52, %v843_v54  ;;  %v1822_v52 = vmov 0.0|0.0   ;;  %v1112_v54 = vld [vmem:[%s2281_s8 + $0x18] sm:$0xff] }
 0xebf   :  { %v847_v57 = vadd.f32 %v846_v56, %v769_v55  ;;  %1656 = vmatprep.subr.bf16.mxu0 %v1822_v52  ;;  %1680 = vmatprep.subr.bf16.mxu1 %v1822_v52  ;;  %v1660_v55 = vpack.c.bf16 %v1112_v54, %v1111_v51  ;;  %v1316_v51 = vld [vmem:[%s2280_s7] sm:$0xf] }
 0xec1   :  { %1743 = vtanh.f32 %v847_v57  ;;  %v1480_v26 = vmul.f32 -1.442695, %v847_v57  ;;  %v1113_v57 = vld [vmem:[%s2281_s8 + $0x20] sm:$0xff] }
 0xec3   :  { %1745 = vpow2.f32 %v1480_v26 }
 0xecb   :  { %v1744_v58 = vpop.eup %1743 }
 0xecc   :  { %857 = vrot.lane.b32.xlu0 %v1744_v58, %s1820_s3  ;;  %v1114_v58 = vld [vmem:[%s2281_s8 + $0x28] sm:$0xff] }
 0xecd   :  { %v1746_v31 = vpop.eup %1745  ;;  %v1663_v26 = vpack.c.bf16 %v1114_v58, %v1113_v57 }
 0xece   :  { %v851_v59 = vadd.f32 1.0, %v1746_v31  ;;  %v1115_v31 = vld [vmem:[%s2281_s8 + $0x30] sm:$0xff] }
 0xed0   :  { %1747 = vrcp.f32 %v851_v59  ;;  %v1116_v59 = vld [vmem:[%s2281_s8 + $0x38] sm:$0xff] }
 0xeda   :  { %v1748_v33 = vpop.eup %1747 }
 0xedb   :  { %v855_v62 = vmul.f32 %v1748_v33, %v757_v45 }
 0xf3e   :  { %v858_v60 = vpop.permute.xlu0 %857 }
 0xf3f   :  { %v860_v61 = vmul.f32 %v1748_v33, %v858_v60  ;;  %v1117_v60 = vld [vmem:[%s2281_s8 + $0x40] sm:$0xff] }
 0xf41   :  { %862 = vrot.lane.b32.xlu1 %v860_v61, %s1821_s5  ;;  %v1118_v61 = vld [vmem:[%s2281_s8 + $0x48] sm:$0xff] }
 0xfb3   :  { %v863_v63 = vpop.permute.xlu1 %862 }
 0xfb4   :  { %v865_v0 = vadd.f32 %v863_v63, %v855_v62  ;;  %v1669_v62 = vpack.c.bf16 %v1118_v61, %v1117_v60  ;;  %v1119_v63 = vld [vmem:[%s2281_s8 + $0x50] sm:$0xff] }
 0xfb6   :  { %1749 = vtanh.f32 %v865_v0 }
 0xfc0   :  { %v1750_v1 = vpop.eup %1749 }
 0xfc1   :  { %868 = vrot.lane.b32.xlu0 %v1750_v1, %s1820_s3 }
0x1033   :  { %v869_v2 = vpop.permute.xlu0 %868 }
0x1034   :  { %v871_v3 = vmul.f32 %v1748_v33, %v869_v2  ;;  %v1666_v33 = vpack.c.bf16 %v1116_v59, %v1115_v31  ;;  %v1121_v2 = vld [vmem:[%s2281_s8 + $0x60] sm:$0xff] }
0x1036   :  { %879 = vrot.lane.b32.xlu1 %v871_v3, %s1821_s5  ;;  %v1122_v3 = vld [vmem:[%s2281_s8 + $0x68] sm:$0xff] }
0x10a8   :  { %v880_v4 = vpop.permute.xlu1 %879 }
0x10a9   :  { %1481 = vmatmul.mubr.msk.f32.vlgmr.msra.gmra.mrb[6].mxu0 %vm74_vm0, %v880_v4  ;;  %v1675_v4 = vpack.c.bf16 %v1122_v3, %v1121_v2 }
0x10aa   :  { %1658 = vmatpush3.bf16.msra.mxu0 %v1657_v53  ;;  %1571 = vmatprep.mubr.msk.f32.mxu0 %vm1823_vm3, %v1819_v7  ;;  %v1318_v53 = vld [vmem:[%s2280_s7 + $0x8] sm:$0xf] }
0x10ab   :  { %1659 = vmatprep.subr.bf16.mxu0 %v1822_v52 }
0x10ae   :  { %1661 = vmatpush3.bf16.msra.mxu0 %v1660_v55 }
0x10af   :  { %1662 = vmatprep.subr.bf16.mxu0 %v1822_v52 }
0x10b2   :  { %1664 = vmatpush3.bf16.msra.mxu0 %v1663_v26 }
0x10b3   :  { %1665 = vmatprep.subr.bf16.mxu0 %v1822_v52 }
0x10b6   :  { %1667 = vmatpush3.bf16.msra.mxu0 %v1666_v33 }
0x10b7   :  { %1668 = vmatprep.subr.bf16.mxu0 %v1822_v52 }
0x10ba   :  { %1670 = vmatpush3.bf16.msra.mxu0 %v1669_v62 }
0x10bb   :  { %1671 = vmatprep.subr.bf16.mxu0 %v1822_v52 }
0x117c   :  { %v949_v8 = vpop.f32.mrb[6].mxu0 }
0x117d   :  { %v951_v10 = vpop.f32.mrb[7].mxu0 }
0x117e   :  { %v954_v12 = vsel %vm222_vm1, %v949_v8, %v951_v10  ;;  %v1678_v8 = vpack.c.bf16 %v1124_v6, %v1123_v5  ;;  %v1203_v10 = vld [vmem:[%s2283_s10 + $0x8] sm:$0xff] }
0x117f   :  { %v955_v13 = vadd.f32 %v954_v12, %v877_v11  ;;  %v1681_v11 = vpack.c.bf16 %v1203_v10, %v1202_v9 }
0x1181   :  { %1751 = vtanh.f32 %v955_v13  ;;  %v1482_v14 = vmul.f32 -1.442695, %v955_v13 }
0x1183   :  { %1753 = vpow2.f32 %v1482_v14 }
0x118b   :  { %v1752_v21 = vpop.eup %1751 }
0x118c   :  { %965 = vrot.lane.b32.xlu0 %v1752_v21, %s1820_s3 }
0x118d   :  { %v1754_v15 = vpop.eup %1753 }
0x118e   :  { %v959_v16 = vadd.f32 1.0, %v1754_v15 }
0x1190   :  { %1755 = vrcp.f32 %v959_v16 }
0x119a   :  { %v1756_v17 = vpop.eup %1755 }
0x119b   :  { %v963_v20 = vmul.f32 %v1756_v17, %v865_v0  ;;  %v1120_v0 = vld [vmem:[%s2281_s8 + $0x58] sm:$0xff] }
0x119c   :  { %v1672_v1 = vpack.c.bf16 %v1120_v0, %v1119_v63 }
0x119e   :  { %1673 = vmatpush3.bf16.msra.mxu0 %v1672_v1 }
0x119f   :  { %1674 = vmatprep.subr.bf16.mxu0 %v1822_v52 }
0x11a2   :  { %1676 = vmatpush3.bf16.msra.mxu0 %v1675_v4 }
0x11a3   :  { %1677 = vmatprep.subr.bf16.mxu0 %v1822_v52 }
0x11a6   :  { %1679 = vmatpush3.bf16.msra.mxu0 %v1678_v8 }
0x11fe   :  { %v966_v18 = vpop.permute.xlu0 %965 }
0x11ff   :  { %v968_v19 = vmul.f32 %v1756_v17, %v966_v18 }
0x1201   :  { %970 = vrot.lane.b32.xlu1 %v968_v19, %s1821_s5 }
0x1273   :  { %v971_v22 = vpop.permute.xlu1 %970 }
0x1274   :  { %v973_v23 = vadd.f32 %v971_v22, %v963_v20 }
0x1276   :  { %1757 = vtanh.f32 %v973_v23 }
0x1280   :  { %v1758_v24 = vpop.eup %1757 }
0x1281   :  { %976 = vrot.lane.b32.xlu0 %v1758_v24, %s1820_s3 }
0x12f3   :  { %v977_v25 = vpop.permute.xlu0 %976 }
0x12f4   :  { %v979_v27 = vmul.f32 %v1756_v17, %v977_v25  ;;  %v1204_v25 = vld [vmem:[%s2283_s10 + $0x10] sm:$0xff] }
0x12f6   :  { %987 = vrot.lane.b32.xlu1 %v979_v27, %s1821_s5  ;;  %v1205_v27 = vld [vmem:[%s2283_s10 + $0x18] sm:$0xff] }
0x1368   :  { %v988_v28 = vpop.permute.xlu1 %987 }
0x1369   :  { %1483 = vmatmul.mubr.msk.f32.vlgmr.msra.gmra.mrb[14].mxu1 %vm74_vm0, %v988_v28  ;;  %v1684_v28 = vpack.c.bf16 %v1205_v27, %v1204_v25 }
0x136a   :  { %1582 = vmatprep.mubr.msk.f32.mxu1 %vm1823_vm3, %v1819_v7  ;;  %1682 = vmatpush3.bf16.msra.mxu1 %v1681_v11 }
0x136b   :  { %1683 = vmatprep.subr.bf16.mxu1 %v1822_v52 }
0x136e   :  { %1685 = vmatpush3.bf16.msra.mxu1 %v1684_v28 }
0x136f   :  { %1686 = vmatprep.subr.bf16.mxu1 %v1822_v52  ;;  %v1317_v52 = vld [vmem:[%s2280_s7 + $0x4] sm:$0xf] }
0x143c   :  { %v1057_v32 = vpop.f32.mrb[14].mxu1 }
0x143d   :  { %v1059_v35 = vpop.f32.mrb[15].mxu1 }
0x143e   :  { %v1062_v37 = vsel %vm222_vm1, %v1057_v32, %v1059_v35  ;;  %v1486_v35 = vld [vmem:[%s2284_s11] ss:$0 sm:$0xff]  ;;  %s1825_s11 = smov 112  }
0x143f   :  { %v1063_v38 = vadd.f32 %v1062_v37, %v985_v36 }
0x1441   :  { %1759 = vtanh.f32 %v1063_v38  ;;  %v1484_v41 = vmul.f32 -1.442695, %v1063_v38 }
0x1443   :  { %1761 = vpow2.f32 %v1484_v41 }
0x144b   :  { %v1760_v39 = vpop.eup %1759 }
0x144c   :  { %1073 = vrot.lane.b32.xlu0 %v1760_v39, %s1820_s3 }
0x144d   :  { %v1762_v42 = vpop.eup %1761 }
0x144e   :  { %v1067_v43 = vadd.f32 1.0, %v1762_v42 }
0x1450   :  { %1763 = vrcp.f32 %v1067_v43  ;;  %v1340_v43 = vld [vmem:[%s2285_s12 + $0x8] sm:$0xff] }
0x145a   :  { %v1764_v44 = vpop.eup %1763 }
0x145b   :  { %v1071_v47 = vmul.f32 %v1764_v44, %v973_v23 }
0x14be   :  { %v1074_v45 = vpop.permute.xlu0 %1073 }
0x14bf   :  { %v1076_v46 = vmul.f32 %v1764_v44, %v1074_v45 }
0x14c1   :  { %1078 = vrot.lane.b32.xlu1 %v1076_v46, %s1821_s5 }
0x1533   :  { %v1079_v48 = vpop.permute.xlu1 %1078 }
0x1534   :  { %v1081_v49 = vadd.f32 %v1079_v48, %v1071_v47 }
0x1536   :  { %1765 = vtanh.f32 %v1081_v49  ;;  %v1100_v15 = vrot.slane %v1081_v49, 4 }
0x1540   :  { %v1766_v56 = vpop.eup %1765 }
0x1541   :  { %1084 = vrot.lane.b32.xlu0 %v1766_v56, %s1820_s3 }
0x15b3   :  { %v1085_v12 = vpop.permute.xlu0 %1084 }
0x15b4   :  { %v1087_v13 = vmul.f32 %v1764_v44, %v1085_v12 }
0x15b6   :  { %v1698_v21 = vpack.i.bf16 %v1081_v49, %v1087_v13  ;;  %v1092_v14 = vrot.slane %v1087_v13, 4 }
0x15b8   :  { %1699 = vrot.lane.b32.xlu1 %v1698_v21, %s1821_s5  ;;  %1093 = vrot.lane.b32.xlu0 %v1092_v14, %s1820_s3  ;;  %s1827_s5 = smov [#allocation6]  }
0x15b9   :  { %s1440_s2 = sshll.u32 %s1827_s5, 4  ;;  %s1441_s2 = int_to_ptr.vmem [resolvable:$true] %s1440_s2 }
0x15bc   :  { %1101 = vrot.lane.b32.xlu1 %v1100_v15, %s1820_s3 }
0x162a   :  { %v1700_v16 = vpop.permute.xlu1 %1699  ;;  %v1094_v19 = vpop.permute.xlu0 %1093 }
0x162b   :  { %v1702_v17 = vunpack.i.h.bf16 %v1700_v16  ;;  %v1701_v18 = vunpack.i.l.bf16 %v1700_v16 }
0x162d   :  { %v1104_v20 = vsel %vm74_vm0, %v1701_v18, %v1094_v19 }
0x162e   :  { %v1102_v22 = vpop.permute.xlu1 %1101  ;;  %v1106_v23 = vsel %vm1105_vm4, %v1104_v20, %v1702_v17 }
0x162f   :  { %v1108_v24 = vsel %vm1107_vm5, %v1106_v23, %v1102_v22 }
0x1630   :  { %1572 = vmatmul.mubr.f32.vlgmr.msra.gmra.mrb[8].mxu0 %v1108_v24 }
0x1703   :  { %v1198_v30 = vpop.f32.mrb[8].mxu0 }
0x1704   :  { %v1199_v32 = vadd.f32 %v1485_v29, %v1198_v30  ;;  %v1573_v34 = vpop.f32.mrb[9].mxu0 }
0x1706   :  { %1583 = vmatmul.mubr.msk.f32.vlgmr.msra.gmra.mrb[16].mxu1 %vm74_vm0, %v1199_v32 }
0x1707   :  { %1589 = vmatprep.mubr.msk.f32.mxu1 %vm1823_vm3, %v1819_v7  ;;  %v1339_v7 = vld [vmem:[%s2285_s12] sm:$0xff] }
0x1708   :  { %v1687_v44 = vpack.c.bf16 %v1340_v43, %v1339_v7 }
0x170a   :  { %1688 = vmatpush3.bf16.msra.mxu1 %v1687_v44 }
0x17d9   :  { %v1282_v36 = vpop.f32.mrb[16].mxu1 }
0x17da   :  { %v1283_v37 = vadd.f32 %v1486_v35, %v1282_v36  ;;  %v1584_v38 = vpop.f32.mrb[17].mxu1 }
0x17dc   :  { %v1294_v39 = vmul.f32 %v1283_v37, %v1283_v37  ;;  %v1313_v41 = vmul.f32 0.5, %v1283_v37  ;;  %1287 = vst.msk [vmem:[#allocation4] sm:$0xf] %vm1286_vm6, %v1283_v37  ;;  %v1300_v46 = vmul.f32 1.442695, %v1283_v37  ;;  %v1293_v47 = vadd.f32 1.0, %v1283_v37 }
0x17de   :  { %1296 = vrot.lane.b32.xlu1 %v1294_v39, %s1824_s9  ;;  %v1314_v42 = vmul.f32 1.442695, %v1313_v41 }
0x17e0   :  { %1767 = vpow2.f32 %v1314_v42 }
0x17e1   :  { %1769 = vpow2.f32 %v1300_v46 }
0x17ea   :  { %v1768_v45 = vpop.eup %1767 }
0x17eb   :  { %1320 = vrot.lane.b32.xlu0 %v1768_v45, %s1825_s11  ;;  %v1770_v40 = vpop.eup %1769 }
0x1850   :  { %v1297_v48 = vpop.permute.xlu1 %1296 }
0x1851   :  { %v1299_v49 = vsub.f32 %v1293_v47, %v1297_v48 }
0x1853   :  { %v1302_v50 = vsub.f32 %v1299_v49, %v1770_v40 }
0x1855   :  { %1304 = vrot.lane.b32.xlu0 %v1302_v50, %s1825_s11 }
0x1859   :  { %1289 = vrot.lane.b32.xlu0 %v1283_v37, %s1825_s11 }
0x185d   :  { %v1321_v54 = vpop.permute.xlu0 %1320 }
0x185e   :  { %v1323_v55 = vmul.f32 %v1321_v54, %v1316_v51  ;;  %v1324_v56 = vmul.f32 %v1321_v54, %v1317_v52  ;;  %v1325_v57 = vmul.f32 %v1321_v54, %v1318_v53 }
0x1860   :  { %v1326_v58 = vadd.f32 %v1323_v55, %v1283_v37  ;;  %v1327_v26 = vadd.f32 %v1324_v56, %v1283_v37  ;;  %v1328_v31 = vadd.f32 %v1325_v57, %v1283_v37 }
0x1862   :  { %1329 = vst.msk [vmem:[%s2290_s17] sm:$0xf] %vm1286_vm6, %v1326_v58  ;;  %1330 = vst.msk [vmem:[%s2290_s17 + $0x4] sm:$0xf] %vm1286_vm6, %v1327_v26  ;;  %v1332_v59 = vsel %vm1286_vm6, %v1326_v58, 0.0  ;;  %v1333_v33 = vsel %vm1286_vm6, %v1327_v26, 0.0 }
0x1863   :  { %1331 = vst.msk [vmem:[%s2290_s17 + $0x8] sm:$0xf] %vm1286_vm6, %v1328_v31  ;;  %v1334_v60 = vadd.f32 %v1333_v33, %v1332_v59  ;;  %v1335_v61 = vsel %vm1286_vm6, %v1328_v31, 0.0  ;;  %s1430_s17 = sshll.u32 %s1826_s22, 4  ;;  %s1431_s17 = int_to_ptr.vmem [resolvable:$true] %s1430_s17 }
0x1864   :  { %s1771_s3 = scalar_lea.vmem %s1431_s17, 64  ;;  %p1776_p1 = scmp.lt.s32.totalorder %s1431_s17, %s1431_s17 }
0x1865   :  { %v1336_v62 = vadd.f32 %v1335_v61, %v1334_v60  ;;  %p1772_p0 = scmp.ne.s32.totalorder %s1431_s17, %s1771_s3  ;;  %p1777_p2 = scmp.lt.s32.totalorder %s1771_s3, %s1771_s3 }
0x1867   :  { %v1338_v63 = vmul.f32 0.33333334, %v1336_v62  ;;  %p1778_p3 = por %p1777_p2, %p1776_p1 }
0x1869   :  { %1590 = vmatmul.mubr.msk.f32.vlgmr.msra.gmra.mrb[18].mxu1 %vm1348_vm7, %v1338_v63  ;;  %p1779_p4 = pnand %p1778_p3, %p1772_p0 }
0x18c7   :  { %v1305_v0 = vpop.permute.xlu0 %1304 }
0x18c8   :  { %v1307_v1 = vsel %vm1286_vm6, %v1305_v0, 0.0 }
0x18c9   :  { %1308 = vadd.xlane.f32.xlu1 %v1307_v1 }
0x18cb   :  { %v1290_v2 = vpop.permute.xlu0 %1289 }
0x18cc   :  { %1292 = vst.msk [vmem:[#allocation6] sm:$0xf] %vm1286_vm6, %v1290_v2 }
0x18cd   :  { %1782 = shalt.err (!%p1779_p4)
}
0x18ce   :  { %s1783_s23 = scalar_lea.hbm %s2287_s14, 64 }
0x18cf   :  { %p1784_p5 = scmp.ne.s32.totalorder %s2287_s14, %s1783_s23  ;;  %p1787_p6 = scmp.lt.u32.totalorder %s1783_s23, %s2287_s14 }
0x18d1   :  { %p1789_p7 = pnand %p1787_p6, %p1784_p5 }
0x18d3   :  { %1792 = shalt.err (!%p1789_p7)
}
0x18d4   :  { %1433 = dma.vmem_to_hbm [thread:$0]  %s1431_s17, 64, %s2287_s14, [#allocation5]  }
0x18d5   :  { %s1793_s29 = scalar_lea.vmem %s1441_s2, 64  ;;  %p1798_p9 = scmp.lt.s32.totalorder %s1441_s2, %s1441_s2 }
0x18d6   :  { %p1794_p8 = scmp.ne.s32.totalorder %s1441_s2, %s1793_s29  ;;  %p1799_p10 = scmp.lt.s32.totalorder %s1793_s29, %s1793_s29 }
0x18d8   :  { %p1800_p11 = por %p1799_p10, %p1798_p9 }
0x18da   :  { %p1801_p12 = pnand %p1800_p11, %p1794_p8 }
0x18dc   :  { %1804 = shalt.err (!%p1801_p12)
}
0x18dd   :  { %s1805_s12 = scalar_lea.hbm %s2288_s15, 64 }
0x18de   :  { %p1806_p13 = scmp.ne.s32.totalorder %s2288_s15, %s1805_s12  ;;  %p1809_p0 = scmp.lt.u32.totalorder %s1805_s12, %s2288_s15 }
0x18e0   :  { %p1811_p1 = pnand %p1809_p0, %p1806_p13 }
0x18e2   :  { %1814 = shalt.err (!%p1811_p1)
}
0x18e3   :  { %1443 = dma.vmem_to_hbm [thread:$0]  %s1441_s2, 64, %s2288_s15, [#allocation7]   ;;  %v1488_v3 = vld [vmem:[%s2286_s13] ss:$0 sm:$0xff]  ;;  %vm1422_vm8 = vcmask 519168   ;;  %vm1311_vm9 = vcmask 3072  }
0x193c   :  { %v1418_v4 = vpop.f32.mrb[18].mxu1 }
0x193d   :  { %v1419_v5 = vadd.f32 %v1488_v3, %v1418_v4  ;;  %v1591_v6 = vpop.f32.mrb[19].mxu1 }
0x193f   :  { %1423 = vst.msk [vmem:[%s2291_s18] sm:$0xf] %vm1422_vm8, %v1419_v5 }
0x1956   :  { %v1309_v8 = vpop.xlane.xlu1 %1308 }
0x1957   :  { %v1310_v9 = vmul.f32 -0.5, %v1309_v8 }
0x1959   :  { %1312 = vst.msk [vmem:[%s2289_s16] sm:$0xf] %vm1311_vm9, %v1310_v9 }
0x195a   :  { %1815 = dma.done.wait [#allocation5], 64  }
0x195b   :  { %1816 = vsyncadd [#allocation5], 4294967232 }
0x195c   :  { %1817 = dma.done.wait [#allocation7], 64  }
0x195d   :  { %1818 = vsyncadd [#allocation7], 4294967232 }
0x195e   :  { %1462 = vsyncpa [#allocation5], 1 }
0x195f   :  { %1463 = vsyncpa [#allocation7], 1 }

</bundles_post_ra>
